<compile_context>
chip_gen: v5e
topology: v5e:2x2
jax: 0.10.0
libtpu: 0.0.40
codegen_flags: <defaults>
</compile_context>

<pallas_src>
import functools

import jax
import jax.numpy as jnp
from jax import lax
from jax.experimental import pallas as pl
from jax.experimental.pallas import tpu as pltpu


def _round_up(a, m):
    return (a + m - 1) // m * m


def _resblock_kernel(top_ref, ctr_ref, bot_ref, w1_ref, b1_ref, w2_ref, b2_ref,
                     out_ref, *, res_scale, img_h, img_w):
    # top/bot_ref : (1, 2p, Wp+2p, Cp) bf16   halo rows above / below the tile
    # ctr_ref     : (1, TH, Wp+2p, Cp) bf16   the tile's own (W-padded) rows
    # w?_ref      : (K, K*Cp, Cp)      bf16   per-ky, kx-folded HWIO weights
    # b?_ref      : (1, Cp)            f32
    # out_ref     : (1, TH, Wp, Cp)    bf16
    _, TH, Wp, Cp = out_ref.shape
    K = w1_ref.shape[0]
    p = K // 2
    THp2 = TH + 2 * p
    KC = K * Cp

    ti = pl.program_id(1)

    ctr = ctr_ref[0]                                   # (TH,   Wp+2p, Cp)
    top = top_ref[0]                                   # (2p,   Wp+2p, Cp)
    bot = bot_ref[0]                                   # (2p,   Wp+2p, Cp)
    # Tile 0 has no rows above the image; its top-halo block index was clamped
    # to 0, so zero it here (== conv zero padding above row 0).
    top = jnp.where(ti == 0, jnp.zeros_like(top), top)
    xw = jnp.concatenate([top, ctr, bot], axis=0)      # (TH+4p, Wp+2p, Cp)

    # ---- conv1: fold kx taps into the contraction ---------------------------
    xcat = jnp.concatenate([xw[:, kx:kx + Wp, :] for kx in range(K)], axis=-1)
    acc1 = jnp.zeros((THp2 * Wp, Cp), jnp.float32)
    for ky in range(K):
        patch = xcat[ky:ky + THp2].reshape(THp2 * Wp, KC)        # bf16
        acc1 = acc1 + jnp.dot(patch, w1_ref[ky],
                              preferred_element_type=jnp.float32)
    acc1 = jnp.maximum(acc1 + b1_ref[0][None, :], 0.0).reshape(THp2, Wp, Cp)

    # conv2 must see conv1's output *zero padded*: zero the rows/cols that lie
    # outside the image (recomputed halo rows, bottom H padding, W->Wp pad
    # columns).  Fused into the bf16 cast via an iota mask.
    row = lax.broadcasted_iota(jnp.int32, (THp2, Wp, 1), 0)
    g = ti * TH - p + row                               # global conv1-out row
    valid = (g >= 0) & (g < img_h)
    if Wp != img_w:
        col = lax.broadcasted_iota(jnp.int32, (THp2, Wp, 1), 1)
        valid = valid & (col < img_w)
    t_mid = jnp.where(valid, acc1, 0.0).astype(jnp.bfloat16)

    zcol = jnp.zeros((THp2, p, Cp), jnp.bfloat16)
    t_pad = jnp.concatenate([zcol, t_mid, zcol], axis=1)         # (THp2, Wp+2p, Cp)

    # ---- conv2: same kx-folded contraction ----------------------------------
    tcat = jnp.concatenate([t_pad[:, kx:kx + Wp, :] for kx in range(K)], axis=-1)
    acc2 = jnp.zeros((TH * Wp, Cp), jnp.float32)
    for ky in range(K):
        patch = tcat[ky:ky + TH].reshape(TH * Wp, KC)            # bf16
        acc2 = acc2 + jnp.dot(patch, w2_ref[ky],
                              preferred_element_type=jnp.float32)
    acc2 = (acc2 + b2_ref[0][None, :]).reshape(TH, Wp, Cp)

    # ---- residual + bf16 writeback ------------------------------------------
    resid = ctr[:, p:p + Wp, :].astype(jnp.float32)
    out_ref[0] = (acc2 * res_scale + resid).astype(out_ref.dtype)


def _vmem_estimate(TH, Wp, Wtot, Cp, K, p):
    """Rough flat-sum of per-step VMEM live bytes (used to size TH)."""
    THp2, THp4 = TH + 2 * p, TH + 4 * p
    bf, f4 = 2, 4
    inputs = 2 * THp4 * Wtot * Cp * bf            # center + halos, x2 buffers
    weights = 2 * 2 * K * K * Cp * Cp * bf        # both convs, x2 buffers
    outs = 2 * TH * Wp * Cp * bf
    xw = THp4 * Wtot * Cp * bf
    xcat = THp4 * Wp * K * Cp * bf
    acc1 = THp2 * Wp * Cp * f4
    tpad = THp2 * Wtot * Cp * bf
    tcat = THp2 * Wp * K * Cp * bf
    acc2 = TH * Wp * Cp * f4
    return inputs + weights + outs + xw + xcat + acc1 + tpad + tcat + acc2


def prepare_resblock_params(w1, b1, w2, b2):
    """PyTorch OIHW weights + biases -> folded bf16/f32 Pallas params.

    Done once per ResBlock (hoisted to model init in a full EDSR body).
    """
    C, K = w1.shape[1], w1.shape[-1]
    assert K % 2 == 1, "odd kernel size expected (EDSR default is 3)"
    Cp = _round_up(C, 128)

    def prep_w(w):
        w_hwio = jnp.transpose(w, (2, 3, 1, 0))                  # (K,K,Ci,Co)
        w_hwio = jnp.pad(w_hwio, ((0, 0), (0, 0), (0, Cp - C), (0, Cp - C)))
        return w_hwio.reshape(K, K * Cp, Cp).astype(jnp.bfloat16)  # kx folded

    def prep_b(b):
        return jnp.pad(b, (0, Cp - C)).reshape(1, Cp).astype(jnp.float32)

    return prep_w(w1), prep_b(b1), prep_w(w2), prep_b(b2)


def resblock_pallas_nhwc(x_nhwc, w1_f, b1_f, w2_f, b2_f, *, res_scale,
                         tile_h=32,
                         vmem_budget_bytes=40 * 1024 * 1024,
                         vmem_limit_bytes=64 * 1024 * 1024):
    """Production path: NHWC, channel-padded (Cp % 128 == 0), bf16 in/out."""
    B, H, W, Cp = x_nhwc.shape
    K = w1_f.shape[0]
    p = K // 2
    step = 2 * p                      # halo rows per side; TH must be a multiple
    assert Cp % 128 == 0 and Cp == w1_f.shape[-1]

    Wp = _round_up(W, 8)              # sublane-aligned conv output width
    Wtot = Wp + 2 * p

    # Row-tile height: requested tile_h, rounded to a multiple of 2p, clipped
    # to the (rounded-up) image height, then shrunk until the tile fits the
    # VMEM budget (v7x = 64 MiB physical; v5e scoped default is small).
    TH = min(_round_up(max(tile_h, step), step), _round_up(H, step))
    while TH > step and _vmem_estimate(TH, Wp, Wtot, Cp, K, p) > vmem_budget_bytes:
        TH -= step
    NT = pl.cdiv(H, TH)
    Hp = NT * TH
    nb = TH // step                   # halo-block index stride

    # One padded bf16 copy of the input: rows [0,H) image, [H, Hp+2p) zeros
    # (bottom halo + partial-tile fill), W padded by p left and (Wp-W)+p right.
    xpad = jnp.pad(x_nhwc.astype(jnp.bfloat16),
                   ((0, 0), (0, Hp - H + 2 * p), (p, Wp - W + p), (0, 0)))

    kernel = functools.partial(_resblock_kernel, res_scale=float(res_scale),
                               img_h=H, img_w=W)

    flops = 2 * 2 * B * Hp * Wp * Cp * Cp * K * K
    bytes_accessed = int(
        B * (Hp + 2 * p) * Wtot * Cp * 2            # center blocks (one pass)
        + B * NT * 2 * step * Wtot * Cp * 2         # halo re-reads
        + B * Hp * Wp * Cp * 2                      # bf16 output writeback
        + 2 * K * K * Cp * Cp * 2 + 2 * Cp * 4)     # weights + biases

    out = pl.pallas_call(
        kernel,
        out_shape=jax.ShapeDtypeStruct((B, Hp, Wp, Cp), jnp.bfloat16),
        grid_spec=pltpu.PrefetchScalarGridSpec(
            num_scalar_prefetch=0,
            grid=(B, NT),
            in_specs=[
                # top halo: rows [t*TH - 2p, t*TH); clamp t=0 to block 0, the
                # kernel zeroes it (rows above the image are conv zero-pad).
                pl.BlockSpec((1, step, Wtot, Cp),
                             lambda b, t: (b, jnp.maximum(t * nb - 1, 0), 0, 0)),
                # center: the tile's own TH rows (non-overlapping, pipelined).
                pl.BlockSpec((1, TH, Wtot, Cp), lambda b, t: (b, t, 0, 0)),
                # bottom halo: rows [(t+1)*TH, (t+1)*TH + 2p)  (zeros past H).
                pl.BlockSpec((1, step, Wtot, Cp),
                             lambda b, t: (b, (t + 1) * nb, 0, 0)),
                pl.BlockSpec((K, K * Cp, Cp), lambda b, t: (0, 0, 0)),
                pl.BlockSpec((1, Cp), lambda b, t: (0, 0)),
                pl.BlockSpec((K, K * Cp, Cp), lambda b, t: (0, 0, 0)),
                pl.BlockSpec((1, Cp), lambda b, t: (0, 0)),
            ],
            out_specs=pl.BlockSpec((1, TH, Wp, Cp), lambda b, t: (b, t, 0, 0)),
        ),
        compiler_params=pltpu.CompilerParams(
            dimension_semantics=("parallel", "parallel"),
            vmem_limit_bytes=int(vmem_limit_bytes)),
        cost_estimate=pl.CostEstimate(flops=flops, transcendentals=0,
                                      bytes_accessed=bytes_accessed),
    )(xpad, xpad, xpad, w1_f, b1_f, w2_f, b2_f)   # same buffer thrice: no copy

    return out[:, :H, :W, :]


def resblock_pallas(x_nchw, w1, b1, w2, b2, res_scale=1.0, *, tile_h=32):
    """PyTorch-interface wrapper: NCHW f32 in/out, OIHW weights.

    In a full EDSR body the NCHW<->NHWC transposes, channel padding and the
    f32 cast would be hoisted to model entry/exit and the params prepared once.
    """
    B, C, H, W = x_nchw.shape
    Cp = _round_up(C, 128)
    params = prepare_resblock_params(w1, b1, w2, b2)

    x = jnp.transpose(x_nchw, (0, 2, 3, 1))                       # NHWC
    x = jnp.pad(x, ((0, 0), (0, 0), (0, 0), (0, Cp - C))).astype(jnp.bfloat16)

    y = resblock_pallas_nhwc(x, *params, res_scale=res_scale, tile_h=tile_h)

    return jnp.transpose(y[..., :C].astype(jnp.float32), (0, 3, 1, 2))


def resblock_ref(x_nchw, w1, b1, w2, b2, res_scale=1.0):
    """Pure-JAX reference (mirrors PyTorch Conv2d with padding=k//2)."""
    dn = lax.conv_dimension_numbers(x_nchw.shape, w1.shape,
                                    ("NCHW", "OIHW", "NCHW"))
    p = w1.shape[-1] // 2
    y = lax.conv_general_dilated(x_nchw, w1, (1, 1), [(p, p), (p, p)],
                                 dimension_numbers=dn)
    y = y + b1[None, :, None, None]
    y = jnp.maximum(y, 0.0)
    y = lax.conv_general_dilated(y, w2, (1, 1), [(p, p), (p, p)],
                                 dimension_numbers=dn)
    y = y + b2[None, :, None, None]
    return y * res_scale + x_nchw


if __name__ == "__main__":
    key = jax.random.PRNGKey(0)
    kx, k1, kb1, k2, kb2, kx2 = jax.random.split(key, 6)

    # PyTorch Conv2d parameter shapes: OIHW weights + bias.
    B, C, H, W, K = 2, 8, 16, 16, 3
    x = jax.random.normal(kx, (B, C, H, W), jnp.float32)
    w1 = jax.random.normal(k1, (C, C, K, K), jnp.float32) * 0.1
    b1 = jax.random.normal(kb1, (C,), jnp.float32) * 0.1
    w2 = jax.random.normal(k2, (C, C, K, K), jnp.float32) * 0.1
    b2 = jax.random.normal(kb2, (C,), jnp.float32) * 0.1

    # Case 1: divisible shapes (single H tile per batch element).
    out = jax.block_until_ready(resblock_pallas(x, w1, b1, w2, b2, 1.0))
    ref = resblock_ref(x, w1, b1, w2, b2, 1.0)
    assert out.shape == (B, C, H, W)
    # bf16 activations/weights/output (f32 accumulation) vs. f32 reference.
    assert jnp.allclose(out, ref, atol=1e-1, rtol=1e-1), (
        f"max abs err {jnp.max(jnp.abs(out - ref))}")

    # Case 2: awkward H/W (partial last row tile, W padded to a sublane
    # multiple, boundary masking, res_scale != 1).
    B2, H2, W2 = 1, 13, 20
    x2 = jax.random.normal(kx2, (B2, C, H2, W2), jnp.float32)
    out2 = jax.block_until_ready(
        resblock_pallas(x2, w1, b1, w2, b2, 0.5, tile_h=8))
    ref2 = resblock_ref(x2, w1, b1, w2, b2, 0.5)
    assert out2.shape == (B2, C, H2, W2)
    assert jnp.allclose(out2, ref2, atol=1e-1, rtol=1e-1), (
        f"max abs err {jnp.max(jnp.abs(out2 - ref2))}")

    print("KERNEL_OK")
</pallas_src>

<mosaic_0001>
module attributes {stable_mosaic.version = 11 : i64} {
  func.func @_resblock_kernel(%arg0: i32, %arg1: i32, %arg2: memref<1x2x18x128xbf16, #tpu.memory_space<vmem>>, %arg3: memref<1x16x18x128xbf16, #tpu.memory_space<vmem>>, %arg4: memref<1x2x18x128xbf16, #tpu.memory_space<vmem>>, %arg5: memref<3x384x128xbf16, #tpu.memory_space<vmem>>, %arg6: memref<1x128xf32, #tpu.memory_space<vmem>>, %arg7: memref<3x384x128xbf16, #tpu.memory_space<vmem>>, %arg8: memref<1x128xf32, #tpu.memory_space<vmem>>, %arg9: memref<1x16x16x128xbf16, #tpu.memory_space<vmem>>) attributes {dimension_semantics = [#tpu.dimension_semantics<parallel>, #tpu.dimension_semantics<parallel>], iteration_bounds = array<i64: 2, 1>, scalar_prefetch = 0 : i64, scratch_operands = 0 : i64, tpu.core_type = #tpu.core_type<tc>, window_params = [{transform_indices = @transform_0, window_bounds = array<i64: 1, 2, 18, 128>}, {transform_indices = @transform_1, window_bounds = array<i64: 1, 16, 18, 128>}, {transform_indices = @transform_2, window_bounds = array<i64: 1, 2, 18, 128>}, {pipeline_mode = #tpu.pipeline_mode<synchronous>, transform_indices = @transform_3, window_bounds = array<i64: 3, 384, 128>}, {pipeline_mode = #tpu.pipeline_mode<synchronous>, transform_indices = @transform_4, window_bounds = array<i64: 1, 128>}, {pipeline_mode = #tpu.pipeline_mode<synchronous>, transform_indices = @transform_5, window_bounds = array<i64: 3, 384, 128>}, {pipeline_mode = #tpu.pipeline_mode<synchronous>, transform_indices = @transform_6, window_bounds = array<i64: 1, 128>}, {transform_indices = @transform_7, window_bounds = array<i64: 1, 16, 16, 128>}]} {
    %c0 = arith.constant 0 : index
    %c0_0 = arith.constant 0 : index
    %c0_1 = arith.constant 0 : index
    %c0_2 = arith.constant 0 : index
    %0 = vector.load %arg3[%c0, %c0_0, %c0_1, %c0_2] : memref<1x16x18x128xbf16, #tpu.memory_space<vmem>>, vector<1x16x18x128xbf16>
    %1 = vector.shape_cast %0 : vector<1x16x18x128xbf16> to vector<16x18x128xbf16>
    %c0_3 = arith.constant 0 : index
    %c0_4 = arith.constant 0 : index
    %c0_5 = arith.constant 0 : index
    %c0_6 = arith.constant 0 : index
    %2 = vector.load %arg2[%c0_3, %c0_4, %c0_5, %c0_6] : memref<1x2x18x128xbf16, #tpu.memory_space<vmem>>, vector<1x2x18x128xbf16>
    %3 = vector.shape_cast %2 : vector<1x2x18x128xbf16> to vector<2x18x128xbf16>
    %c0_7 = arith.constant 0 : index
    %c0_8 = arith.constant 0 : index
    %c0_9 = arith.constant 0 : index
    %c0_10 = arith.constant 0 : index
    %4 = vector.load %arg4[%c0_7, %c0_8, %c0_9, %c0_10] : memref<1x2x18x128xbf16, #tpu.memory_space<vmem>>, vector<1x2x18x128xbf16>
    %5 = vector.shape_cast %4 : vector<1x2x18x128xbf16> to vector<2x18x128xbf16>
    %c0_i32 = arith.constant 0 : i32
    %6 = arith.cmpi eq, %arg1, %c0_i32 : i32
    %cst = arith.constant 0.000000e+00 : bf16
    %7 = vector.broadcast %cst : bf16 to vector<2x18x128xbf16>
    %8 = arith.select %6, %7, %3 : vector<2x18x128xbf16>
    %9 = tpu.concatenate %8, %1, %5 in 0 : vector<2x18x128xbf16>, vector<16x18x128xbf16>, vector<2x18x128xbf16> -> vector<20x18x128xbf16>
    %10 = vector.extract_strided_slice %9 {offsets = [0, 0, 0], sizes = [20, 16, 128], strides = [1, 1, 1]} : vector<20x18x128xbf16> to vector<20x16x128xbf16>
    %11 = vector.extract_strided_slice %9 {offsets = [0, 1, 0], sizes = [20, 16, 128], strides = [1, 1, 1]} : vector<20x18x128xbf16> to vector<20x16x128xbf16>
    %12 = vector.extract_strided_slice %9 {offsets = [0, 2, 0], sizes = [20, 16, 128], strides = [1, 1, 1]} : vector<20x18x128xbf16> to vector<20x16x128xbf16>
    %13 = tpu.concatenate %10, %11, %12 in 2 : vector<20x16x128xbf16>, vector<20x16x128xbf16>, vector<20x16x128xbf16> -> vector<20x16x384xbf16>
    %cst_11 = arith.constant 0.000000e+00 : f32
    %14 = vector.broadcast %cst_11 : f32 to vector<288x128xf32>
    %15 = vector.extract_strided_slice %13 {offsets = [0, 0, 0], sizes = [18, 16, 384], strides = [1, 1, 1]} : vector<20x16x384xbf16> to vector<18x16x384xbf16>
    %16 = vector.shape_cast %15 : vector<18x16x384xbf16> to vector<288x384xbf16>
    %c0_12 = arith.constant 0 : index
    %c0_13 = arith.constant 0 : index
    %c0_14 = arith.constant 0 : index
    %17 = vector.load %arg5[%c0_12, %c0_13, %c0_14] : memref<3x384x128xbf16, #tpu.memory_space<vmem>>, vector<1x384x128xbf16>
    %18 = vector.shape_cast %17 : vector<1x384x128xbf16> to vector<384x128xbf16>
    %cst_15 = arith.constant dense<0.000000e+00> : vector<288x128xf32>
    %19 = tpu.matmul %16, %18, %cst_15 {dimension_numbers = #tpu.dot_dimension_numbers<[1], [0], [0], [1], [0, 0, 1, 1], [], []>} : vector<288x384xbf16>, vector<384x128xbf16>, vector<288x128xf32> -> vector<288x128xf32>
    %20 = arith.addf %14, %19 : vector<288x128xf32>
    %21 = vector.extract_strided_slice %13 {offsets = [1, 0, 0], sizes = [18, 16, 384], strides = [1, 1, 1]} : vector<20x16x384xbf16> to vector<18x16x384xbf16>
    %22 = vector.shape_cast %21 : vector<18x16x384xbf16> to vector<288x384xbf16>
    %c1 = arith.constant 1 : index
    %c0_16 = arith.constant 0 : index
    %c0_17 = arith.constant 0 : index
    %23 = vector.load %arg5[%c1, %c0_16, %c0_17] : memref<3x384x128xbf16, #tpu.memory_space<vmem>>, vector<1x384x128xbf16>
    %24 = vector.shape_cast %23 : vector<1x384x128xbf16> to vector<384x128xbf16>
    %cst_18 = arith.constant dense<0.000000e+00> : vector<288x128xf32>
    %25 = tpu.matmul %22, %24, %cst_18 {dimension_numbers = #tpu.dot_dimension_numbers<[1], [0], [0], [1], [0, 0, 1, 1], [], []>} : vector<288x384xbf16>, vector<384x128xbf16>, vector<288x128xf32> -> vector<288x128xf32>
    %26 = arith.addf %20, %25 : vector<288x128xf32>
    %27 = vector.extract_strided_slice %13 {offsets = [2, 0, 0], sizes = [18, 16, 384], strides = [1, 1, 1]} : vector<20x16x384xbf16> to vector<18x16x384xbf16>
    %28 = vector.shape_cast %27 : vector<18x16x384xbf16> to vector<288x384xbf16>
    %c2 = arith.constant 2 : index
    %c0_19 = arith.constant 0 : index
    %c0_20 = arith.constant 0 : index
    %29 = vector.load %arg5[%c2, %c0_19, %c0_20] : memref<3x384x128xbf16, #tpu.memory_space<vmem>>, vector<1x384x128xbf16>
    %30 = vector.shape_cast %29 : vector<1x384x128xbf16> to vector<384x128xbf16>
    %cst_21 = arith.constant dense<0.000000e+00> : vector<288x128xf32>
    %31 = tpu.matmul %28, %30, %cst_21 {dimension_numbers = #tpu.dot_dimension_numbers<[1], [0], [0], [1], [0, 0, 1, 1], [], []>} : vector<288x384xbf16>, vector<384x128xbf16>, vector<288x128xf32> -> vector<288x128xf32>
    %32 = arith.addf %26, %31 : vector<288x128xf32>
    %c0_22 = arith.constant 0 : index
    %c0_23 = arith.constant 0 : index
    %33 = vector.load %arg6[%c0_22, %c0_23] : memref<1x128xf32, #tpu.memory_space<vmem>>, vector<1x128xf32>
    %34 = vector.shape_cast %33 : vector<1x128xf32> to vector<128xf32>
    %35 = vector.shape_cast %34 : vector<128xf32> to vector<1x128xf32>
    %36 = vector.broadcast %35 : vector<1x128xf32> to vector<288x128xf32>
    %37 = arith.addf %32, %36 : vector<288x128xf32>
    %cst_24 = arith.constant 0.000000e+00 : f32
    %38 = vector.broadcast %cst_24 : f32 to vector<288x128xf32>
    %39 = arith.maximumf %37, %38 : vector<288x128xf32>
    %40 = vector.shape_cast %39 : vector<288x128xf32> to vector<18x16x128xf32>
    %41 = tpu.iota {dimensions = array<i32: 0>} : vector<18x16x1xi32>
    %c16_i32 = arith.constant 16 : i32
    %42 = arith.muli %arg1, %c16_i32 : i32
    %c1_i32 = arith.constant 1 : i32
    %43 = arith.subi %42, %c1_i32 : i32
    %44 = vector.broadcast %43 : i32 to vector<18x16x1xi32>
    %45 = arith.addi %44, %41 : vector<18x16x1xi32>
    %c0_i32_25 = arith.constant 0 : i32
    %46 = vector.broadcast %c0_i32_25 : i32 to vector<18x16x1xi32>
    %47 = arith.cmpi sge, %45, %46 : vector<18x16x1xi32>
    %c16_i32_26 = arith.constant 16 : i32
    %48 = vector.broadcast %c16_i32_26 : i32 to vector<18x16x1xi32>
    %49 = arith.cmpi slt, %45, %48 : vector<18x16x1xi32>
    %50 = arith.andi %47, %49 : vector<18x16x1xi1>
    %cst_27 = arith.constant 0.000000e+00 : f32
    %51 = vector.shape_cast %50 : vector<18x16x1xi1> to vector<18x16x1xi1>
    %52 = vector.broadcast %51 : vector<18x16x1xi1> to vector<18x16x128xi1>
    %53 = vector.broadcast %cst_27 : f32 to vector<18x16x128xf32>
    %54 = arith.select %52, %40, %53 : vector<18x16x128xi1>, vector<18x16x128xf32>
    %55 = arith.truncf %54 : vector<18x16x128xf32> to vector<18x16x128xbf16>
    %cst_28 = arith.constant 0.000000e+00 : bf16
    %56 = vector.broadcast %cst_28 : bf16 to vector<18x1x128xbf16>
    %57 = tpu.concatenate %56, %55, %56 in 1 : vector<18x1x128xbf16>, vector<18x16x128xbf16>, vector<18x1x128xbf16> -> vector<18x18x128xbf16>
    %58 = vector.extract_strided_slice %57 {offsets = [0, 0, 0], sizes = [18, 16, 128], strides = [1, 1, 1]} : vector<18x18x128xbf16> to vector<18x16x128xbf16>
    %59 = vector.extract_strided_slice %57 {offsets = [0, 1, 0], sizes = [18, 16, 128], strides = [1, 1, 1]} : vector<18x18x128xbf16> to vector<18x16x128xbf16>
    %60 = vector.extract_strided_slice %57 {offsets = [0, 2, 0], sizes = [18, 16, 128], strides = [1, 1, 1]} : vector<18x18x128xbf16> to vector<18x16x128xbf16>
    %61 = tpu.concatenate %58, %59, %60 in 2 : vector<18x16x128xbf16>, vector<18x16x128xbf16>, vector<18x16x128xbf16> -> vector<18x16x384xbf16>
    %cst_29 = arith.constant 0.000000e+00 : f32
    %62 = vector.broadcast %cst_29 : f32 to vector<256x128xf32>
    %63 = vector.extract_strided_slice %61 {offsets = [0, 0, 0], sizes = [16, 16, 384], strides = [1, 1, 1]} : vector<18x16x384xbf16> to vector<16x16x384xbf16>
    %64 = vector.shape_cast %63 : vector<16x16x384xbf16> to vector<256x384xbf16>
    %c0_30 = arith.constant 0 : index
    %c0_31 = arith.constant 0 : index
    %c0_32 = arith.constant 0 : index
    %65 = vector.load %arg7[%c0_30, %c0_31, %c0_32] : memref<3x384x128xbf16, #tpu.memory_space<vmem>>, vector<1x384x128xbf16>
    %66 = vector.shape_cast %65 : vector<1x384x128xbf16> to vector<384x128xbf16>
    %cst_33 = arith.constant dense<0.000000e+00> : vector<256x128xf32>
    %67 = tpu.matmul %64, %66, %cst_33 {dimension_numbers = #tpu.dot_dimension_numbers<[1], [0], [0], [1], [0, 0, 1, 1], [], []>} : vector<256x384xbf16>, vector<384x128xbf16>, vector<256x128xf32> -> vector<256x128xf32>
    %68 = arith.addf %62, %67 : vector<256x128xf32>
    %69 = vector.extract_strided_slice %61 {offsets = [1, 0, 0], sizes = [16, 16, 384], strides = [1, 1, 1]} : vector<18x16x384xbf16> to vector<16x16x384xbf16>
    %70 = vector.shape_cast %69 : vector<16x16x384xbf16> to vector<256x384xbf16>
    %c1_34 = arith.constant 1 : index
    %c0_35 = arith.constant 0 : index
    %c0_36 = arith.constant 0 : index
    %71 = vector.load %arg7[%c1_34, %c0_35, %c0_36] : memref<3x384x128xbf16, #tpu.memory_space<vmem>>, vector<1x384x128xbf16>
    %72 = vector.shape_cast %71 : vector<1x384x128xbf16> to vector<384x128xbf16>
    %cst_37 = arith.constant dense<0.000000e+00> : vector<256x128xf32>
    %73 = tpu.matmul %70, %72, %cst_37 {dimension_numbers = #tpu.dot_dimension_numbers<[1], [0], [0], [1], [0, 0, 1, 1], [], []>} : vector<256x384xbf16>, vector<384x128xbf16>, vector<256x128xf32> -> vector<256x128xf32>
    %74 = arith.addf %68, %73 : vector<256x128xf32>
    %75 = vector.extract_strided_slice %61 {offsets = [2, 0, 0], sizes = [16, 16, 384], strides = [1, 1, 1]} : vector<18x16x384xbf16> to vector<16x16x384xbf16>
    %76 = vector.shape_cast %75 : vector<16x16x384xbf16> to vector<256x384xbf16>
    %c2_38 = arith.constant 2 : index
    %c0_39 = arith.constant 0 : index
    %c0_40 = arith.constant 0 : index
    %77 = vector.load %arg7[%c2_38, %c0_39, %c0_40] : memref<3x384x128xbf16, #tpu.memory_space<vmem>>, vector<1x384x128xbf16>
    %78 = vector.shape_cast %77 : vector<1x384x128xbf16> to vector<384x128xbf16>
    %cst_41 = arith.constant dense<0.000000e+00> : vector<256x128xf32>
    %79 = tpu.matmul %76, %78, %cst_41 {dimension_numbers = #tpu.dot_dimension_numbers<[1], [0], [0], [1], [0, 0, 1, 1], [], []>} : vector<256x384xbf16>, vector<384x128xbf16>, vector<256x128xf32> -> vector<256x128xf32>
    %80 = arith.addf %74, %79 : vector<256x128xf32>
    %c0_42 = arith.constant 0 : index
    %c0_43 = arith.constant 0 : index
    %81 = vector.load %arg8[%c0_42, %c0_43] : memref<1x128xf32, #tpu.memory_space<vmem>>, vector<1x128xf32>
    %82 = vector.shape_cast %81 : vector<1x128xf32> to vector<128xf32>
    %83 = vector.shape_cast %82 : vector<128xf32> to vector<1x128xf32>
    %84 = vector.broadcast %83 : vector<1x128xf32> to vector<256x128xf32>
    %85 = arith.addf %80, %84 : vector<256x128xf32>
    %86 = vector.shape_cast %85 : vector<256x128xf32> to vector<16x16x128xf32>
    %87 = vector.extract_strided_slice %1 {offsets = [0, 1, 0], sizes = [16, 16, 128], strides = [1, 1, 1]} : vector<16x18x128xbf16> to vector<16x16x128xbf16>
    %88 = arith.extf %87 : vector<16x16x128xbf16> to vector<16x16x128xf32>
    %cst_44 = arith.constant 1.000000e+00 : f32
    %89 = vector.broadcast %cst_44 : f32 to vector<16x16x128xf32>
    %90 = arith.mulf %86, %89 : vector<16x16x128xf32>
    %91 = arith.addf %90, %88 : vector<16x16x128xf32>
    %92 = arith.truncf %91 : vector<16x16x128xf32> to vector<16x16x128xbf16>
    %c0_45 = arith.constant 0 : index
    %c0_46 = arith.constant 0 : index
    %c0_47 = arith.constant 0 : index
    %c0_48 = arith.constant 0 : index
    %93 = vector.load %arg9[%c0_45, %c0_46, %c0_47, %c0_48] : memref<1x16x16x128xbf16, #tpu.memory_space<vmem>>, vector<1x16x16x128xbf16>
    %94 = vector.shape_cast %93 : vector<1x16x16x128xbf16> to vector<16x16x128xbf16>
    %95 = vector.shape_cast %92 : vector<16x16x128xbf16> to vector<1x16x16x128xbf16>
    tpu.vector_store %arg9[%c0_45, %c0_46, %c0_47, %c0_48], %95 {strides = array<i32>} : memref<1x16x16x128xbf16, #tpu.memory_space<vmem>>, vector<1x16x16x128xbf16>,
    return
  }
  func.func @transform_0(%arg0: i32, %arg1: i32) -> (i32, i32, i32, i32) {
    %c8_i32 = arith.constant 8 : i32
    %0 = arith.muli %arg1, %c8_i32 : i32
    %c1_i32 = arith.constant 1 : i32
    %1 = arith.subi %0, %c1_i32 : i32
    %c0_i32 = arith.constant 0 : i32
    %2 = arith.maxsi %1, %c0_i32 : i32
    %c0_i32_0 = arith.constant 0 : i32
    %c0_i32_1 = arith.constant 0 : i32
    %c0_i32_2 = arith.constant 0 : i32
    return %arg0, %2, %c0_i32_0, %c0_i32_1 : i32, i32, i32, i32
  }
  func.func @transform_1(%arg0: i32, %arg1: i32) -> (i32, i32, i32, i32) {
    %c0_i32 = arith.constant 0 : i32
    %c0_i32_0 = arith.constant 0 : i32
    %c0_i32_1 = arith.constant 0 : i32
    return %arg0, %arg1, %c0_i32, %c0_i32_0 : i32, i32, i32, i32
  }
  func.func @transform_2(%arg0: i32, %arg1: i32) -> (i32, i32, i32, i32) {
    %c1_i32 = arith.constant 1 : i32
    %0 = arith.addi %arg1, %c1_i32 : i32
    %c8_i32 = arith.constant 8 : i32
    %1 = arith.muli %0, %c8_i32 : i32
    %c0_i32 = arith.constant 0 : i32
    %c0_i32_0 = arith.constant 0 : i32
    %c0_i32_1 = arith.constant 0 : i32
    return %arg0, %1, %c0_i32, %c0_i32_0 : i32, i32, i32, i32
  }
  func.func @transform_3(%arg0: i32, %arg1: i32) -> (i32, i32, i32) {
    %c0_i32 = arith.constant 0 : i32
    %c0_i32_0 = arith.constant 0 : i32
    %c0_i32_1 = arith.constant 0 : i32
    %c0_i32_2 = arith.constant 0 : i32
    return %c0_i32, %c0_i32_0, %c0_i32_1 : i32, i32, i32
  }
  func.func @transform_4(%arg0: i32, %arg1: i32) -> (i32, i32) {
    %c0_i32 = arith.constant 0 : i32
    %c0_i32_0 = arith.constant 0 : i32
    %c0_i32_1 = arith.constant 0 : i32
    return %c0_i32, %c0_i32_0 : i32, i32
  }
  func.func @transform_5(%arg0: i32, %arg1: i32) -> (i32, i32, i32) {
    %c0_i32 = arith.constant 0 : i32
    %c0_i32_0 = arith.constant 0 : i32
    %c0_i32_1 = arith.constant 0 : i32
    %c0_i32_2 = arith.constant 0 : i32
    return %c0_i32, %c0_i32_0, %c0_i32_1 : i32, i32, i32
  }
  func.func @transform_6(%arg0: i32, %arg1: i32) -> (i32, i32) {
    %c0_i32 = arith.constant 0 : i32
    %c0_i32_0 = arith.constant 0 : i32
    %c0_i32_1 = arith.constant 0 : i32
    return %c0_i32, %c0_i32_0 : i32, i32
  }
  func.func @transform_7(%arg0: i32, %arg1: i32) -> (i32, i32, i32, i32) {
    %c0_i32 = arith.constant 0 : i32
    %c0_i32_0 = arith.constant 0 : i32
    %c0_i32_1 = arith.constant 0 : i32
    return %arg0, %arg1, %c0_i32, %c0_i32_0 : i32, i32, i32, i32
  }
}

</mosaic_0001>

<bundles_post_ra>
// kernel: tpu_custom_call.1
= control target key start
LH: loop header
LB: loop body
LE: loop exit
PB: predicated region body
PF: predicated region fallthrough
CT: control target
= control target key end

     0   :  { %12 = vsyncpa [#allocation3], 0  ;;  %s9116_s0 = inlined_call_operand.vmem [shape: bf16[2,18,18,128], index: 0, kind: input, shape index: {}]   ;;  %s9117_s1 = inlined_call_operand.vmem [shape: bf16[2,18,18,128], index: 1, kind: input, shape index: {}]   ;;  %s9118_s2 = inlined_call_operand.vmem [shape: bf16[2,18,18,128], index: 2, kind: input, shape index: {}]   ;;  %s9119_s3 = inlined_call_operand.vmem [shape: bf16[3,384,128], index: 3, kind: input, shape index: {}]   ;;  %s9120_s4 = inlined_call_operand.vmem [shape: f32[1,128], index: 4, kind: input, shape index: {}]   ;;  %s9121_s5 = inlined_call_operand.vmem [shape: bf16[3,384,128], index: 5, kind: input, shape index: {}]   ;;  %s9122_s6 = inlined_call_operand.vmem [shape: f32[1,128], index: 6, kind: input, shape index: {}]   ;;  %s9123_s7 = inlined_call_operand.hbm [shape: bf16[2,16,16,128], index: 7, kind: output, shape index: {}]  }
   0x1   :  { %14 = vsyncpa [#allocation3 + $0x1], 0  ;;  %s6692_s23 = smov 0   ;;  %s6694_s24 = smov 0  }
   0x2   :  { %s6696_s25 = smov 0   ;;  %s6698_s26 = smov 0  }
   0x3   :  { %s6700_s27 = smov 0   ;;  %s6702_s28 = smov 0  }
   0x4 LB: > { %s5340_s29 = sadd.s32 4294967295, %s6646_s28   ;;  %s5341_s30 = sadd.s32 4294967294, %s6646_s28   ;;  %s6646_s28 = sphi %s6702_s28, %s20_s28   ;;  %s6642_s27 = sphi %s6700_s27, %s9480_s27   ;;  %s6638_s26 = sphi %s6698_s26, %s9479_s26   ;;  %s6634_s25 = sphi %s6696_s25, %s9478_s25   ;;  %s6630_s24 = sphi %s6694_s24, %s9477_s24   ;;  %s6626_s23 = sphi %s6692_s23, %s9476_s23  }
   0x5   : > { %s32_s8 = sadd.s32 1, %s6642_s27  ;;  %s221_s9 = sadd.s32 1, %s6634_s25 }
   0x6   : > { %p34_p0 = scmp.ge.s32.totalorder %s32_s8, 2  ;;  %p231_p1 = scmp.ne.s32.totalorder %s6634_s25, %s6630_s24 }
   0x7   : > { %p232_p2 = scmp.eq.s32.totalorder %s5340_s29, 1  ;;  %p237_p3 = scmp.ne.s32.totalorder %s6630_s24, %s6626_s23 }
   0x8   : > { %s9482_s8 = smov (%p34_p0, %s32_s8), 0  ;;  %p238_p5 = scmp.eq.s32.totalorder %s5341_s30, 1 }
   0x9   : > { %p6732_p4 = por %p232_p2, %p231_p1  ;;  %s216_s11 = ssub.s32 %s6642_s27, %s9482_s8 }
   0xa   : > { %p5344_p6 = scmp.ge.s32.totalorder %s6646_s28, 1  ;;  %p219_p7 = scmp.eq.s32.totalorder %s216_s11, 0 }
   0xb   : > { %p6739_p8 = por %p238_p5, %p237_p3  ;;  %p332_p9 = scmp.lt.s32.totalorder %s6646_s28, 3 }
   0xc   : > { %s6745_s13 = scalar_select %p219_p7, %s6634_s25, %s221_s9  }
   0xd   : > { %p333_p10 = pnand %p5344_p6, %p332_p9 }
   0xf   : > { %336 = sbr.rel (%p333_p10) target bundleno = 1824 (0x720), region = 48 }
  0x14   : > { %v6245_v0 = vld [vmem:[%s9119_s3 + $0xf8] sm:$0xff]  ;;  %p425_p11 = scmp.lt.s32.totalorder %s6638_s26, 1  ;;  %v6244_v2 = vld [vmem:[%s9119_s3 + $0xf0] sm:$0xff]  ;;  %v6243_v4 = vld [vmem:[%s9119_s3 + $0xe8] sm:$0xff]  ;;  %v6648_v9 = vmov 0   ;;  %vm968_vm1 = vcmask 1046528  }
  0x15   : > { %v6253_v1 = vld [vmem:[%s9119_s3 + $0x138] sm:$0xff]  ;;  %1290 = vmatpush.bf16.msra.mxu0 %v6245_v0  ;;  %v6252_v3 = vld [vmem:[%s9119_s3 + $0x130] sm:$0xff]  ;;  %v6251_v6 = vld [vmem:[%s9119_s3 + $0x128] sm:$0xff]  ;;  %v567_v10 = vunpack.c.l.b16 %v6648_v9  ;;  %vm707_vm0 = vsmask.f32 7424  ;;  %vm3064_vm2 = vcmask 1040384  }
  0x16   : > { %1389 = vmatpush.bf16.msra.mxu1 %v6253_v1  ;;  %6454 = vmatpush.bf16.msra.mxu3 %v6253_v1  ;;  %s6761_s22 = scalar_select %p425_p11, %s6638_s26, 1  ;;  %v6261_v5 = vld [vmem:[%s9119_s3 + $0x178] sm:$0xff]  ;;  %v6242_v7 = vld [vmem:[%s9119_s3 + $0xe0] sm:$0xff]  ;;  %v6240_v17 = vld [vmem:[%s9119_s3 + $0xd0] sm:$0xff]  ;;  %vm3065_vm3 = vsmask.f32 256 }
  0x17   : > { %6462 = vmatpush.bf16.msra.mxu2 %v6261_v5  ;;  %v6250_v8 = vld [vmem:[%s9119_s3 + $0x120] sm:$0xff]  ;;  %v6241_v12 = vld [vmem:[%s9119_s3 + $0xd8] sm:$0xff]  ;;  %v6793_v14 = vpack.c.b16 %v567_v10, %v567_v10  ;;  %v6248_v18 = vld [vmem:[%s9119_s3 + $0x110] sm:$0xff]  ;;  %s397_s21 = sand.u32 1, %s6630_s24   ;;  %s6588_s20 = scalar_lea.hbm %s9123_s7, 256 }
  0x18   : > { %s6470_s30 = smul.u32 216, %s6761_s22  ;;  %v6249_v13 = vld [vmem:[%s9119_s3 + $0x118] sm:$0xff]  ;;  %v6239_v22 = vld [vmem:[%s9119_s3 + $0xc8] sm:$0xff]  ;;  %v6238_v29 = vld [vmem:[%s9119_s3 + $0xc0] sm:$0xff]  ;;  %s5345_s0 = sshll.u32 %s397_s21, 7 }
  0x19   : > { %1291 = vmatpush.bf16.msra.mxu0 %v6244_v2  ;;  %v711_v19 = vshll.u32 %v6793_v14, 16  ;;  %v6247_v23 = vld [vmem:[%s9119_s3 + $0x108] sm:$0xff]  ;;  %v709_v24 = vshrl.u32 %v6793_v14, 16  ;;  %v6246_v30 = vld [vmem:[%s9119_s3 + $0x100] sm:$0xff]  ;;  %v6260_v44 = vld [vmem:[%s9119_s3 + $0x170] sm:$0xff]  ;;  %s8873_s29 = scalar_lea.vmem [#allocation2], %s5345_s0 }
  0x1a   : > { %1390 = vmatpush.bf16.msra.mxu1 %v6252_v3  ;;  %6455 = vmatpush.bf16.msra.mxu3 %v6252_v3  ;;  %s6778_s18 = scalar_lea.vmem %s9117_s1, %s6470_s30  ;;  %s6195_s19 = sadd.s32 192, %s6470_s30  ;;  %vm7982_vm4 = vmand %vm3064_vm2, %vm3065_vm3 }
  0x1b   : > { %v489_v11 = vld [vmem:[%s6778_s18 + $0x80] sm:$0x1]  ;;  %v6796_v15 = vld [vmem:[%s6778_s18 + $0x78] sm:$0xff]  ;;  %v713_v25 = vrot.slane %v711_v19, 1  ;;  %v459_v34 = vld [vmem:[%s6778_s18 + $0x8] sm:$0x1]  ;;  %6463 = vmatpush.bf16.msra.mxu2 %v6260_v44  ;;  %s7013_s9 = scalar_lea.vmem %s9118_s2, %s6195_s19 }
  0x1c   : > { %v679_v16 = vunpack.c.l.b16 %v489_v11  ;;  %v855_v21 = vshll.u32 %v6796_v15, 16  ;;  %v853_v26 = vshrl.u32 %v6796_v15, 16  ;;  %v492_v35 = vld [vmem:[%s6778_s18 + $0x8c] sm:$0x1]  ;;  %v6829_v37 = vld [vmem:[%s6778_s18] sm:$0xff]  ;;  %v669_v38 = vunpack.c.l.b16 %v459_v34  ;;  %v6865_v63 = vld [vmem:[%s6778_s18 + $0x90] sm:$0xff] }
  0x1d   : > { %1292 = vmatpush.bf16.msra.mxu0 %v6243_v4  ;;  %v714_v31 = vor.u32 %v713_v25, %v709_v24  ;;  %v6835_v40 = vld [vmem:[%s6778_s18 + $0x84] sm:$0xff]  ;;  %v680_v41 = vunpack.c.l.b16 %v492_v35  ;;  %v735_v43 = vshll.u32 %v6829_v37, 16  ;;  %v733_v47 = vshrl.u32 %v6829_v37, 16  ;;  %v462_v57 = vld [vmem:[%s6778_s18 + $0x14] sm:$0x1]  ;;  %v6859_v60 = vld [vmem:[%s6778_s18 + $0xc] sm:$0xff] }
  0x1e   : > { %1391 = vmatpush.bf16.msra.mxu1 %v6251_v6  ;;  %6456 = vmatpush.bf16.msra.mxu3 %v6251_v6  ;;  %v6805_v20 = vpack.c.b16 %v679_v16, %v679_v16  ;;  %v857_v27 = vrot.slane %v855_v21, 1  ;;  %v6840_v42 = vpack.c.b16 %v669_v38, %v669_v38  ;;  %v867_v46 = vshll.u32 %v6835_v40, 16  ;;  %v495_v58 = vld [vmem:[%s6778_s18 + $0x98] sm:$0x1]  ;;  %v6892_v24 = vld [vmem:[%s6778_s18 + $0x9c] sm:$0xff]  ;;  %s6358_s22 = sshll.u32 %s6638_s26, 7 }
  0x1f   : > { %v6826_v36 = vsel %vm707_vm0, %v714_v31, %v713_v25  ;;  %v6846_v45 = vpack.c.b16 %v680_v41, %v680_v41  ;;  %v737_v48 = vrot.slane %v735_v43, 1  ;;  %v865_v50 = vshrl.u32 %v6835_v40, 16  ;;  %v6886_v21 = vld [vmem:[%s6778_s18 + $0x18] sm:$0xff]  ;;  %s5212_s11 = scalar_lea.hbm %s9123_s7, %s6358_s22  ;;  %s5213_s26 = sshll.u32 %s8873_s29, 4  ;;  %s5214_s26 = int_to_ptr.vmem [resolvable:$true] %s5213_s26 }
  0x20   : > { %v860_v28 = vshll.u32 %v6805_v20, 16  ;;  %v858_v32 = vor.u32 %v857_v27, %v853_v26  ;;  %v740_v49 = vshll.u32 %v6840_v42, 16  ;;  %v869_v51 = vrot.slane %v867_v46, 1  ;;  %s5215_s14 = sshll.u32 %s5212_s11, 4  ;;  %s5216_s14 = int_to_ptr.hbm [resolvable:$true] %s5215_s14 }
  0x21   : > { %1293 = vmatpush.bf16.msra.mxu0 %v6242_v7  ;;  %v872_v52 = vshll.u32 %v6846_v45, 16  ;;  %v738_v53 = vor.u32 %v737_v48, %v733_v47  ;;  %v670_v61 = vunpack.c.l.b16 %v462_v57  ;;  %v681_v0 = vunpack.c.l.b16 %v495_v58  ;;  %v468_v47 = vld [vmem:[%s6778_s18 + $0x2c] sm:$0x1]  ;;  %v501_v48 = vld [vmem:[%s6778_s18 + $0xb0] sm:$0x1]  ;;  %v6258_v58 = vld [vmem:[%s9119_s3 + $0x160] sm:$0xff] }
  0x22   : > { %1392 = vmatpush.bf16.msra.mxu1 %v6250_v8  ;;  %6457 = vmatpush.bf16.msra.mxu3 %v6250_v8  ;;  %v862_v33 = vrot.slane %v860_v28, 1  ;;  %v742_v54 = vrot.slane %v740_v49, 1  ;;  %v870_v55 = vor.u32 %v869_v51, %v865_v50  ;;  %v747_v2 = vshll.u32 %v6859_v60, 16  ;;  %v6259_v28 = vld [vmem:[%s9119_s3 + $0x168] sm:$0xff]  ;;  %s6582_s15 = sshra.s32 %s5216_s14, 4  ;;  %s6583_s15 = int_to_ptr.hbm [resolvable:$true] %s6582_s15 }
  0x23   : > { %v874_v56 = vrot.slane %v872_v52, 1  ;;  %v6870_v1 = vpack.c.b16 %v670_v61, %v670_v61  ;;  %v6873_v3 = vpack.c.b16 %v681_v0, %v681_v0  ;;  %v879_v4 = vshll.u32 %v6865_v63, 16  ;;  %6464 = vmatpush.bf16.msra.mxu2 %v6259_v28  ;;  %v6916_v50 = vld [vmem:[%s6778_s18 + $0x24] sm:$0xff]  ;;  %s6584_s16 = scalar_lea.hbm %s6583_s15, 128  ;;  %p6589_p1 = scmp.lt.s32.totalorder %s6583_s15, %s9123_s7 }
  0x24   : > { %v6832_v39 = vsel %vm707_vm0, %v858_v32, %v862_v33  ;;  %v6856_v59 = vsel %vm707_vm0, %v738_v53, %v742_v54  ;;  %v749_v6 = vrot.slane %v747_v2, 1  ;;  %v877_v8 = vshrl.u32 %v6865_v63, 16  ;;  %v6922_v53 = vld [vmem:[%s6778_s18 + $0xa8] sm:$0xff]  ;;  %v6220_v2 = vld [vmem:[%s9119_s3 + $0x30] sm:$0xff]  ;;  %p6585_p12 = scmp.ne.s32.totalorder %s6583_s15, %s6584_s16  ;;  %p6590_p2 = scmp.lt.s32.totalorder %s6588_s20, %s6584_s16 }
  0x25   : > { %1294 = vmatpush.bf16.msra.mxu0 %v6241_v12  ;;  %9208 = vst [vmem:[#allocation5_spill] sm:$0xff] %v6832_v39  ;;  %v6862_v62 = vsel %vm707_vm0, %v870_v55, %v874_v56  ;;  %v752_v7 = vshll.u32 %v6870_v1, 16  ;;  %v881_v9 = vrot.slane %v879_v4, 1  ;;  %v884_v10 = vshll.u32 %v6873_v3, 16  ;;  %v6221_v55 = vld [vmem:[%s9119_s3 + $0x38] sm:$0xff] }
  0x26   : > { %1393 = vmatpush.bf16.msra.mxu1 %v6249_v13  ;;  %6458 = vmatpush.bf16.msra.mxu3 %v6249_v13  ;;  %9209 = vst [vmem:[#allocation6_spill] sm:$0xff] %v6862_v62  ;;  %v759_v27 = vshll.u32 %v6886_v21, 16  ;;  %v757_v31 = vshrl.u32 %v6886_v21, 16  ;;  %v889_v34 = vshrl.u32 %v6892_v24, 16  ;;  %v672_v51 = vunpack.c.l.b16 %v468_v47  ;;  %v6257_v4 = vld [vmem:[%s9119_s3 + $0x158] sm:$0xff]  ;;  %v6216_v47 = vld [vmem:[%s9119_s3 + $0x10] sm:$0xff]  ;;  %p6586_p13 = pnand %p6585_p12, %p6732_p4  ;;  %p6591_p3 = por %p6590_p2, %p6589_p1 }
  0x27   : > { %v754_v12 = vrot.slane %v752_v7, 1  ;;  %v882_v13 = vor.u32 %v881_v9, %v877_v8  ;;  %v886_v16 = vrot.slane %v884_v10, 1  ;;  %v683_v54 = vunpack.c.l.b16 %v501_v48  ;;  %6465 = vmatpush.bf16.msra.mxu2 %v6258_v58  ;;  %v6991_v48 = vld [vmem:[%s6778_s18 + $0x48] sm:$0xff] }
  0x28   : > { %v761_v32 = vrot.slane %v759_v27, 1  ;;  %v6930_v56 = vpack.c.b16 %v672_v51, %v672_v51  ;;  %v771_v57 = vshll.u32 %v6916_v50, 16  ;;  %v903_v0 = vshll.u32 %v6922_v53, 16  ;;  %v477_v51 = vld [vmem:[%s6778_s18 + $0x50] sm:$0x1]  ;;  %p6587_p0 = pneg %p6586_p13 }
  0x29   : > { %1295 = vmatpush.bf16.msra.mxu0 %v6240_v17  ;;  %v465_v17 = vld [vmem:[%s6778_s18 + $0x20] sm:$0x1]  ;;  %v6936_v61 = vpack.c.b16 %v683_v54, %v683_v54  ;;  %v901_v8 = vshrl.u32 %v6922_v53, 16  ;;  %v675_v54 = vunpack.c.l.b16 %v477_v51 }
  0x2a   : > { %1394 = vmatpush.bf16.msra.mxu1 %v6248_v18  ;;  %6459 = vmatpush.bf16.msra.mxu3 %v6248_v18  ;;  %v498_v18 = vld [vmem:[%s6778_s18 + $0xa4] sm:$0x1]  ;;  %v762_v41 = vor.u32 %v761_v32, %v757_v31  ;;  %v776_v7 = vshll.u32 %v6930_v56, 16  ;;  %v905_v9 = vrot.slane %v903_v0, 1  ;;  %v6967_v32 = vld [vmem:[%s6778_s18 + $0xb4] sm:$0xff]  ;;  %p6592_p5 = pnand %p6591_p3, %p6587_p0 }
  0x2b   : > { %v682_v25 = vunpack.c.l.b16 %v498_v18  ;;  %v908_v10 = vshll.u32 %v6936_v61, 16  ;;  %6466 = vmatpush.bf16.msra.mxu2 %v6257_v4  ;;  %v471_v18 = vld [vmem:[%s6778_s18 + $0x38] sm:$0x1]  ;;  %v6998_v0 = vpack.c.b16 %v675_v54, %v675_v54 }
  0x2d   : > { %1296 = vmatpush.bf16.msra.mxu0 %v6239_v22  ;;  %v671_v22 = vunpack.c.l.b16 %v465_v17  ;;  %v910_v17 = vrot.slane %v908_v10, 1 }
  0x2e   : > { %1395 = vmatpush.bf16.msra.mxu1 %v6247_v23  ;;  %6460 = vmatpush.bf16.msra.mxu3 %v6247_v23  ;;  %v6889_v23 = vsel %vm707_vm0, %v882_v13, %v886_v16  ;;  %v778_v13 = vrot.slane %v776_v7, 1  ;;  %v906_v16 = vor.u32 %v905_v9, %v901_v8  ;;  %v6215_v7 = vld [vmem:[%s9119_s3 + $0x8] sm:$0xff]  ;;  %v993_v8 = vrot.slane %v6991_v48, 1 }
  0x2f   : > { %9210 = vst [vmem:[#allocation7_spill] sm:$0xff] %v6889_v23  ;;  %v6897_v26 = vpack.c.b16 %v671_v22, %v671_v22  ;;  %v6218_v22 = vld [vmem:[%s9119_s3 + $0x20] sm:$0xff]  ;;  %v994_v9 = vrot.slane %v6998_v0, 1 }
  0x30   : > { %v6964_v31 = vsel %vm707_vm0, %v906_v16, %v910_v17  ;;  %v474_v16 = vld [vmem:[%s6778_s18 + $0x44] sm:$0x1] }
  0x31   : > { %1297 = vmatpush.bf16.msra.mxu0 %v6238_v29  ;;  %v6903_v29 = vpack.c.b16 %v682_v25, %v682_v25  ;;  %v764_v33 = vshll.u32 %v6897_v26, 16  ;;  %v504_v25 = vld [vmem:[%s6778_s18 + $0xbc] sm:$0x1]  ;;  %9212 = vst [vmem:[#allocation9_spill] sm:$0xff] %v6964_v31  ;;  %v7017_v17 = vsel %vm968_vm1, %v993_v8, %v994_v9 }
  0x32   : > { %1396 = vmatpush.bf16.msra.mxu1 %v6246_v30  ;;  %6461 = vmatpush.bf16.msra.mxu3 %v6246_v30  ;;  %v891_v30 = vshll.u32 %v6892_v24, 16  ;;  %9213 = vst [vmem:[#allocation10_spill] sm:$0xff] %v7017_v17 }
  0x33   : > { %v896_v38 = vshll.u32 %v6903_v29, 16  ;;  %v766_v43 = vrot.slane %v764_v33, 1  ;;  %v684_v33 = vunpack.c.l.b16 %v504_v25 }
  0x34   : > { %1298 = vmatmul.bf16.vlgmr.msra.gmra.mxu0 %v6793_v14  ;;  %v893_v35 = vrot.slane %v891_v30, 1  ;;  %v673_v30 = vunpack.c.l.b16 %v471_v18  ;;  %v6214_v18 = vld [vmem:[%s9119_s3] sm:$0xff] }
  0x35   : > { %1488 = vmatpush.bf16.msrb.mxu0 %v6261_v5  ;;  %1397 = vmatmul.bf16.vlgmr.msra.gmra.mxu1 %v6826_v36  ;;  %v745_v5 = vshrl.u32 %v6859_v60, 16  ;;  %v898_v46 = vrot.slane %v896_v38, 1  ;;  %v6913_v49 = vsel %vm707_vm0, %v762_v41, %v766_v43  ;;  %v6255_v43 = vld [vmem:[%s9119_s3 + $0x148] sm:$0xff] }
  0x36   : > { %1452 = vmatmul.bf16.vlgmr.msra.gmra.mxu3 %v6832_v39  ;;  %v6978_v38 = vpack.c.b16 %v673_v30, %v673_v30  ;;  %v7027_v30 = vld [vmem:[%s6778_s18 + $0x3c] sm:$0xff] }
  0x37   : > { %v750_v11 = vor.u32 %v749_v6, %v745_v5  ;;  %1731 = vmatpush.bf16.msrb.mxu3 %v6221_v55  ;;  %v769_v5 = vshrl.u32 %v6916_v50, 16  ;;  %v773_v6 = vrot.slane %v771_v57, 1 }
  0x39   : > { %1489 = vmatpush.bf16.msrb.mxu0 %v6260_v44  ;;  %v6883_v19 = vsel %vm707_vm0, %v750_v11, %v754_v12  ;;  %v894_v44 = vor.u32 %v893_v35, %v889_v34  ;;  %v6219_v11 = vld [vmem:[%s9119_s3 + $0x28] sm:$0xff]  ;;  %v774_v12 = vor.u32 %v773_v6, %v769_v5  ;;  %v6256_v34 = vld [vmem:[%s9119_s3 + $0x150] sm:$0xff]  ;;  %v6217_v35 = vld [vmem:[%s9119_s3 + $0x18] sm:$0xff] }
  0x3a   : > { %6467 = vmatpush.bf16.msra.mxu2 %v6256_v34  ;;  %v6254_v6 = vld [vmem:[%s9119_s3 + $0x140] sm:$0xff] }
  0x3b   : > { %v6919_v52 = vsel %vm707_vm0, %v894_v44, %v898_v46  ;;  %1732 = vmatpush.bf16.msrb.mxu3 %v6220_v2  ;;  %v6958_v27 = vsel %vm707_vm0, %v774_v12, %v778_v13  ;;  %v6984_v44 = vpack.c.b16 %v684_v33, %v684_v33  ;;  %v915_v46 = vshll.u32 %v6967_v32, 16 }
  0x3c   : > { %9211 = vst [vmem:[#allocation8_spill] sm:$0xff] %v6919_v52  ;;  %v913_v2 = vshrl.u32 %v6967_v32, 16  ;;  %v674_v33 = vunpack.c.l.b16 %v474_v16 }
  0x3d   : > { %1490 = vmatpush.bf16.msrb.mxu0 %v6259_v28  ;;  %v6961_v28 = vld [vmem:[%s6778_s18 + $0x30] sm:$0xff]  ;;  %v920_v5 = vshll.u32 %v6984_v44, 16 }
  0x3e   : > { %v783_v41 = vshll.u32 %v6961_v28, 16  ;;  %v781_v55 = vshrl.u32 %v6961_v28, 16  ;;  %6468 = vmatpush.bf16.msra.mxu2 %v6255_v43 }
  0x3f   : > { %1733 = vmatpush.bf16.msrb.mxu3 %v6219_v11  ;;  %v922_v13 = vrot.slane %v920_v5, 1 }
  0x40   : > { %v785_v57 = vrot.slane %v783_v41, 1 }
  0x41   : > { %1491 = vmatpush.bf16.msrb.mxu0 %v6258_v58  ;;  %v788_v58 = vshll.u32 %v6978_v38, 16 }
  0x42   : > { %v786_v10 = vor.u32 %v785_v57, %v781_v55  ;;  %6469 = vmatpush.bf16.msra.mxu2 %v6254_v6  ;;  %v7047_v55 = vld [vmem:[%s6778_s18 + $0x54] sm:$0xff] }
  0x43   : > { %1734 = vmatpush.bf16.msrb.mxu3 %v6218_v22  ;;  %v790_v11 = vrot.slane %v788_v58, 1  ;;  %v513_v22 = vld [vmem:[%s7013_s9 + $0x8] sm:$0x1]  ;;  %v996_v9 = vrot.slane %v7047_v55, 1 }
  0x44   : > { %1303 = vmatmul.bf16.gmra.mxu0 %v6829_v37  ;;  %v685_v41 = vunpack.c.l.b16 %v513_v22 }
  0x45   : > { %1402 = vmatmul.bf16.gmra.mxu1 %v6856_v59  ;;  %1492 = vmatpush.bf16.msrb.mxu0 %v6257_v4  ;;  %v917_v4 = vrot.slane %v915_v46, 1  ;;  %v7024_v25 = vsel %vm707_vm0, %v786_v10, %v790_v11  ;;  %v795_v46 = vshll.u32 %v7027_v30, 16 }
  0x46   : > { %1457 = vmatmul.bf16.gmra.mxu3 %v6862_v62  ;;  %9214 = vst [vmem:[#allocation11_spill] sm:$0xff] %v7024_v25  ;;  %1531 = vmatmul.bf16.vlgmr.msra.gmra.mxu2 %v7017_v17  ;;  %v7043_v51 = vpack.c.b16 %v685_v41, %v685_v41  ;;  %v807_v41 = vshll.u32 %v6991_v48, 16 }
  0x47   : > { %1735 = vmatpush.bf16.msrb.mxu3 %v6217_v35  ;;  %v918_v12 = vor.u32 %v917_v4, %v913_v2  ;;  %v7034_v35 = vld [vmem:[%s7013_s9] sm:$0xff]  ;;  %v793_v2 = vshrl.u32 %v7027_v30, 16  ;;  %v797_v4 = vrot.slane %v795_v46, 1  ;;  %v805_v46 = vshrl.u32 %v6991_v48, 16 }
  0x48   : > { %9216 = vst [vmem:[#allocation13_spill] sm:$0xff] %v7043_v51  ;;  %v927_v54 = vshll.u32 %v7034_v35, 16  ;;  %v932_v8 = vshll.u32 %v7043_v51, 16 }
  0x49   : > { %1493 = vmatpush.bf16.msrb.mxu0 %v6256_v34  ;;  %v7031_v34 = vsel %vm707_vm0, %v918_v12, %v922_v13  ;;  %v798_v11 = vor.u32 %v797_v4, %v793_v2  ;;  %v7072_v4 = vld [vmem:[%s6778_s18 + $0x60] sm:$0xff] }
  0x4a   : > { %9215 = vst [vmem:[#allocation12_spill] sm:$0xff] %v7031_v34  ;;  %v934_v16 = vrot.slane %v932_v8, 1  ;;  %v999_v8 = vrot.slane %v7072_v4, 1 }
  0x4b   : > { %1736 = vmatpush.bf16.msrb.mxu3 %v6216_v47  ;;  %v480_v47 = vld [vmem:[%s6778_s18 + $0x5c] sm:$0x1] }
  0x4c   : > { %v676_v57 = vunpack.c.l.b16 %v480_v47  ;;  %v809_v47 = vrot.slane %v807_v41, 1  ;;  %v486_v41 = vld [vmem:[%s6778_s18 + $0x74] sm:$0x1] }
  0x4d   : > { %1494 = vmatpush.bf16.msrb.mxu0 %v6255_v43  ;;  %v7039_v43 = vpack.c.b16 %v674_v33, %v674_v33 }
  0x4e   : > { %v696_v58 = vpack.c.b16 %v676_v57, %v676_v57  ;;  %v483_v57 = vld [vmem:[%s6778_s18 + $0x68] sm:$0x1] }
  0x4f   : > { %1737 = vmatpush.bf16.msrb.mxu3 %v6215_v7  ;;  %v800_v5 = vshll.u32 %v7039_v43, 16  ;;  %v929_v7 = vrot.slane %v927_v54, 1  ;;  %v812_v54 = vshll.u32 %v6998_v0, 16  ;;  %v677_v2 = vunpack.c.l.b16 %v483_v57 }
  0x50   : > { %v997_v10 = vrot.slane %v696_v58, 1  ;;  %v819_v0 = vshll.u32 %v7047_v55, 16 }
  0x51   : > { %1495 = vmatpush.bf16.msrb.mxu0 %v6254_v6  ;;  %v925_v6 = vshrl.u32 %v7034_v35, 16  ;;  %v802_v12 = vrot.slane %v800_v5, 1  ;;  %v697_v5 = vpack.c.b16 %v677_v2, %v677_v2 }
  0x53   : > { %1738 = vmatpush.bf16.msrb.mxu3 %v6214_v18  ;;  %v930_v13 = vor.u32 %v929_v7, %v925_v6  ;;  %v7055_v18 = vsel %vm968_vm1, %v996_v9, %v997_v10  ;;  %v7058_v22 = vsel %vm707_vm0, %v798_v11, %v802_v12  ;;  %v810_v6 = vor.u32 %v809_v47, %v805_v46  ;;  %v7089_v47 = vld [vmem:[%s6778_s18 + $0x6c] sm:$0xff] }
  0x54   : > { %1308 = vmatmul.bf16.gmra.mxu0 %v6859_v60  ;;  %9217 = vst [vmem:[#allocation14_spill] sm:$0xff] %v7055_v18  ;;  %v814_v7 = vrot.slane %v812_v54, 1  ;;  %v1000_v9 = vrot.slane %v697_v5, 1  ;;  %v817_v12 = vshrl.u32 %v7047_v55, 16  ;;  %v678_v46 = vunpack.c.l.b16 %v486_v41 }
  0x55   : > { %1407 = vmatmul.bf16.gmra.mxu1 %v6883_v19  ;;  %9218 = vst [vmem:[#allocation15_spill] sm:$0xff] %v7058_v22  ;;  %v7062_v33 = vsel %vm707_vm0, %v930_v13, %v934_v16  ;;  %v821_v13 = vrot.slane %v819_v0, 1  ;;  %v824_v16 = vshll.u32 %v696_v58, 16  ;;  %v831_v58 = vshll.u32 %v7072_v4, 16 }
  0x56   : > { %1462 = vmatmul.bf16.gmra.mxu3 %v6889_v23  ;;  %1536 = vmatmul.bf16.gmra.mxu2 %v7055_v18  ;;  %9219 = vst [vmem:[#allocation16_spill] sm:$0xff] %v7062_v33  ;;  %v7076_v10 = vsel %vm968_vm1, %v999_v8, %v1000_v9  ;;  %v7079_v11 = vsel %vm707_vm0, %v810_v6, %v814_v7  ;;  %v1002_v6 = vrot.slane %v7089_v47, 1  ;;  %v836_v41 = vshll.u32 %v697_v5, 16 }
  0x57   : > { %9220 = vst [vmem:[#allocation17_spill] sm:$0xff] %v7076_v10  ;;  %v698_v54 = vpack.c.b16 %v678_v46, %v678_v46  ;;  %v822_v57 = vor.u32 %v821_v13, %v817_v12  ;;  %v826_v2 = vrot.slane %v824_v16, 1  ;;  %v829_v16 = vshrl.u32 %v7072_v4, 16 }
  0x58   : > { %9221 = vst [vmem:[#allocation18_spill] sm:$0xff] %v7079_v11 }
  0x59   : > { %v1003_v7 = vrot.slane %v698_v54, 1 }
  0x5b   : > { %v7093_v8 = vsel %vm968_vm1, %v1002_v6, %v1003_v7  ;;  %v1006_v6 = vrot.slane %v6805_v20, 1  ;;  %v843_v20 = vshll.u32 %v7089_v47, 16 }
  0x5c   : > { %9222 = vst [vmem:[#allocation19_spill] sm:$0xff] %v7093_v8 }
  0x64   : > { %1313 = vmatmul.bf16.gmra.mxu0 %v6886_v21 }
  0x65   : > { %1412 = vmatmul.bf16.gmra.mxu1 %v6913_v49 }
  0x66   : > { %1467 = vmatmul.bf16.gmra.mxu3 %v6919_v52  ;;  %1541 = vmatmul.bf16.gmra.mxu2 %v7076_v10 }
  0x74   : > { %1318 = vmatmul.bf16.gmra.mxu0 %v6916_v50 }
  0x75   : > { %1417 = vmatmul.bf16.gmra.mxu1 %v6958_v27 }
  0x76   : > { %1472 = vmatmul.bf16.gmra.mxu3 %v6964_v31  ;;  %1546 = vmatmul.bf16.gmra.mxu2 %v7093_v8 }
  0x84   : > { %1323 = vmatmul.bf16.gmra.mxu0 %v6961_v28 }
  0x85   : > { %1422 = vmatmul.bf16.gmra.mxu1 %v7024_v25 }
  0x86   : > { %1477 = vmatmul.bf16.gmra.mxu3 %v7031_v34  ;;  %v7096_v34 = vsel %vm707_vm0, %v822_v57, %v826_v2  ;;  %v838_v57 = vrot.slane %v836_v41, 1  ;;  %v1005_v2 = vrot.slane %v6796_v15, 1  ;;  %v845_v41 = vrot.slane %v843_v20, 1 }
  0x87   : > { %9223 = vst [vmem:[#allocation20_spill] sm:$0xff] %v7096_v34 }
  0x94   : > { %1328 = vmatmul.bf16.gmra.mxu0 %v7027_v30 }
  0x95   : > { %1427 = vmatmul.bf16.gmra.mxu1 %v7058_v22 }
  0x96   : > { %1482 = vmatmul.bf16.gmra.mxu3 %v7062_v33 }
  0xa4   : > { %1333 = vmatmul.bf16.gmra.mxu0 %v6991_v48 }
  0xa5   : > { %1432 = vmatmul.bf16.gmra.mxu1 %v7079_v11 }
  0xa6   : > { %1739 = vmatmul.bf16.vlgmr.msrb.gmra.mxu3 %v6793_v14 }
  0xb1   : > { %v1299_v9 = vpop.f32.mrf.mxu0 }
  0xb2   : > { %v1398_v33 = vpop.f32.mrf.mxu1  ;;  %v7111_v9 = vsel %vm968_vm1, %v1005_v2, %v1006_v6  ;;  %v1009_v2 = vrot.slane %v6846_v45, 1 }
  0xb3   : > { %v833_v33 = vrot.slane %v831_v58, 1  ;;  %9225 = vst [vmem:[#allocation22_spill] sm:$0xff] %v7111_v9  ;;  %1551 = vmatmul.bf16.gmra.mxu2 %v7111_v9 }
  0xb4   : > { %1338 = vmatmul.bf16.gmra.mxu0 %v7047_v55 }
  0xb5   : > { %1437 = vmatmul.bf16.gmra.mxu1 %v7096_v34  ;;  %v834_v46 = vor.u32 %v833_v33, %v829_v16  ;;  %v841_v33 = vshrl.u32 %v7089_v47, 16 }
  0xb6   : > { %1744 = vmatmul.bf16.gmra.mxu3 %v6793_v14 }
  0xb9   : > { %v7103_v0 = vpop.f32.mrf.mxu3  ;;  %v1301_v12 = vpop.f32.mrf.mxu0 }
  0xba   : > { %v1400_v13 = vpop.f32.mrf.mxu1  ;;  %v7114_v12 = vsel %vm707_vm0, %v834_v46, %v838_v57  ;;  %v848_v46 = vshll.u32 %v698_v54, 16  ;;  %v1008_v57 = vrot.slane %v6835_v40, 1 }
  0xbb   : > { %9226 = vst [vmem:[#allocation23_spill] sm:$0xff] %v7114_v12 }
  0xc1   : > { %v7108_v7 = vpop.f32.mrf.mxu3  ;;  %v1304_v31 = vpop.f32.mrf.mxu0 }
  0xc2   : > { %9224 = vst [vmem:[#allocation21_spill] sm:$0xff] %v7108_v7  ;;  %v1403_v52 = vpop.f32.mrf.mxu1  ;;  %v7135_v7 = vsel %vm968_vm1, %v1008_v57, %v1009_v2 }
  0xc3   : > { %v7117_v58 = vadd.f32 %v1403_v52, %v1304_v31  ;;  %v846_v52 = vor.u32 %v845_v41, %v841_v33  ;;  %v850_v31 = vrot.slane %v848_v46, 1  ;;  %9228 = vst [vmem:[#allocation25_spill] sm:$0xff] %v7135_v7  ;;  %1556 = vmatmul.bf16.gmra.mxu2 %v7135_v7  ;;  %v1011_v41 = vrot.slane %v6865_v63, 1 }
  0xc4   : > { %1343 = vmatmul.bf16.gmra.mxu0 %v7072_v4  ;;  %v1012_v46 = vrot.slane %v6873_v3, 1 }
  0xc5   : > { %1442 = vmatmul.bf16.gmra.mxu1 %v7114_v12  ;;  %v7138_v39 = vsel %vm707_vm0, %v846_v52, %v850_v31 }
  0xc6   : > { %1749 = vmatmul.bf16.gmra.mxu3 %v6829_v37  ;;  %9229 = vst [vmem:[#allocation26_spill] sm:$0xff] %v7138_v39 }
  0xc9   : > { %v7123_v5 = vpop.f32.mrf.mxu3  ;;  %v7125_v13 = vpop.f32.mrf.mxu0 }
  0xca   : > { %v7127_v16 = vpop.f32.mrf.mxu1  ;;  %v1532_v8 = vpop.f32.mrf.mxu2 }
  0xd1   : > { %v7132_v6 = vpop.f32.mrf.mxu3  ;;  %v1309_v23 = vpop.f32.mrf.mxu0 }
  0xd2   : > { %9227 = vst [vmem:[#allocation24_spill] sm:$0xff] %v7132_v6  ;;  %v1408_v62 = vpop.f32.mrf.mxu1 }
  0xd3   : > { %v7141_v20 = vadd.f32 %v1408_v62, %v1309_v23  ;;  %v7157_v62 = vsel %vm968_vm1, %v1011_v41, %v1012_v46  ;;  %v1015_v41 = vrot.slane %v6903_v29, 1 }
  0xd4   : > { %1348 = vmatmul.bf16.gmra.mxu0 %v7089_v47  ;;  %9231 = vst [vmem:[#allocation28_spill] sm:$0xff] %v7157_v62  ;;  %1561 = vmatmul.bf16.gmra.mxu2 %v7157_v62 }
  0xd5   : > { %1447 = vmatmul.bf16.gmra.mxu1 %v7138_v39 }
  0xd6   : > { %1754 = vmatmul.bf16.gmra.mxu3 %v6859_v60 }
  0xd9   : > { %v7146_v45 = vpop.f32.mrf.mxu3  ;;  %v7148_v54 = vpop.f32.mrf.mxu0 }
  0xda   : > { %v7150_v33 = vpop.f32.mrf.mxu1 }
  0xe1   : > { %v7154_v52 = vpop.f32.mrf.mxu3  ;;  %v1314_v23 = vpop.f32.mrf.mxu0 }
  0xe2   : > { %9230 = vst [vmem:[#allocation27_spill] sm:$0xff] %v7154_v52  ;;  %v1413_v31 = vpop.f32.mrf.mxu1  ;;  %v1014_v52 = vrot.slane %v6892_v24, 1 }
  0xe3   : > { %v7160_v57 = vadd.f32 %v1413_v31, %v1314_v23 }
  0xe4   : > { %1353 = vmatmul.bf16.gmra.mxu0 %v6796_v15  ;;  %v7175_v62 = vsel %vm968_vm1, %v1014_v52, %v1015_v41  ;;  %v1018_v52 = vrot.slane %v6936_v61, 1 }
  0xe5   : > { %9233 = vst [vmem:[#allocation30_spill] sm:$0xff] %v7175_v62  ;;  %1566 = vmatmul.bf16.gmra.mxu2 %v7175_v62 }
  0xe6   : > { %1759 = vmatmul.bf16.gmra.mxu3 %v6886_v21 }
  0xe9   : > { %v7164_v2 = vpop.f32.mrf.mxu3  ;;  %v7166_v6 = vpop.f32.mrf.mxu0 }
  0xea   : > { %v7168_v3 = vpop.f32.mrf.mxu1 }
  0xf1   : > { %v7172_v46 = vpop.f32.mrf.mxu3  ;;  %v1319_v23 = vpop.f32.mrf.mxu0 }
  0xf2   : > { %9232 = vst [vmem:[#allocation29_spill] sm:$0xff] %v7172_v46  ;;  %v1418_v31 = vpop.f32.mrf.mxu1  ;;  %v1017_v46 = vrot.slane %v6922_v53, 1 }
  0xf3   : > { %v7178_v7 = vadd.f32 %v1418_v31, %v1319_v23 }
  0xf4   : > { %1358 = vmatmul.bf16.gmra.mxu0 %v6835_v40  ;;  %v7193_v62 = vsel %vm968_vm1, %v1017_v46, %v1018_v52  ;;  %v1020_v46 = vrot.slane %v6967_v32, 1  ;;  %v1021_v52 = vrot.slane %v6984_v44, 1 }
  0xf5   : > { %9235 = vst [vmem:[#allocation32_spill] sm:$0xff] %v7193_v62  ;;  %1571 = vmatmul.bf16.gmra.mxu2 %v7193_v62 }
  0xf6   : > { %1764 = vmatmul.bf16.gmra.mxu3 %v6916_v50 }
  0xf9   : > { %v7182_v39 = vpop.f32.mrf.mxu3  ;;  %v7184_v9 = vpop.f32.mrf.mxu0 }
  0xfa   : > { %v7186_v29 = vpop.f32.mrf.mxu1 }
 0x101   : > { %v7190_v41 = vpop.f32.mrf.mxu3  ;;  %v1324_v23 = vpop.f32.mrf.mxu0 }
 0x102   : > { %9234 = vst [vmem:[#allocation31_spill] sm:$0xff] %v7190_v41  ;;  %v1423_v31 = vpop.f32.mrf.mxu1  ;;  %v7206_v41 = vpop.f32.mrf.mxu2 }
 0x103   : > { %v7196_v12 = vadd.f32 %v1423_v31, %v1324_v23  ;;  %9238 = vst [vmem:[#allocation35_spill] sm:$0xff] %v7206_v41  ;;  %v7213_v23 = vsel %vm968_vm1, %v1020_v46, %v1021_v52 }
 0x104   : > { %1363 = vmatmul.bf16.gmra.mxu0 %v6865_v63  ;;  %9240 = vst [vmem:[#allocation37_spill] sm:$0xff] %v7213_v23 }
 0x105   : > { %1576 = vmatmul.bf16.gmra.mxu2 %v7213_v23 }
 0x106   : > { %1769 = vmatmul.bf16.gmra.mxu3 %v6961_v28 }
 0x109   : > { %v7200_v34 = vpop.f32.mrf.mxu3  ;;  %v7202_v10 = vpop.f32.mrf.mxu0 }
 0x10a   : > { %9236 = vst [vmem:[#allocation33_spill] sm:$0xff] %v7202_v10  ;;  %v7204_v61 = vpop.f32.mrf.mxu1  ;;  %v1537_v18 = vpop.f32.mrf.mxu2 }
 0x10b   : > { %9237 = vst [vmem:[#allocation34_spill] sm:$0xff] %v7204_v61 }
 0x111   : > { %v7210_v62 = vpop.f32.mrf.mxu3  ;;  %v1329_v31 = vpop.f32.mrf.mxu0 }
 0x112   : > { %9239 = vst [vmem:[#allocation36_spill] sm:$0xff] %v7210_v62  ;;  %v1428_v11 = vpop.f32.mrf.mxu1  ;;  %v7224_v62 = vpop.f32.mrf.mxu2 }
 0x113   : > { %v7216_v51 = vadd.f32 %v1428_v11, %v1329_v31  ;;  %9244 = vst [vmem:[#allocation41_spill] sm:$0xff] %v7224_v62 }
 0x114   : > { %1368 = vmatmul.bf16.gmra.mxu0 %v6892_v24 }
 0x115   : > { %9241 = vst [vmem:[#allocation38_spill] sm:$0xff] %v7216_v51 }
 0x116   : > { %1774 = vmatmul.bf16.gmra.mxu3 %v7027_v30 }
 0x119   : > { %v1483_v41 = vpop.f32.mrf.mxu3  ;;  %v7220_v22 = vpop.f32.mrf.mxu0 }
 0x11a   : > { %9242 = vst [vmem:[#allocation39_spill] sm:$0xff] %v7220_v22  ;;  %v7222_v44 = vpop.f32.mrf.mxu1  ;;  %v1542_v11 = vpop.f32.mrf.mxu2 }
 0x11b   : > { %9243 = vst [vmem:[#allocation40_spill] sm:$0xff] %v7222_v44 }
 0x121   : > { %v1485_v46 = vpop.f32.mrf.mxu3  ;;  %v1334_v52 = vpop.f32.mrf.mxu0 }
 0x122   : > { %v1433_v61 = vpop.f32.mrf.mxu1  ;;  %v7234_v22 = vpop.f32.mrf.mxu2 }
 0x123   : > { %v1434_v10 = vadd.f32 %v1433_v61, %v1334_v52  ;;  %9247 = vst [vmem:[#allocation44_spill] sm:$0xff] %v7234_v22 }
 0x124   : > { %1373 = vmatmul.bf16.gmra.mxu0 %v6922_v53 }
 0x125   : > { %v7226_v17 = vadd.f32 %v1532_v8, %v1434_v10 }
 0x126   : > { %1779 = vmatmul.bf16.gmra.mxu3 %v6991_v48  ;;  %v6229_v48 = vld [vmem:[%s9119_s3 + $0x78] sm:$0xff] }
 0x127   : > { %1830 = vmatpush.bf16.msra.mxu0 %v6229_v48 }
 0x129   : > { %v1740_v31 = vpop.f32.mrf.mxu3  ;;  %v7230_v23 = vpop.f32.mrf.mxu0 }
 0x12a   : > { %9245 = vst [vmem:[#allocation42_spill] sm:$0xff] %v7230_v23  ;;  %v7232_v41 = vpop.f32.mrf.mxu1  ;;  %v1547_v8 = vpop.f32.mrf.mxu2  ;;  %v975_v23 = vrot.slane %v6829_v37, 1 }
 0x12b   : > { %9246 = vst [vmem:[#allocation43_spill] sm:$0xff] %v7232_v41  ;;  %v6226_v41 = vld [vmem:[%s9119_s3 + $0x60] sm:$0xff] }
 0x131   : > { %v1742_v44 = vpop.f32.mrf.mxu3  ;;  %v1339_v62 = vpop.f32.mrf.mxu0 }
 0x132   : > { %v1438_v46 = vpop.f32.mrf.mxu1  ;;  %v7254_v31 = vpop.f32.mrf.mxu2 }
 0x133   : > { %v1439_v51 = vadd.f32 %v1438_v46, %v1339_v62  ;;  %9250 = vst [vmem:[#allocation47_spill] sm:$0xff] %v7254_v31 }
 0x134   : > { %1378 = vmatmul.bf16.gmra.mxu0 %v6967_v32 }
 0x135   : > { %v7236_v25 = vadd.f32 %v1537_v18, %v1439_v51 }
 0x136   : > { %1784 = vmatmul.bf16.gmra.mxu3 %v7047_v55  ;;  %v6228_v55 = vld [vmem:[%s9119_s3 + $0x70] sm:$0xff] }
 0x137   : > { %1831 = vmatpush.bf16.msra.mxu0 %v6228_v55 }
 0x139   : > { %v7243_v10 = vpop.f32.mrf.mxu3  ;;  %v7245_v61 = vpop.f32.mrf.mxu0 }
 0x13a   : > { %9248 = vst [vmem:[#allocation45_spill] sm:$0xff] %v7245_v61  ;;  %v7247_v44 = vpop.f32.mrf.mxu1  ;;  %v7269_v61 = vrot.slane %v6793_v14, 1 }
 0x13b   : > { %9249 = vst [vmem:[#allocation46_spill] sm:$0xff] %v7247_v44 }
 0x141   : > { %v7249_v52 = vpop.f32.mrf.mxu3  ;;  %v1344_v51 = vpop.f32.mrf.mxu0 }
 0x142   : > { %v1443_v18 = vpop.f32.mrf.mxu1 }
 0x143   : > { %v1444_v62 = vadd.f32 %v1443_v18, %v1344_v51  ;;  %v1552_v51 = vpop.f32.mrf.mxu2 }
 0x144   : > { %1383 = vmatmul.bf16.gmra.mxu0 %v7034_v35 }
 0x145   : > { %v7256_v46 = vadd.f32 %v1542_v11, %v1444_v62  ;;  %v6227_v11 = vld [vmem:[%s9119_s3 + $0x68] sm:$0xff] }
 0x146   : > { %1789 = vmatmul.bf16.gmra.mxu3 %v7072_v4  ;;  %1832 = vmatpush.bf16.msra.mxu0 %v6227_v11 }
 0x149   : > { %v7260_v48 = vpop.f32.mrf.mxu3  ;;  %v7262_v22 = vpop.f32.mrf.mxu0 }
 0x14a   : > { %9251 = vst [vmem:[#allocation48_spill] sm:$0xff] %v7262_v22  ;;  %v7264_v44 = vpop.f32.mrf.mxu1  ;;  %1833 = vmatpush.bf16.msra.mxu0 %v6226_v41  ;;  %v978_v41 = vrot.slane %v6859_v60, 1 }
 0x14b   : > { %9252 = vst [vmem:[#allocation49_spill] sm:$0xff] %v7264_v44  ;;  %v7278_v44 = vpop.f32.mrf.mxu2 }
 0x14c   : > { %9253 = vst [vmem:[#allocation50_spill] sm:$0xff] %v7278_v44 }
 0x151   : > { %v7266_v18 = vpop.f32.mrf.mxu3  ;;  %v1349_v62 = vpop.f32.mrf.mxu0 }
 0x152   : > { %v1448_v31 = vpop.f32.mrf.mxu1 }
 0x153   : > { %v1449_v4 = vadd.f32 %v1448_v31, %v1349_v62  ;;  %v976_v31 = vrot.slane %v6840_v42, 1  ;;  %v1557_v62 = vpop.f32.mrf.mxu2 }
 0x154   : > { %1496 = vmatmul.bf16.vlgmr.msrb.gmra.mxu0 %v7269_v61 }
 0x155   : > { %v7274_v55 = vadd.f32 %v1547_v8, %v1449_v4 }
 0x156   : > { %1794 = vmatmul.bf16.gmra.mxu3 %v7089_v47  ;;  %v7292_v47 = vsel %vm968_vm1, %v975_v23, %v976_v31  ;;  %v6225_v23 = vld [vmem:[%s9119_s3 + $0x58] sm:$0xff] }
 0x157   : > { %1834 = vmatpush.bf16.msra.mxu0 %v6225_v23  ;;  %v981_v23 = vrot.slane %v6886_v21, 1  ;;  %v6237_v21 = vld [vmem:[%s9119_s3 + $0xb8] sm:$0xff] }
 0x158   : > { %1929 = vmatpush.bf16.msrb.mxu1 %v6237_v21 }
 0x159   : > { %v7280_v22 = vpop.f32.mrf.mxu3  ;;  %v7282_v14 = vpop.f32.mrf.mxu0 }
 0x15a   : > { %9254 = vst [vmem:[#allocation51_spill] sm:$0xff] %v7282_v14 }
 0x15b   : > { %v7303_v42 = vpop.f32.mrf.mxu2 }
 0x15c   : > { %9256 = vst [vmem:[#allocation53_spill] sm:$0xff] %v7303_v42 }
 0x161   : > { %v7289_v8 = vpop.f32.mrf.mxu3  ;;  %v1354_v11 = vpop.f32.mrf.mxu0 }
 0x162   : > { %v1454_v4 = vadd.f32 %v7103_v0, %v1354_v11  ;;  %v979_v0 = vrot.slane %v6870_v1, 1  ;;  %v6224_v1 = vld [vmem:[%s9119_s3 + $0x50] sm:$0xff] }
 0x163   : > { %v1562_v42 = vpop.f32.mrf.mxu2  ;;  %1835 = vmatpush.bf16.msra.mxu0 %v6224_v1 }
 0x164   : > { %v7295_v44 = vadd.f32 %v1552_v51, %v1454_v4  ;;  %1501 = vmatmul.bf16.gmra.mxu0 %v7292_v47 }
 0x166   : > { %1799 = vmatmul.bf16.gmra.mxu3 %v6796_v15  ;;  %v7313_v15 = vsel %vm968_vm1, %v978_v41, %v979_v0 }
 0x169   : > { %v7299_v14 = vpop.f32.mrf.mxu3  ;;  %v7301_v37 = vpop.f32.mrf.mxu0 }
 0x16a   : > { %9255 = vst [vmem:[#allocation52_spill] sm:$0xff] %v7301_v37 }
 0x171   : > { %v7310_v51 = vpop.f32.mrf.mxu3  ;;  %v1359_v31 = vpop.f32.mrf.mxu0 }
 0x172   : > { %v1459_v11 = vadd.f32 %v7123_v5, %v1359_v31  ;;  %v982_v5 = vrot.slane %v6897_v26, 1 }
 0x174   : > { %v7316_v4 = vadd.f32 %v1557_v62, %v1459_v11  ;;  %1506 = vmatmul.bf16.gmra.mxu0 %v7313_v15  ;;  %v7329_v62 = vpop.f32.mrf.mxu2 }
 0x175   : > { %9257 = vst [vmem:[#allocation54_spill] sm:$0xff] %v7329_v62 }
 0x176   : > { %1804 = vmatmul.bf16.gmra.mxu3 %v6835_v40  ;;  %v7334_v40 = vsel %vm968_vm1, %v981_v23, %v982_v5  ;;  %v985_v23 = vrot.slane %v6930_v56, 1  ;;  %v6235_v5 = vld [vmem:[%s9119_s3 + $0xa8] sm:$0xff] }
 0x179   : > { %v7320_v37 = vpop.f32.mrf.mxu3  ;;  %v7322_v60 = vpop.f32.mrf.mxu0 }
 0x17c   : > { %v1567_v62 = vpop.f32.mrf.mxu2 }
 0x181   : > { %v7331_v41 = vpop.f32.mrf.mxu3  ;;  %v1364_v0 = vpop.f32.mrf.mxu0 }
 0x182   : > { %v1464_v31 = vadd.f32 %v7146_v45, %v1364_v0  ;;  %v6223_v45 = vld [vmem:[%s9119_s3 + $0x48] sm:$0xff] }
 0x183   : > { %1836 = vmatpush.bf16.msra.mxu0 %v6223_v45  ;;  %v6234_v45 = vld [vmem:[%s9119_s3 + $0xa0] sm:$0xff] }
 0x184   : > { %v7337_v11 = vadd.f32 %v1562_v42, %v1464_v31  ;;  %1511 = vmatmul.bf16.gmra.mxu0 %v7334_v40  ;;  %v6236_v42 = vld [vmem:[%s9119_s3 + $0xb0] sm:$0xff] }
 0x185   : > { %1930 = vmatpush.bf16.msrb.mxu1 %v6236_v42  ;;  %v6222_v42 = vld [vmem:[%s9119_s3 + $0x40] sm:$0xff] }
 0x186   : > { %1809 = vmatmul.bf16.gmra.mxu3 %v6865_v63  ;;  %v984_v63 = vrot.slane %v6916_v50, 1  ;;  %v7368_v50 = vpop.f32.mrf.mxu2 }
 0x187   : > { %9259 = vst [vmem:[#allocation56_spill] sm:$0xff] %v7368_v50  ;;  %1837 = vmatpush.bf16.msra.mxu0 %v6222_v42 }
 0x188   : > { %v7362_v21 = vsel %vm968_vm1, %v984_v63, %v985_v23 }
 0x189   : > { %v7344_v26 = vpop.f32.mrf.mxu3  ;;  %v7346_v1 = vpop.f32.mrf.mxu0  ;;  %1931 = vmatpush.bf16.msrb.mxu1 %v6235_v5 }
 0x18a   : > { %9258 = vst [vmem:[#allocation55_spill] sm:$0xff] %v7346_v1 }
 0x18d   : > { %1932 = vmatpush.bf16.msrb.mxu1 %v6234_v45  ;;  %v988_v45 = vrot.slane %v6978_v38, 1  ;;  %v6285_v38 = vld [vmem:[%s9119_s3 + $0x238] sm:$0xff] }
 0x18e   : > { %v1572_v5 = vpop.f32.mrf.mxu2  ;;  %2419 = vmatpush.bf16.msrb.mxu0 %v6285_v38 }
 0x191   : > { %v7359_v0 = vpop.f32.mrf.mxu3  ;;  %v1369_v31 = vpop.f32.mrf.mxu0 }
 0x192   : > { %v1469_v1 = vadd.f32 %v7164_v2, %v1369_v31  ;;  %v6233_v2 = vld [vmem:[%s9119_s3 + $0x98] sm:$0xff]  ;;  %v987_v31 = vrot.slane %v6961_v28, 1 }
 0x193   : > { %1933 = vmatpush.bf16.msrb.mxu1 %v6233_v2 }
 0x194   : > { %v7370_v56 = vadd.f32 %v1567_v62, %v1469_v1  ;;  %1516 = vmatmul.bf16.gmra.mxu0 %v7362_v21  ;;  %v6232_v1 = vld [vmem:[%s9119_s3 + $0x90] sm:$0xff] }
 0x196   : > { %1814 = vmatmul.bf16.gmra.mxu3 %v6892_v24  ;;  %v6277_v24 = vld [vmem:[%s9119_s3 + $0x1f8] sm:$0xff] }
 0x197   : > { %1934 = vmatpush.bf16.msrb.mxu1 %v6232_v1  ;;  %2320 = vmatpush.bf16.msra.mxu3 %v6277_v24  ;;  %v6230_v1 = vld [vmem:[%s9119_s3 + $0x80] sm:$0xff]  ;;  %v6269_v24 = vld [vmem:[%s9119_s3 + $0x1b8] sm:$0xff] }
 0x198   : > { %2221 = vmatpush.bf16.msrb.mxu2 %v6269_v24 }
 0x199   : > { %v1775_v63 = vpop.f32.mrf.mxu3  ;;  %v7383_v62 = vpop.f32.mrf.mxu0 }
 0x19a   : > { %v7381_v23 = vadd.f32 %v1775_v63, %v7226_v17  ;;  %9260 = vst [vmem:[#allocation57_spill] sm:$0xff] %v7383_v62  ;;  %v6231_v17 = vld [vmem:[%s9119_s3 + $0x88] sm:$0xff]  ;;  %v7399_v63 = vsel %vm968_vm1, %v987_v31, %v988_v45  ;;  %v7415_v31 = vpop.f32.mrf.mxu2  ;;  %v6262_v62 = vld [vmem:[%s9119_s3 + $0x180] sm:$0xff] }
 0x19b   : > { %1935 = vmatpush.bf16.msrb.mxu1 %v6231_v17  ;;  %9261 = vst [vmem:[#allocation58_spill] sm:$0xff] %v7399_v63  ;;  %v990_v17 = vrot.slane %v7027_v30, 1 }
 0x19c   : > { %9262 = vst [vmem:[#allocation59_spill] sm:$0xff] %v7415_v31 }
 0x19f   : > { %1936 = vmatpush.bf16.msrb.mxu1 %v6230_v1 }
 0x1a1   : > { %v7396_v42 = vpop.f32.mrf.mxu3  ;;  %v1374_v2 = vpop.f32.mrf.mxu0 }
 0x1a2   : > { %v1474_v28 = vadd.f32 %v7182_v39, %v1374_v2  ;;  %1937 = vmatmul.bf16.vlgmr.msrb.gmra.mxu1 %v7269_v61  ;;  %v991_v2 = vrot.slane %v7039_v43, 1 }
 0x1a4   : > { %v7405_v50 = vadd.f32 %v1572_v5, %v1474_v28  ;;  %1521 = vmatmul.bf16.gmra.mxu0 %v7399_v63  ;;  %v7428_v38 = vsel %vm968_vm1, %v990_v17, %v991_v2 }
 0x1a5   : > { %9264 = vst [vmem:[#allocation61_spill] sm:$0xff] %v7428_v38 }
 0x1a6   : > { %1819 = vmatmul.bf16.gmra.mxu3 %v6922_v53  ;;  %v1577_v53 = vpop.f32.mrf.mxu2 }
 0x1a9   : > { %v1780_v39 = vpop.f32.mrf.mxu3  ;;  %v7421_v45 = vpop.f32.mrf.mxu0 }
 0x1aa   : > { %v7419_v5 = vadd.f32 %v1780_v39, %v7236_v25  ;;  %9263 = vst [vmem:[#allocation60_spill] sm:$0xff] %v7421_v45  ;;  %v6268_v39 = vld [vmem:[%s9119_s3 + $0x1b0] sm:$0xff]  ;;  %v9271_v45 = vld [vmem:[#allocation10_spill] sm:$0xff] }
 0x1ab   : > { %2222 = vmatpush.bf16.msrb.mxu2 %v6268_v39 }
 0x1b1   : > { %v7425_v1 = vpop.f32.mrf.mxu3  ;;  %v1379_v28 = vpop.f32.mrf.mxu0 }
 0x1b2   : > { %v1479_v24 = vadd.f32 %v7200_v34, %v1379_v28  ;;  %1942 = vmatmul.bf16.gmra.mxu1 %v7269_v61  ;;  %v6284_v28 = vld [vmem:[%s9119_s3 + $0x230] sm:$0xff] }
 0x1b3   : > { %2420 = vmatpush.bf16.msrb.mxu0 %v6284_v28 }
 0x1b4   : > { %v7431_v31 = vadd.f32 %v1577_v53, %v1479_v24  ;;  %1526 = vmatmul.bf16.gmra.mxu0 %v7428_v38 }
 0x1b6   : > { %1824 = vmatmul.bf16.gmra.mxu3 %v6967_v32  ;;  %v6276_v32 = vld [vmem:[%s9119_s3 + $0x1f0] sm:$0xff] }
 0x1b7   : > { %2321 = vmatpush.bf16.msra.mxu3 %v6276_v32 }
 0x1b9   : > { %v1785_v25 = vpop.f32.mrf.mxu3  ;;  %v7439_v43 = vpop.f32.mrf.mxu0 }
 0x1ba   : > { %v7437_v30 = vadd.f32 %v1785_v25, %v7256_v46  ;;  %9265 = vst [vmem:[#allocation62_spill] sm:$0xff] %v7439_v43  ;;  %v6267_v25 = vld [vmem:[%s9119_s3 + $0x1a8] sm:$0xff] }
 0x1bb   : > { %2223 = vmatpush.bf16.msrb.mxu2 %v6267_v25 }
 0x1c1   : > { %v7444_v34 = vpop.f32.mrf.mxu3  ;;  %v1384_v17 = vpop.f32.mrf.mxu0 }
 0x1c2   : > { %1947 = vmatmul.bf16.gmra.mxu1 %v7292_v47 }
 0x1c4   : > { %1838 = vmatmul.bf16.vlgmr.msra.gmra.mxu0 %v6826_v36 }
 0x1c9   : > { %v1790_v61 = vpop.f32.mrf.mxu3  ;;  %v1386_v2 = vpop.f32.mrf.mxu0 }
 0x1ca   : > { %v7452_v46 = vadd.f32 %v1790_v61, %v7274_v55 }
 0x1d1   : > { %v7457_v53 = vpop.f32.mrf.mxu3  ;;  %v1497_v24 = vpop.f32.mrf.mxu0 }
 0x1d2   : > { %1952 = vmatmul.bf16.gmra.mxu1 %v7313_v15 }
 0x1d4   : > { %1843 = vmatmul.bf16.gmra.mxu0 %v6826_v36  ;;  %v6275_v36 = vld [vmem:[%s9119_s3 + $0x1e8] sm:$0xff] }
 0x1d5   : > { %2322 = vmatpush.bf16.msra.mxu3 %v6275_v36 }
 0x1d9   : > { %v1795_v55 = vpop.f32.mrf.mxu3  ;;  %v1499_v17 = vpop.f32.mrf.mxu0 }
 0x1da   : > { %v7465_v39 = vadd.f32 %v1795_v55, %v7295_v44  ;;  %v1406_v44 = vadd.f32 %v7127_v16, %v7125_v13  ;;  %v6283_v17 = vld [vmem:[%s9119_s3 + $0x228] sm:$0xff] }
 0x1db   : > { %2421 = vmatpush.bf16.msrb.mxu0 %v6283_v17 }
 0x1e1   : > { %v7467_v32 = vpop.f32.mrf.mxu3  ;;  %v1502_v61 = vpop.f32.mrf.mxu0 }
 0x1e2   : > { %v7470_v2 = vadd.f32 %v1502_v61, %v7117_v58  ;;  %1957 = vmatmul.bf16.gmra.mxu1 %v7334_v40  ;;  %v6266_v58 = vld [vmem:[%s9119_s3 + $0x1a0] sm:$0xff] }
 0x1e3   : > { %2224 = vmatpush.bf16.msrb.mxu2 %v6266_v58  ;;  %v6265_v58 = vld [vmem:[%s9119_s3 + $0x198] sm:$0xff] }
 0x1e4   : > { %1848 = vmatmul.bf16.gmra.mxu0 %v6856_v59 }
 0x1e7   : > { %2225 = vmatpush.bf16.msrb.mxu2 %v6265_v58 }
 0x1e9   : > { %v1800_v28 = vpop.f32.mrf.mxu3  ;;  %v1504_v25 = vpop.f32.mrf.mxu0 }
 0x1ea   : > { %v7480_v24 = vadd.f32 %v1800_v28, %v7316_v4  ;;  %v7485_v55 = vadd.f32 %v1504_v25, %v1406_v44  ;;  %v1411_v4 = vadd.f32 %v7150_v33, %v7148_v54  ;;  %v1416_v54 = vadd.f32 %v7168_v3, %v7166_v6  ;;  %v6264_v3 = vld [vmem:[%s9119_s3 + $0x190] sm:$0xff] }
 0x1eb   : > { %2226 = vmatpush.bf16.msrb.mxu2 %v6264_v3  ;;  %v9270_v3 = vld [vmem:[#allocation11_spill] sm:$0xff] }
 0x1f1   : > { %v7490_v61 = vpop.f32.mrf.mxu3  ;;  %v1507_v13 = vpop.f32.mrf.mxu0 }
 0x1f2   : > { %v7493_v16 = vadd.f32 %v1507_v13, %v7141_v20  ;;  %1962 = vmatmul.bf16.gmra.mxu1 %v7362_v21 }
 0x1f4   : > { %1853 = vmatmul.bf16.gmra.mxu0 %v6883_v19 }
 0x1f9   : > { %v1805_v36 = vpop.f32.mrf.mxu3  ;;  %v1509_v28 = vpop.f32.mrf.mxu0 }
 0x1fa   : > { %v7500_v44 = vadd.f32 %v1805_v36, %v7337_v11  ;;  %v7502_v25 = vadd.f32 %v1509_v28, %v1411_v4  ;;  %v6274_v36 = vld [vmem:[%s9119_s3 + $0x1e0] sm:$0xff] }
 0x1fb   : > { %2323 = vmatpush.bf16.msra.mxu3 %v6274_v36  ;;  %v7544_v36 = vpop.f32.mrf.mxu1 }
 0x201   : > { %v7507_v20 = vpop.f32.mrf.mxu3  ;;  %v1512_v17 = vpop.f32.mrf.mxu0 }
 0x202   : > { %v7510_v13 = vadd.f32 %v1512_v17, %v7160_v57  ;;  %1967 = vmatmul.bf16.gmra.mxu1 %v7399_v63  ;;  %v6282_v17 = vld [vmem:[%s9119_s3 + $0x220] sm:$0xff] }
 0x203   : > { %2422 = vmatpush.bf16.msrb.mxu0 %v6282_v17 }
 0x204   : > { %1858 = vmatmul.bf16.gmra.mxu0 %v6913_v49 }
 0x209   : > { %v1810_v33 = vpop.f32.mrf.mxu3  ;;  %v1514_v4 = vpop.f32.mrf.mxu0 }
 0x20a   : > { %v7517_v11 = vadd.f32 %v1810_v33, %v7370_v56  ;;  %v7522_v28 = vadd.f32 %v1514_v4, %v1416_v54  ;;  %v1421_v56 = vadd.f32 %v7186_v29, %v7184_v9  ;;  %v9272_v9 = vld [vmem:[#allocation33_spill] sm:$0xff]  ;;  %v9273_v29 = vld [vmem:[#allocation34_spill] sm:$0xff] }
 0x20c   : > { %9266 = vst [vmem:[#allocation63_spill] sm:$0xff] %v7517_v11 }
 0x211   : > { %v7524_v57 = vpop.f32.mrf.mxu3  ;;  %v1517_v58 = vpop.f32.mrf.mxu0 }
 0x212   : > { %9267 = vst [vmem:[#allocation64_spill] sm:$0xff] %v7524_v57  ;;  %v7530_v6 = vadd.f32 %v1517_v58, %v7178_v7  ;;  %1972 = vmatmul.bf16.gmra.mxu1 %v7428_v38  ;;  %v9278_v57 = vld [vmem:[#allocation14_spill] sm:$0xff] }
 0x214   : > { %1863 = vmatmul.bf16.gmra.mxu0 %v6958_v27 }
 0x219   : > { %v1815_v54 = vpop.f32.mrf.mxu3  ;;  %v1519_v4 = vpop.f32.mrf.mxu0 }
 0x21a   : > { %v7540_v33 = vadd.f32 %v1815_v54, %v7405_v50  ;;  %v7542_v7 = vadd.f32 %v1519_v4, %v1421_v56  ;;  %v1426_v50 = vadd.f32 %v9273_v29, %v9272_v9  ;;  %v9276_v29 = vld [vmem:[#allocation38_spill] sm:$0xff] }
 0x21c   : > { %9268 = vst [vmem:[#allocation65_spill] sm:$0xff] %v7540_v33  ;;  %v6281_v33 = vld [vmem:[%s9119_s3 + $0x218] sm:$0xff] }
 0x21d   : > { %2423 = vmatpush.bf16.msrb.mxu0 %v6281_v33 }
 0x21f   : > { %v1938_v38 = vpop.f32.mrf.mxu1 }
 0x221   : > { %v7546_v58 = vpop.f32.mrf.mxu3  ;;  %v1522_v17 = vpop.f32.mrf.mxu0 }
 0x222   : > { %9269 = vst [vmem:[#allocation66_spill] sm:$0xff] %v7546_v58  ;;  %v7549_v43 = vadd.f32 %v1522_v17, %v7196_v12  ;;  %1977 = vmatmul.bf16.gmra.mxu1 %v9271_v45  ;;  %v6263_v58 = vld [vmem:[%s9119_s3 + $0x188] sm:$0xff]  ;;  %v6273_v12 = vld [vmem:[%s9119_s3 + $0x1d8] sm:$0xff] }
 0x223   : > { %2227 = vmatpush.bf16.msrb.mxu2 %v6263_v58  ;;  %2324 = vmatpush.bf16.msra.mxu3 %v6273_v12  ;;  %v9280_v58 = vld [vmem:[#allocation40_spill] sm:$0xff] }
 0x224   : > { %1868 = vmatmul.bf16.gmra.mxu0 %v9270_v3 }
 0x227   : > { %v1940_v38 = vpop.f32.mrf.mxu1  ;;  %2228 = vmatpush.bf16.msrb.mxu2 %v6262_v62 }
 0x229   : > { %v1820_v54 = vpop.f32.mrf.mxu3  ;;  %v1524_v4 = vpop.f32.mrf.mxu0 }
 0x22a   : > { %v7556_v56 = vadd.f32 %v1820_v54, %v7431_v31  ;;  %v7564_v17 = vadd.f32 %v1524_v4, %v1426_v50  ;;  %v9277_v54 = vld [vmem:[#allocation15_spill] sm:$0xff] }
 0x22b   : > { %v9279_v50 = vld [vmem:[#allocation39_spill] sm:$0xff] }
 0x22c   : > { %9274 = vst [vmem:[#allocation11_spill] sm:$0xff] %v7556_v56  ;;  %v1431_v4 = vadd.f32 %v9280_v58, %v9279_v50 }
 0x22f   : > { %v1943_v56 = vpop.f32.mrf.mxu1 }
 0x231   : > { %v7566_v45 = vpop.f32.mrf.mxu3  ;;  %v1527_v9 = vpop.f32.mrf.mxu0 }
 0x232   : > { %9275 = vst [vmem:[#allocation33_spill] sm:$0xff] %v7566_v45  ;;  %v7569_v31 = vadd.f32 %v1527_v9, %v9276_v29  ;;  %1982 = vmatmul.bf16.gmra.mxu1 %v9278_v57  ;;  %v1023_v9 = vrot.slane %v7034_v35, 1  ;;  %v9281_v29 = vld [vmem:[#allocation13_spill] sm:$0xff]  ;;  %v9283_v35 = vld [vmem:[#allocation18_spill] sm:$0xff] }
 0x233   : > { %v1024_v11 = vrot.slane %v9281_v29, 1 }
 0x234   : > { %1873 = vmatmul.bf16.gmra.mxu0 %v9277_v54 }
 0x235   : > { %v7586_v33 = vsel %vm968_vm1, %v1023_v9, %v1024_v11  ;;  %v9284_v11 = vld [vmem:[#allocation17_spill] sm:$0xff] }
 0x236   : > { %9282 = vst [vmem:[#allocation34_spill] sm:$0xff] %v7586_v33  ;;  %1581 = vmatmul.bf16.gmra.mxu2 %v7586_v33  ;;  %v6270_v9 = vld [vmem:[%s9119_s3 + $0x1c0] sm:$0xff] }
 0x237   : > { %v1945_v63 = vpop.f32.mrf.mxu1 }
 0x239   : > { %v1825_v12 = vpop.f32.mrf.mxu3  ;;  %v1529_v38 = vpop.f32.mrf.mxu0 }
 0x23a   : > { %v7578_v45 = vadd.f32 %v1529_v38, %v1431_v4  ;;  %v6272_v4 = vld [vmem:[%s9119_s3 + $0x1d0] sm:$0xff]  ;;  %v6271_v38 = vld [vmem:[%s9119_s3 + $0x1c8] sm:$0xff] }
 0x23b   : > { %2325 = vmatpush.bf16.msra.mxu3 %v6272_v4 }
 0x23f   : > { %v1948_v12 = vpop.f32.mrf.mxu1  ;;  %2326 = vmatpush.bf16.msra.mxu3 %v6271_v38  ;;  %v9285_v38 = vld [vmem:[#allocation20_spill] sm:$0xff] }
 0x241   : > { %v1827_v50 = vpop.f32.mrf.mxu3  ;;  %v1839_v58 = vpop.f32.mrf.mxu0 }
 0x242   : > { %1987 = vmatmul.bf16.gmra.mxu1 %v9284_v11  ;;  %v6534_v50 = vld [vmem:[%s6778_s18] sm:$0xff]  ;;  %v1746_v58 = vadd.f32 %v7243_v10, %v7470_v2  ;;  %v6325_v11 = vld [vmem:[%s9121_s5 + $0x138] sm:$0xff]  ;;  %v1748_v10 = vadd.f32 %v7249_v52, %v7485_v55 }
 0x243   : > { %2327 = vmatpush.bf16.msra.mxu3 %v6270_v9  ;;  %v6280_v9 = vld [vmem:[%s9119_s3 + $0x210] sm:$0xff]  ;;  %3775 = vmatpush.bf16.msra.mxu2 %v6325_v11  ;;  %v1751_v11 = vadd.f32 %v7260_v48, %v7493_v16  ;;  %v1756_v48 = vadd.f32 %v7280_v22, %v7510_v13 }
 0x244   : > { %1878 = vmatmul.bf16.gmra.mxu0 %v9283_v35 }
 0x245   : > { %2424 = vmatpush.bf16.msrb.mxu0 %v6280_v9 }
 0x246   : > { %2229 = vmatmul.bf16.vlgmr.msrb.gmra.mxu2 %v6534_v50  ;;  %2328 = vmatmul.bf16.vlgmr.msra.gmra.mxu3 %v6856_v59  ;;  %v9286_v59 = vld [vmem:[#allocation19_spill] sm:$0xff] }
 0x247   : > { %v1950_v29 = vpop.f32.mrf.mxu1 }
 0x249   : > { %v1841_v62 = vpop.f32.mrf.mxu0 }
 0x24f   : > { %v1953_v62 = vpop.f32.mrf.mxu1 }
 0x251   : > { %v1844_v4 = vpop.f32.mrf.mxu0 }
 0x252   : > { %v1845_v33 = vadd.f32 %v1844_v4, %v1746_v58  ;;  %1992 = vmatmul.bf16.gmra.mxu1 %v9286_v59  ;;  %v6535_v4 = vld [vmem:[%s6778_s18 + $0xc] sm:$0xff] }
 0x253   : > { %v9289_v59 = vld [vmem:[#allocation22_spill] sm:$0xff] }
 0x254   : > { %v7604_v57 = vadd.f32 %v1943_v56, %v1845_v33  ;;  %1883 = vmatmul.bf16.gmra.mxu0 %v9285_v38  ;;  %v6317_v33 = vld [vmem:[%s9121_s5 + $0xf8] sm:$0xff] }
 0x255   : > { %3686 = vmatpush.bf16.msra.mxu1 %v6317_v33 }
 0x256   : > { %2234 = vmatmul.bf16.gmra.mxu2 %v6535_v4  ;;  %2333 = vmatmul.bf16.gmra.mxu3 %v6883_v19 }
 0x257   : > { %v1955_v58 = vpop.f32.mrf.mxu1 }
 0x259   : > { %v1846_v2 = vpop.f32.mrf.mxu0 }
 0x25a   : > { %v1847_v56 = vadd.f32 %v1846_v2, %v1748_v10  ;;  %v9288_v10 = vld [vmem:[#allocation23_spill] sm:$0xff] }
 0x25c   : > { %v7619_v50 = vadd.f32 %v1945_v63, %v1847_v56  ;;  %v1753_v63 = vadd.f32 %v7266_v18, %v7502_v25  ;;  %v9291_v25 = vld [vmem:[#allocation25_spill] sm:$0xff] }
 0x25e   : > { %9287 = vst [vmem:[#allocation38_spill] sm:$0xff] %v7619_v50  ;;  %v6536_v50 = vld [vmem:[%s6778_s18 + $0x18] sm:$0xff] }
 0x25f   : > { %v1958_v2 = vpop.f32.mrf.mxu1 }
 0x261   : > { %v1849_v9 = vpop.f32.mrf.mxu0 }
 0x262   : > { %v1850_v52 = vadd.f32 %v1849_v9, %v1751_v11  ;;  %1997 = vmatmul.bf16.gmra.mxu1 %v9289_v59  ;;  %v9290_v9 = vld [vmem:[#allocation26_spill] sm:$0xff] }
 0x264   : > { %v7625_v55 = vadd.f32 %v1948_v12, %v1850_v52  ;;  %1888 = vmatmul.bf16.gmra.mxu0 %v9288_v10 }
 0x266   : > { %2239 = vmatmul.bf16.gmra.mxu2 %v6536_v50  ;;  %2338 = vmatmul.bf16.gmra.mxu3 %v6913_v49  ;;  %v6324_v49 = vld [vmem:[%s9121_s5 + $0x130] sm:$0xff] }
 0x267   : > { %v1960_v19 = vpop.f32.mrf.mxu1  ;;  %3776 = vmatpush.bf16.msra.mxu2 %v6324_v49 }
 0x269   : > { %v1851_v56 = vpop.f32.mrf.mxu0 }
 0x26a   : > { %v1852_v33 = vadd.f32 %v1851_v56, %v1753_v63  ;;  %v6316_v63 = vld [vmem:[%s9121_s5 + $0xf0] sm:$0xff] }
 0x26b   : > { %3687 = vmatpush.bf16.msra.mxu1 %v6316_v63 }
 0x26c   : > { %v7631_v4 = vadd.f32 %v1950_v29, %v1852_v33  ;;  %v1758_v29 = vadd.f32 %v7289_v8, %v7522_v28  ;;  %v6537_v8 = vld [vmem:[%s6778_s18 + $0x24] sm:$0xff]  ;;  %v1761_v28 = vadd.f32 %v7299_v14, %v7530_v6  ;;  %v1766_v14 = vadd.f32 %v7320_v37, %v7549_v43 }
 0x26d   : > { %v6323_v37 = vld [vmem:[%s9121_s5 + $0x128] sm:$0xff]  ;;  %v6278_v43 = vld [vmem:[%s9119_s3 + $0x200] sm:$0xff] }
 0x26e   : > { %3777 = vmatpush.bf16.msra.mxu2 %v6323_v37 }
 0x26f   : > { %v1963_v18 = vpop.f32.mrf.mxu1 }
 0x271   : > { %v1854_v16 = vpop.f32.mrf.mxu0 }
 0x272   : > { %v1855_v12 = vadd.f32 %v1854_v16, %v1756_v48  ;;  %2002 = vmatmul.bf16.gmra.mxu1 %v9291_v25  ;;  %v9292_v48 = vld [vmem:[#allocation5_spill] sm:$0xff] }
 0x274   : > { %v7637_v11 = vadd.f32 %v1953_v62, %v1855_v12  ;;  %1893 = vmatmul.bf16.gmra.mxu0 %v9290_v9  ;;  %v6279_v62 = vld [vmem:[%s9119_s3 + $0x208] sm:$0xff]  ;;  %v9293_v12 = vld [vmem:[#allocation28_spill] sm:$0xff] }
 0x275   : > { %2425 = vmatpush.bf16.msrb.mxu0 %v6279_v62  ;;  %v6538_v62 = vld [vmem:[%s6778_s18 + $0x30] sm:$0xff] }
 0x276   : > { %2244 = vmatmul.bf16.gmra.mxu2 %v6537_v8  ;;  %2343 = vmatmul.bf16.gmra.mxu3 %v6958_v27  ;;  %v9294_v8 = vld [vmem:[#allocation6_spill] sm:$0xff] }
 0x277   : > { %v1965_v13 = vpop.f32.mrf.mxu1 }
 0x279   : > { %v1856_v52 = vpop.f32.mrf.mxu0  ;;  %2426 = vmatpush.bf16.msrb.mxu0 %v6278_v43 }
 0x27a   : > { %v1857_v50 = vadd.f32 %v1856_v52, %v1758_v29  ;;  %v1763_v29 = vadd.f32 %v7310_v51, %v7542_v7  ;;  %v9295_v7 = vld [vmem:[#allocation30_spill] sm:$0xff] }
 0x27c   : > { %v7646_v22 = vadd.f32 %v1955_v58, %v1857_v50 }
 0x27f   : > { %v1968_v16 = vpop.f32.mrf.mxu1 }
 0x281   : > { %v1859_v58 = vpop.f32.mrf.mxu0 }
 0x282   : > { %v1860_v56 = vadd.f32 %v1859_v58, %v1761_v28  ;;  %2007 = vmatmul.bf16.gmra.mxu1 %v9293_v12 }
 0x284   : > { %v7658_v33 = vadd.f32 %v1958_v2, %v1860_v56  ;;  %1898 = vmatmul.bf16.gmra.mxu0 %v9292_v48 }
 0x286   : > { %2249 = vmatmul.bf16.gmra.mxu2 %v6538_v62  ;;  %2348 = vmatmul.bf16.gmra.mxu3 %v9270_v3 }
 0x287   : > { %v7666_v27 = vpop.f32.mrf.mxu1 }
 0x289   : > { %v1861_v52 = vpop.f32.mrf.mxu0 }
 0x28a   : > { %v1862_v50 = vadd.f32 %v1861_v52, %v1763_v29  ;;  %v6315_v29 = vld [vmem:[%s9121_s5 + $0xe8] sm:$0xff] }
 0x28b   : > { %3688 = vmatpush.bf16.msra.mxu1 %v6315_v29 }
 0x28c   : > { %v7664_v49 = vadd.f32 %v1960_v19, %v1862_v50  ;;  %v1768_v19 = vadd.f32 %v7331_v41, %v7564_v17  ;;  %v1771_v41 = vadd.f32 %v7344_v26, %v7569_v31  ;;  %v9296_v50 = vld [vmem:[#allocation7_spill] sm:$0xff]  ;;  %v6540_v31 = vld [vmem:[%s6778_s18 + $0x48] sm:$0xff] }
 0x28f   : > { %v1973_v51 = vpop.f32.mrf.mxu1 }
 0x291   : > { %v1864_v6 = vpop.f32.mrf.mxu0 }
 0x292   : > { %v1865_v2 = vadd.f32 %v1864_v6, %v1766_v14  ;;  %2012 = vmatmul.bf16.gmra.mxu1 %v9295_v7  ;;  %v9297_v14 = vld [vmem:[#allocation32_spill] sm:$0xff] }
 0x294   : > { %v7672_v63 = vadd.f32 %v1963_v18, %v1865_v2  ;;  %1903 = vmatmul.bf16.gmra.mxu0 %v9294_v8  ;;  %v6539_v18 = vld [vmem:[%s6778_s18 + $0x3c] sm:$0xff] }
 0x296   : > { %2254 = vmatmul.bf16.gmra.mxu2 %v6539_v18  ;;  %2353 = vmatmul.bf16.gmra.mxu3 %v9277_v54  ;;  %v1773_v54 = vadd.f32 %v7359_v0, %v7578_v45  ;;  %v9301_v18 = vld [vmem:[#allocation8_spill] sm:$0xff]  ;;  %v9302_v45 = vld [vmem:[#allocation35_spill] sm:$0xff] }
 0x297   : > { %v7680_v3 = vpop.f32.mrf.mxu1 }
 0x299   : > { %v1866_v28 = vpop.f32.mrf.mxu0 }
 0x29a   : > { %v1867_v58 = vadd.f32 %v1866_v28, %v1768_v19  ;;  %v9299_v19 = vld [vmem:[#allocation42_spill] sm:$0xff]  ;;  %v9300_v28 = vld [vmem:[#allocation43_spill] sm:$0xff] }
 0x29c   : > { %v7678_v56 = vadd.f32 %v1965_v13, %v1867_v58  ;;  %v1436_v58 = vadd.f32 %v9300_v28, %v9299_v19 }
 0x29f   : > { %v1978_v62 = vpop.f32.mrf.mxu1 }
 0x2a1   : > { %v1869_v17 = vpop.f32.mrf.mxu0 }
 0x2a2   : > { %v1870_v13 = vadd.f32 %v1869_v17, %v1771_v41  ;;  %2017 = vmatmul.bf16.gmra.mxu1 %v9297_v14  ;;  %v1535_v41 = vadd.f32 %v9302_v45, %v1436_v58  ;;  %v9303_v17 = vld [vmem:[#allocation37_spill] sm:$0xff] }
 0x2a3   : > { %v9308_v45 = vld [vmem:[#allocation9_spill] sm:$0xff] }
 0x2a4   : > { %v7695_v52 = vadd.f32 %v1968_v16, %v1870_v13  ;;  %1908 = vmatmul.bf16.gmra.mxu0 %v9296_v50  ;;  %v1778_v13 = vadd.f32 %v7396_v42, %v1535_v41  ;;  %v6322_v42 = vld [vmem:[%s9121_s5 + $0x120] sm:$0xff] }
 0x2a5   : > { %3778 = vmatpush.bf16.msra.mxu2 %v6322_v42  ;;  %v9313_v42 = vld [vmem:[#allocation49_spill] sm:$0xff] }
 0x2a6   : > { %2259 = vmatmul.bf16.gmra.mxu2 %v6540_v31  ;;  %2358 = vmatmul.bf16.gmra.mxu3 %v9283_v35  ;;  %v6541_v31 = vld [vmem:[%s6778_s18 + $0x54] sm:$0xff] }
 0x2a7   : > { %v7703_v26 = vpop.f32.mrf.mxu1 }
 0x2a8   : > { %9298 = vst [vmem:[#allocation15_spill] sm:$0xff] %v7703_v26 }
 0x2a9   : > { %v1871_v6 = vpop.f32.mrf.mxu0 }
 0x2aa   : > { %v7701_v2 = vadd.f32 %v1871_v6, %v1773_v54  ;;  %v7716_v54 = vpop.f32.mrf.mxu2 }
 0x2af   : > { %v1983_v0 = vpop.f32.mrf.mxu1 }
 0x2b1   : > { %v1874_v16 = vpop.f32.mrf.mxu0 }
 0x2b2   : > { %v1875_v37 = vadd.f32 %v1874_v16, %v7381_v23  ;;  %2022 = vmatmul.bf16.gmra.mxu1 %v9303_v17  ;;  %v9306_v16 = vld [vmem:[#allocation46_spill] sm:$0xff] }
 0x2b4   : > { %v7710_v43 = vadd.f32 %v1973_v51, %v1875_v37  ;;  %1913 = vmatmul.bf16.gmra.mxu0 %v9301_v18  ;;  %v9305_v51 = vld [vmem:[#allocation45_spill] sm:$0xff] }
 0x2b5   : > { %v1441_v19 = vadd.f32 %v9306_v16, %v9305_v51 }
 0x2b6   : > { %2264 = vmatmul.bf16.gmra.mxu2 %v6541_v31  ;;  %2363 = vmatmul.bf16.gmra.mxu3 %v9285_v38  ;;  %v6314_v38 = vld [vmem:[%s9121_s5 + $0xe0] sm:$0xff] }
 0x2b7   : > { %v7720_v6 = vpop.f32.mrf.mxu1  ;;  %3689 = vmatpush.bf16.msra.mxu1 %v6314_v38 }
 0x2b8   : > { %9304 = vst [vmem:[#allocation39_spill] sm:$0xff] %v7720_v6 }
 0x2b9   : > { %v1876_v29 = vpop.f32.mrf.mxu0  ;;  %v1582_v58 = vpop.f32.mrf.mxu2 }
 0x2ba   : > { %v7718_v35 = vadd.f32 %v1876_v29, %v1778_v13  ;;  %v9309_v13 = vld [vmem:[#allocation41_spill] sm:$0xff]  ;;  %v9312_v58 = vld [vmem:[#allocation48_spill] sm:$0xff] }
 0x2bb   : > { %v1540_v29 = vadd.f32 %v9309_v13, %v1441_v19  ;;  %v1446_v6 = vadd.f32 %v9313_v42, %v9312_v58  ;;  %v6543_v58 = vld [vmem:[%s6778_s18 + $0x6c] sm:$0xff] }
 0x2bf   : > { %v1988_v41 = vpop.f32.mrf.mxu1 }
 0x2c1   : > { %v1879_v23 = vpop.f32.mrf.mxu0  ;;  %v1584_v51 = vpop.f32.mrf.mxu2 }
 0x2c2   : > { %v1880_v28 = vadd.f32 %v1879_v23, %v7419_v5  ;;  %v1783_v5 = vadd.f32 %v7425_v1, %v1540_v29  ;;  %v9314_v29 = vld [vmem:[#allocation12_spill] sm:$0xff] }
 0x2c4   : > { %v7730_v37 = vadd.f32 %v1978_v62, %v1880_v28  ;;  %1918 = vmatmul.bf16.gmra.mxu0 %v9308_v45  ;;  %v6542_v62 = vld [vmem:[%s6778_s18 + $0x60] sm:$0xff] }
 0x2c6   : > { %9307 = vst [vmem:[#allocation40_spill] sm:$0xff] %v7730_v37  ;;  %2269 = vmatmul.bf16.gmra.mxu2 %v6542_v62  ;;  %2368 = vmatmul.bf16.gmra.mxu3 %v9288_v10 }
 0x2c7   : > { %v7740_v16 = vpop.f32.mrf.mxu1 }
 0x2c8   : > { %9311 = vst [vmem:[#allocation18_spill] sm:$0xff] %v7740_v16 }
 0x2c9   : > { %v1881_v31 = vpop.f32.mrf.mxu0  ;;  %v2230_v38 = vpop.f32.mrf.mxu2 }
 0x2ca   : > { %v7738_v23 = vadd.f32 %v1881_v31, %v1783_v5  ;;  %v2329_v13 = vpop.f32.mrf.mxu3  ;;  %v9315_v31 = vld [vmem:[#allocation44_spill] sm:$0xff] }
 0x2cb   : > { %v1545_v51 = vadd.f32 %v9315_v31, %v1446_v6 }
 0x2cc   : > { %9310 = vst [vmem:[#allocation13_spill] sm:$0xff] %v7738_v23 }
 0x2cd   : > { %v1788_v62 = vadd.f32 %v7444_v34, %v1545_v51 }
 0x2cf   : > { %v1993_v5 = vpop.f32.mrf.mxu1 }
 0x2d1   : > { %v1884_v28 = vpop.f32.mrf.mxu0  ;;  %v2232_v26 = vpop.f32.mrf.mxu2 }
 0x2d2   : > { %v1885_v19 = vadd.f32 %v1884_v28, %v7437_v30  ;;  %v2331_v23 = vpop.f32.mrf.mxu3 }
 0x2d3   : > { %v9318_v23 = vld [vmem:[#allocation47_spill] sm:$0xff] }
 0x2d4   : > { %v7747_v1 = vadd.f32 %v1983_v0, %v1885_v19  ;;  %1923 = vmatmul.bf16.gmra.mxu0 %v9314_v29  ;;  %v9317_v0 = vld [vmem:[#allocation51_spill] sm:$0xff] }
 0x2d5   : > { %v1451_v28 = vadd.f32 %v7544_v36, %v9317_v0  ;;  %v9322_v0 = vld [vmem:[#allocation21_spill] sm:$0xff] }
 0x2d6   : > { %2274 = vmatmul.bf16.gmra.mxu2 %v6543_v58  ;;  %2373 = vmatmul.bf16.gmra.mxu3 %v9290_v9  ;;  %v6321_v9 = vld [vmem:[%s9121_s5 + $0x118] sm:$0xff] }
 0x2d7   : > { %v7754_v37 = vpop.f32.mrf.mxu1  ;;  %v1550_v38 = vadd.f32 %v9318_v23, %v1451_v28  ;;  %3779 = vmatpush.bf16.msra.mxu2 %v6321_v9  ;;  %v6544_v58 = vld [vmem:[%s6778_s18 + $0x78] sm:$0xff] }
 0x2d8   : > { %9316 = vst [vmem:[#allocation20_spill] sm:$0xff] %v7754_v37  ;;  %v6301_v37 = vld [vmem:[%s9121_s5 + $0x78] sm:$0xff] }
 0x2d9   : > { %v1886_v16 = vpop.f32.mrf.mxu0  ;;  %v2235_v6 = vpop.f32.mrf.mxu2  ;;  %v1793_v36 = vadd.f32 %v7457_v53, %v1550_v38  ;;  %v9321_v53 = vld [vmem:[#allocation52_spill] sm:$0xff] }
 0x2da   : > { %v7752_v10 = vadd.f32 %v1886_v16, %v1788_v62  ;;  %v2334_v19 = vpop.f32.mrf.mxu3  ;;  %v1456_v28 = vadd.f32 %v9322_v0, %v9321_v53 }
 0x2db   : > { %v7761_v34 = vadd.f32 %v2334_v19, %v2235_v6 }
 0x2df   : > { %v1998_v26 = vpop.f32.mrf.mxu1 }
 0x2e1   : > { %v1889_v30 = vpop.f32.mrf.mxu0  ;;  %v2237_v31 = vpop.f32.mrf.mxu2 }
 0x2e2   : > { %v1890_v42 = vadd.f32 %v1889_v30, %v7452_v46  ;;  %v2336_v51 = vpop.f32.mrf.mxu3 }
 0x2e4   : > { %v7763_v16 = vadd.f32 %v1988_v41, %v1890_v42  ;;  %2427 = vmatmul.bf16.vlgmr.msrb.gmra.mxu0 %v7292_v47  ;;  %v6313_v41 = vld [vmem:[%s9121_s5 + $0xd8] sm:$0xff]  ;;  %v7776_v47 = vadd.f32 %v2336_v51, %v2237_v31 }
 0x2e5   : > { %3690 = vmatpush.bf16.msra.mxu1 %v6313_v41 }
 0x2e6   : > { %2279 = vmatmul.bf16.gmra.mxu2 %v6544_v58  ;;  %2378 = vmatmul.bf16.gmra.mxu3 %v9292_v48 }
 0x2e7   : > { %v7778_v62 = vpop.f32.mrf.mxu1 }
 0x2e8   : > { %9320 = vst [vmem:[#allocation22_spill] sm:$0xff] %v7778_v62  ;;  %v9364_v62 = vld [vmem:[#allocation17_spill] sm:$0xff] }
 0x2e9   : > { %v1891_v46 = vpop.f32.mrf.mxu0  ;;  %v2240_v6 = vpop.f32.mrf.mxu2 }
 0x2ea   : > { %v7771_v13 = vadd.f32 %v1891_v46, %v1793_v36  ;;  %v2339_v19 = vpop.f32.mrf.mxu3  ;;  %v9324_v36 = vld [vmem:[#allocation50_spill] sm:$0xff] }
 0x2eb   : > { %v7785_v9 = vadd.f32 %v2339_v19, %v2240_v6  ;;  %v1555_v46 = vadd.f32 %v9324_v36, %v1456_v28 }
 0x2ec   : > { %9319 = vst [vmem:[#allocation23_spill] sm:$0xff] %v7771_v13 }
 0x2ed   : > { %v1798_v48 = vadd.f32 %v7467_v32, %v1555_v46  ;;  %v9329_v46 = vld [vmem:[#allocation53_spill] sm:$0xff] }
 0x2ef   : > { %v2003_v38 = vpop.f32.mrf.mxu1 }
 0x2f1   : > { %v1894_v30 = vpop.f32.mrf.mxu0  ;;  %v2242_v41 = vpop.f32.mrf.mxu2 }
 0x2f2   : > { %v1895_v42 = vadd.f32 %v1894_v30, %v7465_v39  ;;  %v2341_v58 = vpop.f32.mrf.mxu3  ;;  %v6545_v30 = vld [vmem:[%s6778_s18 + $0x84] sm:$0xff] }
 0x2f3   : > { %v7794_v53 = vadd.f32 %v2341_v58, %v2242_v41 }
 0x2f4   : > { %v7787_v23 = vadd.f32 %v1993_v5, %v1895_v42  ;;  %2432 = vmatmul.bf16.gmra.mxu0 %v7313_v15  ;;  %v9327_v15 = vld [vmem:[#allocation24_spill] sm:$0xff] }
 0x2f5   : > { %v1461_v0 = vadd.f32 %v9327_v15, %v7322_v60  ;;  %v9332_v15 = vld [vmem:[#allocation55_spill] sm:$0xff] }
 0x2f6   : > { %9323 = vst [vmem:[#allocation26_spill] sm:$0xff] %v7787_v23  ;;  %2284 = vmatmul.bf16.gmra.mxu2 %v6545_v30  ;;  %2383 = vmatmul.bf16.gmra.mxu3 %v9294_v8 }
 0x2f7   : > { %v7796_v39 = vpop.f32.mrf.mxu1 }
 0x2f8   : > { %9326 = vst [vmem:[#allocation5_spill] sm:$0xff] %v7796_v39 }
 0x2f9   : > { %v1896_v31 = vpop.f32.mrf.mxu0  ;;  %v2245_v32 = vpop.f32.mrf.mxu2 }
 0x2fa   : > { %v7792_v51 = vadd.f32 %v1896_v31, %v1798_v48  ;;  %v2344_v42 = vpop.f32.mrf.mxu3  ;;  %v1560_v48 = vadd.f32 %v9329_v46, %v1461_v0  ;;  %v9333_v0 = vld [vmem:[#allocation27_spill] sm:$0xff] }
 0x2fb   : > { %v7803_v6 = vadd.f32 %v2344_v42, %v2245_v32 }
 0x2fc   : > { %9325 = vst [vmem:[#allocation25_spill] sm:$0xff] %v7792_v51  ;;  %v1803_v8 = vadd.f32 %v7490_v61, %v1560_v48  ;;  %v6546_v61 = vld [vmem:[%s6778_s18 + $0x90] sm:$0xff] }
 0x2ff   : > { %v2008_v36 = vpop.f32.mrf.mxu1 }
 0x301   : > { %v1899_v5 = vpop.f32.mrf.mxu0  ;;  %v2247_v60 = vpop.f32.mrf.mxu2 }
 0x302   : > { %v1900_v28 = vadd.f32 %v1899_v5, %v7480_v24  ;;  %v2346_v58 = vpop.f32.mrf.mxu3  ;;  %v6320_v24 = vld [vmem:[%s9121_s5 + $0x110] sm:$0xff] }
 0x303   : > { %v7815_v30 = vadd.f32 %v2346_v58, %v2247_v60  ;;  %3780 = vmatpush.bf16.msra.mxu2 %v6320_v24  ;;  %v9335_v60 = vld [vmem:[#allocation54_spill] sm:$0xff] }
 0x304   : > { %v7805_v19 = vadd.f32 %v1998_v26, %v1900_v28  ;;  %2437 = vmatmul.bf16.gmra.mxu0 %v7334_v40  ;;  %v6312_v40 = vld [vmem:[%s9121_s5 + $0xd0] sm:$0xff]  ;;  %v1466_v28 = vadd.f32 %v9333_v0, %v9332_v15 }
 0x305   : > { %3691 = vmatpush.bf16.msra.mxu1 %v6312_v40 }
 0x306   : > { %9328 = vst [vmem:[#allocation28_spill] sm:$0xff] %v7805_v19  ;;  %2289 = vmatmul.bf16.gmra.mxu2 %v6546_v61  ;;  %2388 = vmatmul.bf16.gmra.mxu3 %v9296_v50  ;;  %v1565_v58 = vadd.f32 %v9335_v60, %v1466_v28  ;;  %v9340_v28 = vld [vmem:[#allocation63_spill] sm:$0xff] }
 0x307   : > { %v7817_v26 = vpop.f32.mrf.mxu1 }
 0x308   : > { %9331 = vst [vmem:[#allocation30_spill] sm:$0xff] %v7817_v26  ;;  %v1808_v50 = vadd.f32 %v7507_v20, %v1565_v58 }
 0x309   : > { %v1901_v31 = vpop.f32.mrf.mxu0  ;;  %v2250_v42 = vpop.f32.mrf.mxu2 }
 0x30a   : > { %v7810_v41 = vadd.f32 %v1901_v31, %v1803_v8  ;;  %v2349_v46 = vpop.f32.mrf.mxu3 }
 0x30b   : > { %v7827_v48 = vadd.f32 %v2349_v46, %v2250_v42 }
 0x30c   : > { %9330 = vst [vmem:[#allocation6_spill] sm:$0xff] %v7810_v41 }
 0x30f   : > { %v2013_v31 = vpop.f32.mrf.mxu1 }
 0x311   : > { %v1904_v5 = vpop.f32.mrf.mxu0  ;;  %v2252_v61 = vpop.f32.mrf.mxu2 }
 0x312   : > { %v1905_v32 = vadd.f32 %v1904_v5, %v7500_v44  ;;  %v2351_v15 = vpop.f32.mrf.mxu3  ;;  %v6547_v5 = vld [vmem:[%s6778_s18 + $0x9c] sm:$0xff] }
 0x313   : > { %v7836_v0 = vadd.f32 %v2351_v15, %v2252_v61  ;;  %v9343_v15 = vld [vmem:[#allocation56_spill] sm:$0xff] }
 0x314   : > { %v7829_v8 = vadd.f32 %v2003_v38, %v1905_v32  ;;  %2442 = vmatmul.bf16.gmra.mxu0 %v7362_v21  ;;  %v9338_v21 = vld [vmem:[#allocation57_spill] sm:$0xff] }
 0x315   : > { %v9339_v32 = vld [vmem:[#allocation29_spill] sm:$0xff] }
 0x316   : > { %9334 = vst [vmem:[#allocation7_spill] sm:$0xff] %v7829_v8  ;;  %2294 = vmatmul.bf16.gmra.mxu2 %v6547_v5  ;;  %2393 = vmatmul.bf16.gmra.mxu3 %v9301_v18  ;;  %v1471_v42 = vadd.f32 %v9339_v32, %v9338_v21 }
 0x317   : > { %v7838_v44 = vpop.f32.mrf.mxu1 }
 0x318   : > { %9337 = vst [vmem:[#allocation42_spill] sm:$0xff] %v7838_v44  ;;  %v1570_v5 = vadd.f32 %v9343_v15, %v1471_v42  ;;  %v9344_v44 = vld [vmem:[#allocation64_spill] sm:$0xff] }
 0x319   : > { %v1906_v24 = vpop.f32.mrf.mxu0  ;;  %v2255_v20 = vpop.f32.mrf.mxu2 }
 0x31a   : > { %v7834_v40 = vadd.f32 %v1906_v24, %v1808_v50  ;;  %v2354_v60 = vpop.f32.mrf.mxu3  ;;  %v9342_v24 = vld [vmem:[#allocation58_spill] sm:$0xff]  ;;  %v1813_v18 = vadd.f32 %v9344_v44, %v1570_v5  ;;  %v9347_v44 = vld [vmem:[#allocation60_spill] sm:$0xff] }
 0x31b   : > { %v7845_v58 = vadd.f32 %v2354_v60, %v2255_v20  ;;  %v9348_v20 = vld [vmem:[#allocation31_spill] sm:$0xff] }
 0x31c   : > { %9336 = vst [vmem:[#allocation32_spill] sm:$0xff] %v7834_v40  ;;  %v1476_v60 = vadd.f32 %v9348_v20, %v9347_v44 }
 0x31f   : > { %v2018_v61 = vpop.f32.mrf.mxu1 }
 0x321   : > { %v1909_v38 = vpop.f32.mrf.mxu0  ;;  %v2257_v21 = vpop.f32.mrf.mxu2 }
 0x322   : > { %v1910_v46 = vadd.f32 %v1909_v38, %v9340_v28  ;;  %v2356_v32 = vpop.f32.mrf.mxu3 }
 0x323   : > { %v7854_v38 = vadd.f32 %v2356_v32, %v2257_v21 }
 0x324   : > { %v7847_v50 = vadd.f32 %v2008_v36, %v1910_v46  ;;  %2447 = vmatmul.bf16.gmra.mxu0 %v9342_v24  ;;  %v6319_v36 = vld [vmem:[%s9121_s5 + $0x108] sm:$0xff]  ;;  %v9349_v24 = vld [vmem:[#allocation65_spill] sm:$0xff] }
 0x325   : > { %3781 = vmatpush.bf16.msra.mxu2 %v6319_v36  ;;  %v6548_v46 = vld [vmem:[%s6778_s18 + $0xa8] sm:$0xff]  ;;  %v9351_v36 = vld [vmem:[#allocation61_spill] sm:$0xff] }
 0x326   : > { %9341 = vst [vmem:[#allocation43_spill] sm:$0xff] %v7847_v50  ;;  %2299 = vmatmul.bf16.gmra.mxu2 %v6548_v46  ;;  %2398 = vmatmul.bf16.gmra.mxu3 %v9308_v45  ;;  %v9352_v46 = vld [vmem:[#allocation59_spill] sm:$0xff] }
 0x327   : > { %v7856_v28 = vpop.f32.mrf.mxu1 }
 0x328   : > { %9346 = vst [vmem:[#allocation35_spill] sm:$0xff] %v7856_v28  ;;  %v1575_v28 = vadd.f32 %v9352_v46, %v1476_v60  ;;  %v9357_v60 = vld [vmem:[#allocation11_spill] sm:$0xff]  ;;  %v9360_v46 = vld [vmem:[#allocation33_spill] sm:$0xff] }
 0x329   : > { %v1911_v26 = vpop.f32.mrf.mxu0  ;;  %v2260_v5 = vpop.f32.mrf.mxu2 }
 0x32a   : > { %v7852_v39 = vadd.f32 %v1911_v26, %v1813_v18  ;;  %v6311_v26 = vld [vmem:[%s9121_s5 + $0xc8] sm:$0xff]  ;;  %v2359_v18 = vpop.f32.mrf.mxu3 }
 0x32b   : > { %v7869_v21 = vadd.f32 %v2359_v18, %v2260_v5  ;;  %3692 = vmatpush.bf16.msra.mxu1 %v6311_v26  ;;  %v9355_v26 = vld [vmem:[#allocation62_spill] sm:$0xff] }
 0x32c   : > { %9345 = vst [vmem:[#allocation8_spill] sm:$0xff] %v7852_v39  ;;  %v9353_v39 = vld [vmem:[#allocation66_spill] sm:$0xff] }
 0x32d   : > { %v1818_v50 = vadd.f32 %v9353_v39, %v1575_v28 }
 0x32f   : > { %v2023_v45 = vpop.f32.mrf.mxu1 }
 0x331   : > { %v1914_v42 = vpop.f32.mrf.mxu0  ;;  %v7878_v44 = vpop.f32.mrf.mxu2 }
 0x332   : > { %v1915_v15 = vadd.f32 %v1914_v42, %v9349_v24  ;;  %v7880_v42 = vpop.f32.mrf.mxu3  ;;  %v6549_v24 = vld [vmem:[%s6778_s18 + $0xb4] sm:$0xff] }
 0x334   : > { %v7871_v32 = vadd.f32 %v2013_v31, %v1915_v15  ;;  %2452 = vmatmul.bf16.gmra.mxu0 %v9351_v36  ;;  %v9356_v15 = vld [vmem:[#allocation36_spill] sm:$0xff]  ;;  %v9359_v36 = vld [vmem:[#allocation10_spill] sm:$0xff] }
 0x335   : > { %v1481_v5 = vadd.f32 %v9356_v15, %v9355_v26  ;;  %v9362_v15 = vld [vmem:[#allocation16_spill] sm:$0xff] }
 0x336   : > { %9350 = vst [vmem:[#allocation37_spill] sm:$0xff] %v7871_v32  ;;  %2304 = vmatmul.bf16.gmra.mxu2 %v6549_v24  ;;  %2403 = vmatmul.bf16.gmra.mxu3 %v9314_v29 }
 0x337   : > { %v2025_v20 = vpop.f32.mrf.mxu1  ;;  %v1580_v45 = vadd.f32 %v7716_v54, %v1481_v5  ;;  %v6333_v54 = vld [vmem:[%s9121_s5 + $0x178] sm:$0xff] }
 0x338   : > { %3864 = vmatpush.bf16.msrb.mxu3 %v6333_v54 }
 0x339   : > { %v1916_v40 = vpop.f32.mrf.mxu0  ;;  %v2265_v39 = vpop.f32.mrf.mxu2  ;;  %v1823_v20 = vadd.f32 %v9360_v46, %v1580_v45  ;;  %v516_v45 = vld [vmem:[%s7013_s9 + $0x14] sm:$0x1] }
 0x33a   : > { %v7876_v8 = vadd.f32 %v1916_v40, %v1818_v50  ;;  %v2364_v28 = vpop.f32.mrf.mxu3 }
 0x33b   : > { %v7887_v40 = vadd.f32 %v2364_v28, %v2265_v39  ;;  %v9363_v39 = vld [vmem:[#allocation14_spill] sm:$0xff]  ;;  %v6332_v28 = vld [vmem:[%s9121_s5 + $0x170] sm:$0xff] }
 0x33c   : > { %9354 = vst [vmem:[#allocation45_spill] sm:$0xff] %v7876_v8  ;;  %3865 = vmatpush.bf16.msrb.mxu3 %v6332_v28 }
 0x341   : > { %v1919_v31 = vpop.f32.mrf.mxu0  ;;  %v7896_v8 = vpop.f32.mrf.mxu2 }
 0x342   : > { %v1920_v18 = vadd.f32 %v1919_v31, %v9357_v60  ;;  %v7898_v26 = vpop.f32.mrf.mxu3  ;;  %v6550_v31 = vld [vmem:[%s7013_s9] sm:$0xff] }
 0x344   : > { %v7889_v50 = vadd.f32 %v2018_v61, %v1920_v18  ;;  %2457 = vmatmul.bf16.gmra.mxu0 %v9359_v36 }
 0x346   : > { %9358 = vst [vmem:[#allocation46_spill] sm:$0xff] %v7889_v50  ;;  %2309 = vmatmul.bf16.gmra.mxu2 %v6550_v31  ;;  %2408 = vmatmul.bf16.gmra.mxu3 %v9362_v15  ;;  %v7920_v31 = vld [vmem:[%s7013_s9 + $0xc] sm:$0xff]  ;;  %v686_v15 = vunpack.c.l.b16 %v516_v45  ;;  %s5198_s9 = scalar_lea.sflag [#allocation3], %s397_s21 }
 0x347   : > { %v939_v54 = vshll.u32 %v7920_v31, 16  ;;  %v937_v28 = vshrl.u32 %v7920_v31, 16 }
 0x349   : > { %v1921_v24 = vpop.f32.mrf.mxu0  ;;  %v2270_v60 = vpop.f32.mrf.mxu2 }
 0x34a   : > { %v7894_v29 = vadd.f32 %v1921_v24, %v1823_v20  ;;  %v2369_v18 = vpop.f32.mrf.mxu3  ;;  %v6331_v24 = vld [vmem:[%s9121_s5 + $0x168] sm:$0xff] }
 0x34b   : > { %v7905_v5 = vadd.f32 %v2369_v18, %v2270_v60  ;;  %v6310_v60 = vld [vmem:[%s9121_s5 + $0xc0] sm:$0xff]  ;;  %3866 = vmatpush.bf16.msrb.mxu3 %v6331_v24  ;;  %v7928_v18 = vpack.c.b16 %v686_v15, %v686_v15 }
 0x34c   : > { %9361 = vst [vmem:[#allocation9_spill] sm:$0xff] %v7894_v29  ;;  %3693 = vmatpush.bf16.msra.mxu1 %v6310_v60  ;;  %v6329_v60 = vld [vmem:[%s9121_s5 + $0x158] sm:$0xff] }
 0x34d   : > { %v944_v45 = vshll.u32 %v7928_v18, 16 }
 0x34f   : > { %v946_v24 = vrot.slane %v944_v45, 1 }
 0x351   : > { %v1924_v61 = vpop.f32.mrf.mxu0  ;;  %v7912_v46 = vpop.f32.mrf.mxu2 }
 0x352   : > { %v7914_v20 = vpop.f32.mrf.mxu3  ;;  %v6318_v61 = vld [vmem:[%s9121_s5 + $0x100] sm:$0xff] }
 0x353   : > { %3782 = vmatpush.bf16.msra.mxu2 %v6318_v61 }
 0x354   : > { %2462 = vmatmul.bf16.gmra.mxu0 %v9363_v39  ;;  %v6330_v39 = vld [vmem:[%s9121_s5 + $0x160] sm:$0xff] }
 0x355   : > { %3867 = vmatpush.bf16.msrb.mxu3 %v6330_v39  ;;  %v6328_v39 = vld [vmem:[%s9121_s5 + $0x150] sm:$0xff] }
 0x356   : > { %2314 = vmatmul.bf16.gmra.mxu2 %v7920_v31 }
 0x357   : > { %4186 = vmatpush.bf16.msrb.mxu2 %v6301_v37 }
 0x359   : > { %v1926_v36 = vpop.f32.mrf.mxu0  ;;  %v2275_v50 = vpop.f32.mrf.mxu2  ;;  %3868 = vmatpush.bf16.msrb.mxu3 %v6329_v60  ;;  %v7962_v60 = vld [vmem:[%s9120_s4] ss:$0 sm:$0xff] }
 0x35a   : > { %v941_v36 = vrot.slane %v939_v54, 1  ;;  %v2374_v32 = vpop.f32.mrf.mxu3 }
 0x35b   : > { %v7942_v54 = vadd.f32 %v2374_v32, %v2275_v50 }
 0x35c   : > { %v942_v29 = vor.u32 %v941_v36, %v937_v28 }
 0x35d   : > { %3869 = vmatpush.bf16.msrb.mxu3 %v6328_v39  ;;  %v9365_v39 = vld [vmem:[#allocation19_spill] sm:$0xff] }
 0x35e   : > { %v947_v61 = vsel %vm707_vm0, %v942_v29, %v946_v24  ;;  %v6327_v29 = vld [vmem:[%s9121_s5 + $0x148] sm:$0xff] }
 0x35f   : > { %2413 = vmatmul.bf16.gmra.mxu3 %v947_v61 }
 0x361   : > { %v2428_v15 = vpop.f32.mrf.mxu0  ;;  %v7947_v36 = vpop.f32.mrf.mxu2  ;;  %3870 = vmatpush.bf16.msrb.mxu3 %v6327_v29 }
 0x362   : > { %v7949_v45 = vpop.f32.mrf.mxu3 }
 0x364   : > { %2467 = vmatmul.bf16.gmra.mxu0 %v9364_v62  ;;  %v6326_v62 = vld [vmem:[%s9121_s5 + $0x140] sm:$0xff] }
 0x365   : > { %3871 = vmatpush.bf16.msrb.mxu3 %v6326_v62 }
 0x369   : > { %v2430_v28 = vpop.f32.mrf.mxu0  ;;  %v2280_v24 = vpop.f32.mrf.mxu2 }
 0x36a   : > { %v2379_v15 = vpop.f32.mrf.mxu3 }
 0x36b   : > { %v7967_v62 = vadd.f32 %v2379_v15, %v2280_v24 }
 0x371   : > { %v2433_v32 = vpop.f32.mrf.mxu0  ;;  %v7969_v19 = vpop.f32.mrf.mxu2 }
 0x372   : > { %v2434_v50 = vadd.f32 %v2433_v32, %v7761_v34  ;;  %9366 = vst [vmem:[#allocation41_spill] sm:$0xff] %v7969_v19  ;;  %v7971_v34 = vpop.f32.mrf.mxu3 }
 0x373   : > { %9367 = vst [vmem:[#allocation48_spill] sm:$0xff] %v7971_v34 }
 0x374   : > { %v2520_v61 = vadd.f32 %v2434_v50, %v7604_v57  ;;  %2472 = vmatmul.bf16.gmra.mxu0 %v9365_v39  ;;  %v9368_v57 = vld [vmem:[#allocation38_spill] sm:$0xff] }
 0x376   : > { %v2560_v28 = vadd.f32 %v7962_v60, %v2520_v61 }
 0x378   : > { %v2596_v32 = vmax.f32 %v2560_v28, 0.0 }
 0x379   : > { %v2435_v29 = vpop.f32.mrf.mxu0  ;;  %v2285_v15 = vpop.f32.mrf.mxu2 }
 0x37a   : > { %v2436_v41 = vadd.f32 %v2435_v29, %v7776_v47  ;;  %v2778_v61 = vpack.c.bf16 %v2596_v32, %v2596_v32  ;;  %v2384_v29 = vpop.f32.mrf.mxu3 }
 0x37c   : > { %v2521_v50 = vadd.f32 %v2436_v41, %v9368_v57  ;;  %v2850_v13 = vunpack.c.l.b16 %v2778_v61 }
 0x37e   : > { %v2561_v39 = vadd.f32 %v7962_v60, %v2521_v50 }
 0x380   : > { %v2597_v51 = vmax.f32 %v2561_v39, 0.0 }
 0x381   : > { %v2438_v23 = vpop.f32.mrf.mxu0 }
 0x382   : > { %v2779_v47 = vpack.c.bf16 %v2597_v51, %v2597_v51  ;;  %v2439_v24 = vadd.f32 %v2438_v23, %v7785_v9 }
 0x384   : > { %v2851_v34 = vunpack.c.l.b16 %v2779_v47  ;;  %v2522_v28 = vadd.f32 %v2439_v24, %v7625_v55  ;;  %2477 = vmatmul.bf16.gmra.mxu0 %v9289_v59  ;;  %v6293_v55 = vld [vmem:[%s9121_s5 + $0x38] sm:$0xff]  ;;  %v7990_v59 = vadd.f32 %v2384_v29, %v2285_v15 }
 0x385   : > { %4097 = vmatpush.bf16.msrb.mxu1 %v6293_v55 }
 0x386   : > { %v2885_v41 = vpack.c.b16 %v2851_v34, %v2850_v13  ;;  %v2562_v57 = vadd.f32 %v7962_v60, %v2522_v28  ;;  %9371 = vst [vmem:[#allocation49_spill] sm:$0xff] %v7990_v59  ;;  %v7992_v13 = vpop.f32.mrf.mxu2  ;;  %v7994_v34 = vpop.f32.mrf.mxu3 }
 0x387   : > { %9372 = vst [vmem:[#allocation12_spill] sm:$0xff] %v7992_v13 }
 0x388   : > { %v2910_v37 = vshrl.u32 %v2885_v41, 16  ;;  %v2913_v51 = vshll.u32 %v2885_v41, 16  ;;  %9373 = vst [vmem:[#allocation44_spill] sm:$0xff] %v7994_v34  ;;  %v2598_v39 = vmax.f32 %v2562_v57, 0.0 }
 0x389   : > { %v2440_v32 = vpop.f32.mrf.mxu0 }
 0x38a   : > { %v2441_v9 = vadd.f32 %v2440_v32, %v7794_v53  ;;  %v2912_v23 = vrot.slane %v2910_v37, 7 }
 0x38c   : > { %v2523_v61 = vadd.f32 %v2441_v9, %v7631_v4  ;;  %v2915_v47 = vor.u32 %v2913_v51, %v2912_v23  ;;  %v3086_v24 = vsel %vm7982_vm4, %v2912_v23, 0  ;;  %v2780_v4 = vpack.c.bf16 %v2598_v39, %v2598_v39 }
 0x38d   : > { %v3377_v41 = vrot.slane %v3086_v24, 1  ;;  %v3123_v57 = vshll.u32 %v3086_v24, 16 }
 0x38e   : > { %v2563_v53 = vadd.f32 %v7962_v60, %v2523_v61  ;;  %v8002_v28 = vsel %vm7982_vm4, 0, %v2915_v47  ;;  %v2290_v47 = vpop.f32.mrf.mxu2  ;;  %v2389_v34 = vpop.f32.mrf.mxu3  ;;  %v2852_v19 = vunpack.c.l.b16 %v2780_v4 }
 0x38f   : > { %v3118_v15 = vshll.u32 %v8002_v28, 16  ;;  %3694 = vmatmul.bf16.vlgmr.msra.gmra.mxu1 %v8002_v28  ;;  %v3376_v29 = vrot.slane %v8002_v28, 1  ;;  %v3116_v32 = vshrl.u32 %v8002_v28, 16  ;;  %v3125_v59 = vrot.slane %v3123_v57, 1 }
 0x390   : > { %v2599_v37 = vmax.f32 %v2563_v53, 0.0  ;;  %v8021_v4 = vadd.f32 %v2389_v34, %v2290_v47 }
 0x391   : > { %v2443_v9 = vpop.f32.mrf.mxu0  ;;  %v8009_v23 = vsel %vm968_vm1, %v3376_v29, %v3377_v41  ;;  %v3120_v51 = vrot.slane %v3118_v15, 1 }
 0x392   : > { %v2781_v55 = vpack.c.bf16 %v2599_v37, %v2599_v37  ;;  %v2444_v61 = vadd.f32 %v2443_v9, %v7803_v6  ;;  %3872 = vmatmul.bf16.vlgmr.msrb.gmra.mxu3 %v8009_v23 }
 0x393   : > { %v3121_v13 = vor.u32 %v3120_v51, %v3116_v32  ;;  %v6300_v51 = vld [vmem:[%s9121_s5 + $0x70] sm:$0xff] }
 0x394   : > { %v2853_v24 = vunpack.c.l.b16 %v2781_v55  ;;  %v2524_v39 = vadd.f32 %v2444_v61, %v7637_v11  ;;  %2482 = vmatmul.bf16.gmra.mxu0 %v9291_v25  ;;  %4187 = vmatpush.bf16.msrb.mxu2 %v6300_v51 }
 0x395   : > { %v8016_v53 = vsel %vm707_vm0, %v3121_v13, %v3125_v59 }
 0x396   : > { %9374 = vst [vmem:[#allocation51_spill] sm:$0xff] %v8016_v53  ;;  %v2886_v29 = vpack.c.b16 %v2853_v24, %v2852_v19  ;;  %3783 = vmatmul.bf16.vlgmr.msra.gmra.mxu2 %v8016_v53  ;;  %v2564_v6 = vadd.f32 %v7962_v60, %v2524_v39  ;;  %v8023_v32 = vpop.f32.mrf.mxu2  ;;  %v8025_v11 = vpop.f32.mrf.mxu3 }
 0x398   : > { %v2917_v15 = vshrl.u32 %v2886_v29, 16  ;;  %v2920_v9 = vshll.u32 %v2886_v29, 16  ;;  %v2600_v25 = vmax.f32 %v2564_v6, 0.0 }
 0x399   : > { %v2445_v41 = vpop.f32.mrf.mxu0 }
 0x39a   : > { %v2919_v37 = vrot.slane %v2917_v15, 7  ;;  %v2446_v57 = vadd.f32 %v2445_v41, %v7815_v30  ;;  %v2782_v24 = vpack.c.bf16 %v2600_v25, %v2600_v25 }
 0x39c   : > { %v2525_v59 = vadd.f32 %v2446_v57, %v7646_v22  ;;  %v2922_v19 = vor.u32 %v2920_v9, %v2919_v37  ;;  %v3087_v13 = vsel %vm7982_vm4, %v2919_v37, 0  ;;  %v2854_v53 = vunpack.c.l.b16 %v2782_v24 }
 0x39d   : > { %v3380_v22 = vrot.slane %v3087_v13, 1  ;;  %v3135_v47 = vshll.u32 %v3087_v13, 16 }
 0x39e   : > { %v2565_v55 = vadd.f32 %v7962_v60, %v2525_v59  ;;  %v8036_v30 = vsel %vm7982_vm4, 0, %v2922_v19  ;;  %v2295_v57 = vpop.f32.mrf.mxu2  ;;  %v2394_v59 = vpop.f32.mrf.mxu3 }
 0x39f   : > { %3699 = vmatmul.bf16.gmra.mxu1 %v8036_v30  ;;  %v3379_v34 = vrot.slane %v8036_v30, 1  ;;  %v3130_v61 = vshll.u32 %v8036_v30, 16  ;;  %v3128_v6 = vshrl.u32 %v8036_v30, 16  ;;  %v3137_v51 = vrot.slane %v3135_v47, 1 }
 0x3a0   : > { %v2601_v39 = vmax.f32 %v2565_v55, 0.0  ;;  %v8058_v24 = vadd.f32 %v2394_v59, %v2295_v57 }
 0x3a1   : > { %v2448_v29 = vpop.f32.mrf.mxu0  ;;  %v8042_v15 = vsel %vm968_vm1, %v3379_v34, %v3380_v22  ;;  %v3132_v41 = vrot.slane %v3130_v61, 1 }
 0x3a2   : > { %v2783_v37 = vpack.c.bf16 %v2601_v39, %v2601_v39  ;;  %v2449_v9 = vadd.f32 %v2448_v29, %v7827_v48  ;;  %3877 = vmatmul.bf16.gmra.mxu3 %v8042_v15 }
 0x3a3   : > { %v3133_v19 = vor.u32 %v3132_v41, %v3128_v6 }
 0x3a4   : > { %v2855_v13 = vunpack.c.l.b16 %v2783_v37  ;;  %v2526_v25 = vadd.f32 %v2449_v9, %v7658_v33  ;;  %2487 = vmatmul.bf16.gmra.mxu0 %v9293_v12  ;;  %v6292_v33 = vld [vmem:[%s9121_s5 + $0x30] sm:$0xff] }
 0x3a5   : > { %v8050_v55 = vsel %vm707_vm0, %v3133_v19, %v3137_v51  ;;  %4098 = vmatpush.bf16.msrb.mxu1 %v6292_v33 }
 0x3a6   : > { %9375 = vst [vmem:[#allocation47_spill] sm:$0xff] %v8050_v55  ;;  %v2887_v34 = vpack.c.b16 %v2855_v13, %v2854_v53  ;;  %3788 = vmatmul.bf16.gmra.mxu2 %v8050_v55  ;;  %v2566_v48 = vadd.f32 %v7962_v60, %v2526_v25  ;;  %v8060_v12 = vpop.f32.mrf.mxu2  ;;  %v8062_v6 = vpop.f32.mrf.mxu3 }
 0x3a8   : > { %v2924_v22 = vshrl.u32 %v2887_v34, 16  ;;  %v2927_v29 = vshll.u32 %v2887_v34, 16  ;;  %v2602_v53 = vmax.f32 %v2566_v48, 0.0 }
 0x3a9   : > { %v2450_v61 = vpop.f32.mrf.mxu0 }
 0x3aa   : > { %v2926_v39 = vrot.slane %v2924_v22, 7  ;;  %v2451_v47 = vadd.f32 %v2450_v61, %v7836_v0 }
 0x3ac   : > { %v2527_v41 = vadd.f32 %v2451_v47, %v7664_v49  ;;  %v2929_v37 = vor.u32 %v2927_v29, %v2926_v39  ;;  %v3088_v9 = vsel %vm7982_vm4, %v2926_v39, 0  ;;  %v2784_v49 = vpack.c.bf16 %v2602_v53, %v2602_v53 }
 0x3ad   : > { %v3383_v59 = vrot.slane %v3088_v9, 1  ;;  %v3147_v13 = vshll.u32 %v3088_v9, 16 }
 0x3ae   : > { %v2567_v0 = vadd.f32 %v7962_v60, %v2527_v41  ;;  %v8070_v19 = vsel %vm7982_vm4, 0, %v2929_v37  ;;  %v2300_v47 = vpop.f32.mrf.mxu2  ;;  %v2399_v33 = vpop.f32.mrf.mxu3  ;;  %v2856_v55 = vunpack.c.l.b16 %v2784_v49 }
 0x3af   : > { %3704 = vmatmul.bf16.gmra.mxu1 %v8070_v19  ;;  %v3382_v57 = vrot.slane %v8070_v19, 1  ;;  %v3142_v51 = vshll.u32 %v8070_v19, 16  ;;  %v3140_v48 = vshrl.u32 %v8070_v19, 16  ;;  %v3149_v37 = vrot.slane %v3147_v13, 1 }
 0x3b0   : > { %v2603_v25 = vmax.f32 %v2567_v0, 0.0  ;;  %v8089_v49 = vadd.f32 %v2399_v33, %v2300_v47 }
 0x3b1   : > { %v2453_v34 = vpop.f32.mrf.mxu0  ;;  %v8076_v22 = vsel %vm968_vm1, %v3382_v57, %v3383_v59  ;;  %v3144_v61 = vrot.slane %v3142_v51, 1 }
 0x3b2   : > { %v2785_v39 = vpack.c.bf16 %v2603_v25, %v2603_v25  ;;  %v2454_v29 = vadd.f32 %v2453_v34, %v7845_v58  ;;  %3882 = vmatmul.bf16.gmra.mxu3 %v8076_v22 }
 0x3b3   : > { %v3145_v41 = vor.u32 %v3144_v61, %v3140_v48 }
 0x3b4   : > { %v2857_v9 = vunpack.c.l.b16 %v2785_v39  ;;  %v2528_v53 = vadd.f32 %v2454_v29, %v7672_v63  ;;  %2492 = vmatmul.bf16.gmra.mxu0 %v9295_v7  ;;  %v6299_v29 = vld [vmem:[%s9121_s5 + $0x68] sm:$0xff] }
 0x3b5   : > { %v8084_v0 = vsel %vm707_vm0, %v3145_v41, %v3149_v37  ;;  %4188 = vmatpush.bf16.msrb.mxu2 %v6299_v29 }
 0x3b6   : > { %9376 = vst [vmem:[#allocation52_spill] sm:$0xff] %v8084_v0  ;;  %v2888_v57 = vpack.c.b16 %v2857_v9, %v2856_v55  ;;  %3793 = vmatmul.bf16.gmra.mxu2 %v8084_v0  ;;  %v2568_v58 = vadd.f32 %v7962_v60, %v2528_v53  ;;  %v8091_v48 = vpop.f32.mrf.mxu2  ;;  %v8093_v63 = vpop.f32.mrf.mxu3 }
 0x3b8   : > { %v2931_v59 = vshrl.u32 %v2888_v57, 16  ;;  %v2934_v34 = vshll.u32 %v2888_v57, 16  ;;  %v2604_v7 = vmax.f32 %v2568_v58, 0.0 }
 0x3b9   : > { %v2455_v51 = vpop.f32.mrf.mxu0 }
 0x3ba   : > { %v2933_v25 = vrot.slane %v2931_v59, 7  ;;  %v2456_v13 = vadd.f32 %v2455_v51, %v7854_v38  ;;  %v2786_v9 = vpack.c.bf16 %v2604_v7, %v2604_v7 }
 0x3bc   : > { %v2529_v61 = vadd.f32 %v2456_v13, %v7678_v56  ;;  %v2936_v55 = vor.u32 %v2934_v34, %v2933_v25  ;;  %v3089_v39 = vsel %vm7982_vm4, %v2933_v25, 0  ;;  %v2858_v0 = vunpack.c.l.b16 %v2786_v9 }
 0x3bd   : > { %v3386_v56 = vrot.slane %v3089_v39, 1  ;;  %v3159_v37 = vshll.u32 %v3089_v39, 16 }
 0x3be   : > { %v2569_v41 = vadd.f32 %v7962_v60, %v2529_v61  ;;  %v8104_v38 = vsel %vm7982_vm4, 0, %v2936_v55  ;;  %v2305_v13 = vpop.f32.mrf.mxu2  ;;  %v2404_v61 = vpop.f32.mrf.mxu3 }
 0x3bf   : > { %3709 = vmatmul.bf16.gmra.mxu1 %v8104_v38  ;;  %v3385_v47 = vrot.slane %v8104_v38, 1  ;;  %v3154_v33 = vshll.u32 %v8104_v38, 16  ;;  %v3152_v58 = vshrl.u32 %v8104_v38, 16  ;;  %v3161_v29 = vrot.slane %v3159_v37, 1 }
 0x3c0   : > { %v2605_v53 = vmax.f32 %v2569_v41, 0.0  ;;  %v6341_v41 = vld [vmem:[%s9121_s5 + $0x1b8] sm:$0xff] }
 0x3c1   : > { %v2458_v57 = vpop.f32.mrf.mxu0  ;;  %v8110_v59 = vsel %vm968_vm1, %v3385_v47, %v3386_v56  ;;  %v3156_v51 = vrot.slane %v3154_v33, 1  ;;  %4557 = vmatpush.bf16.msra.mxu0 %v6341_v41  ;;  %v2362_v56 = vadd.f32 %v7880_v42, %v7878_v44 }
 0x3c2   : > { %v2787_v25 = vpack.c.bf16 %v2605_v53, %v2605_v53  ;;  %v2459_v34 = vadd.f32 %v2458_v57, %v7869_v21  ;;  %3887 = vmatmul.bf16.gmra.mxu3 %v8110_v59 }
 0x3c3   : > { %v3157_v55 = vor.u32 %v3156_v51, %v3152_v58  ;;  %v6291_v58 = vld [vmem:[%s9121_s5 + $0x28] sm:$0xff]  ;;  %v8135_v51 = vadd.f32 %v2404_v61, %v2305_v13 }
 0x3c4   : > { %v2859_v39 = vunpack.c.l.b16 %v2787_v25  ;;  %v2530_v7 = vadd.f32 %v2459_v34, %v7695_v52  ;;  %2497 = vmatmul.bf16.gmra.mxu0 %v9297_v14  ;;  %v6340_v52 = vld [vmem:[%s9121_s5 + $0x1b0] sm:$0xff]  ;;  %v1971_v14 = vadd.f32 %v7666_v27, %v7701_v2  ;;  %4099 = vmatpush.bf16.msrb.mxu1 %v6291_v58  ;;  %v6339_v2 = vld [vmem:[%s9121_s5 + $0x1a8] sm:$0xff] }
 0x3c5   : > { %v8121_v47 = vsel %vm707_vm0, %v3157_v55, %v3161_v29  ;;  %4558 = vmatpush.bf16.msra.mxu0 %v6340_v52 }
 0x3c6   : > { %v2889_v21 = vpack.c.b16 %v2859_v39, %v2858_v0  ;;  %3798 = vmatmul.bf16.gmra.mxu2 %v8121_v47  ;;  %v2570_v37 = vadd.f32 %v7962_v60, %v2530_v7  ;;  %v8137_v44 = vpop.f32.mrf.mxu2  ;;  %v8139_v42 = vpop.f32.mrf.mxu3 }
 0x3c8   : > { %v2938_v33 = vshrl.u32 %v2889_v21, 16  ;;  %v2941_v57 = vshll.u32 %v2889_v21, 16  ;;  %v2606_v25 = vmax.f32 %v2570_v37, 0.0 }
 0x3c9   : > { %v2460_v9 = vpop.f32.mrf.mxu0  ;;  %4559 = vmatpush.bf16.msra.mxu0 %v6339_v2 }
 0x3ca   : > { %v2940_v53 = vrot.slane %v2938_v33, 7  ;;  %v2461_v0 = vadd.f32 %v2460_v9, %v2362_v56  ;;  %v2788_v21 = vpack.c.bf16 %v2606_v25, %v2606_v25  ;;  %v6338_v33 = vld [vmem:[%s9121_s5 + $0x1a0] sm:$0xff] }
 0x3cc   : > { %v2531_v34 = vadd.f32 %v2461_v0, %v1971_v14  ;;  %v2943_v55 = vor.u32 %v2941_v57, %v2940_v53  ;;  %v3090_v27 = vsel %vm7982_vm4, %v2940_v53, 0 }
 0x3cd   : > { %v3389_v39 = vrot.slane %v3090_v27, 1  ;;  %v3171_v41 = vshll.u32 %v3090_v27, 16  ;;  %4560 = vmatpush.bf16.msra.mxu0 %v6338_v33 }
 0x3ce   : > { %v2571_v29 = vadd.f32 %v7962_v60, %v2531_v34  ;;  %v8149_v13 = vsel %vm7982_vm4, 0, %v2943_v55  ;;  %v2310_v0 = vpop.f32.mrf.mxu2  ;;  %v2860_v34 = vunpack.c.l.b16 %v2788_v21  ;;  %v2409_v2 = vpop.f32.mrf.mxu3 }
 0x3cf   : > { %3714 = vmatmul.bf16.gmra.mxu1 %v8149_v13  ;;  %v3388_v61 = vrot.slane %v8149_v13, 1  ;;  %v3166_v7 = vshll.u32 %v8149_v13, 16  ;;  %v3164_v14 = vshrl.u32 %v8149_v13, 16  ;;  %v3173_v25 = vrot.slane %v3171_v41, 1 }
 0x3d0   : > { %v2607_v56 = vmax.f32 %v2571_v29, 0.0  ;;  %v6337_v29 = vld [vmem:[%s9121_s5 + $0x198] sm:$0xff]  ;;  %v1976_v41 = vadd.f32 %v7680_v3, %v7718_v35  ;;  %v6335_v3 = vld [vmem:[%s9121_s5 + $0x188] sm:$0xff] }
 0x3d1   : > { %v2463_v37 = vpop.f32.mrf.mxu0  ;;  %v8158_v52 = vsel %vm968_vm1, %v3388_v61, %v3389_v39  ;;  %v3168_v9 = vrot.slane %v3166_v7, 1  ;;  %4561 = vmatpush.bf16.msra.mxu0 %v6337_v29  ;;  %v2367_v39 = vadd.f32 %v7898_v26, %v7896_v8 }
 0x3d2   : > { %v2789_v53 = vpack.c.bf16 %v2607_v56, %v2607_v56  ;;  %v2464_v57 = vadd.f32 %v2463_v37, %v7887_v40  ;;  %3892 = vmatmul.bf16.gmra.mxu3 %v8158_v52 }
 0x3d3   : > { %v3169_v58 = vor.u32 %v3168_v9, %v3164_v14  ;;  %v8180_v14 = vadd.f32 %v2409_v2, %v2310_v0 }
 0x3d4   : > { %v2861_v55 = vunpack.c.l.b16 %v2789_v53  ;;  %v2532_v27 = vadd.f32 %v2464_v57, %v7710_v43  ;;  %2502 = vmatmul.bf16.gmra.mxu0 %v9303_v17  ;;  %v6336_v17 = vld [vmem:[%s9121_s5 + $0x190] sm:$0xff] }
 0x3d5   : > { %v8169_v61 = vsel %vm707_vm0, %v3169_v58, %v3173_v25  ;;  %4562 = vmatpush.bf16.msra.mxu0 %v6336_v17  ;;  %v6298_v58 = vld [vmem:[%s9121_s5 + $0x60] sm:$0xff] }
 0x3d6   : > { %v2890_v40 = vpack.c.b16 %v2861_v55, %v2860_v34  ;;  %3803 = vmatmul.bf16.gmra.mxu2 %v8169_v61  ;;  %v2572_v43 = vadd.f32 %v7962_v60, %v2532_v27  ;;  %v8182_v9 = vpop.f32.mrf.mxu2  ;;  %v8197_v25 = vpop.f32.mrf.mxu3 }
 0x3d7   : > { %4189 = vmatpush.bf16.msrb.mxu2 %v6298_v58 }
 0x3d8   : > { %v2945_v7 = vshrl.u32 %v2890_v40, 16  ;;  %v2948_v33 = vshll.u32 %v2890_v40, 16  ;;  %v2608_v8 = vmax.f32 %v2572_v43, 0.0 }
 0x3d9   : > { %v2465_v21 = vpop.f32.mrf.mxu0  ;;  %4563 = vmatpush.bf16.msra.mxu0 %v6335_v3  ;;  %v9378_v3 = vld [vmem:[#allocation34_spill] sm:$0xff] }
 0x3da   : > { %v2947_v56 = vrot.slane %v2945_v7, 7  ;;  %v2466_v37 = vadd.f32 %v2465_v21, %v2367_v39  ;;  %v2790_v29 = vpack.c.bf16 %v2608_v8, %v2608_v8  ;;  %v6334_v39 = vld [vmem:[%s9121_s5 + $0x180] sm:$0xff] }
 0x3dc   : > { %v2533_v26 = vadd.f32 %v2466_v37, %v1976_v41  ;;  %v2950_v53 = vor.u32 %v2948_v33, %v2947_v56  ;;  %v3091_v57 = vsel %vm7982_vm4, %v2947_v56, 0 }
 0x3dd   : > { %v3392_v55 = vrot.slane %v3091_v57, 1  ;;  %v3183_v2 = vshll.u32 %v3091_v57, 16  ;;  %4564 = vmatpush.bf16.msra.mxu0 %v6334_v39  ;;  %v9377_v57 = vld [vmem:[#allocation40_spill] sm:$0xff]  ;;  %v9380_v39 = vld [vmem:[#allocation15_spill] sm:$0xff] }
 0x3de   : > { %v2573_v35 = vadd.f32 %v7962_v60, %v2533_v26  ;;  %v8195_v0 = vsel %vm7982_vm4, 0, %v2950_v53  ;;  %v2315_v33 = vpop.f32.mrf.mxu2  ;;  %v2862_v26 = vunpack.c.l.b16 %v2790_v29  ;;  %v9379_v29 = vld [vmem:[#allocation13_spill] sm:$0xff] }
 0x3df   : > { %3719 = vmatmul.bf16.gmra.mxu1 %v8195_v0  ;;  %v3391_v34 = vrot.slane %v8195_v0, 1  ;;  %v3178_v27 = vshll.u32 %v8195_v0, 16  ;;  %v3176_v17 = vshrl.u32 %v8195_v0, 16  ;;  %v3185_v8 = vrot.slane %v3183_v2, 1 }
 0x3e0   : > { %v2609_v40 = vmax.f32 %v2573_v35, 0.0 }
 0x3e1   : > { %v2468_v7 = vpop.f32.mrf.mxu0  ;;  %v8206_v43 = vsel %vm968_vm1, %v3391_v34, %v3392_v55  ;;  %v3180_v41 = vrot.slane %v3178_v27, 1 }
 0x3e2   : > { %v2791_v21 = vpack.c.bf16 %v2609_v40, %v2609_v40  ;;  %v2469_v56 = vadd.f32 %v2468_v7, %v7905_v5  ;;  %3897 = vmatmul.bf16.gmra.mxu3 %v8206_v43  ;;  %v2414_v55 = vpop.f32.mrf.mxu3  ;;  %v2372_v5 = vadd.f32 %v7914_v20, %v7912_v46  ;;  %v1981_v7 = vadd.f32 %v9380_v39, %v9379_v29 }
 0x3e3   : > { %v3181_v37 = vor.u32 %v3180_v41, %v3176_v17  ;;  %v1026_v20 = vrot.slane %v7920_v31, 1 }
 0x3e4   : > { %v2863_v53 = vunpack.c.l.b16 %v2791_v21  ;;  %v2534_v58 = vadd.f32 %v2469_v56, %v9377_v57  ;;  %2507 = vmatmul.bf16.gmra.mxu0 %v9378_v3  ;;  %v6290_v56 = vld [vmem:[%s9121_s5 + $0x20] sm:$0xff] }
 0x3e5   : > { %v8214_v35 = vsel %vm707_vm0, %v3181_v37, %v3185_v8  ;;  %4100 = vmatpush.bf16.msrb.mxu1 %v6290_v56 }
 0x3e6   : > { %v2891_v34 = vpack.c.b16 %v2863_v53, %v2862_v26  ;;  %3808 = vmatmul.bf16.gmra.mxu2 %v8214_v35  ;;  %v2574_v40 = vadd.f32 %v7962_v60, %v2534_v58  ;;  %v2317_v33 = vpop.f32.mrf.mxu2  ;;  %v1027_v53 = vrot.slane %v7928_v18, 1 }
 0x3e8   : > { %v2952_v27 = vshrl.u32 %v2891_v34, 16  ;;  %v2955_v41 = vshll.u32 %v2891_v34, 16  ;;  %v2610_v37 = vmax.f32 %v2574_v40, 0.0  ;;  %v1028_v29 = vsel %vm968_vm1, %v1026_v20, %v1027_v53 }
 0x3e9   : > { %v2470_v2 = vpop.f32.mrf.mxu0  ;;  %v2377_v20 = vadd.f32 %v7949_v45, %v7947_v36  ;;  %v6297_v36 = vld [vmem:[%s9121_s5 + $0x58] sm:$0xff] }
 0x3ea   : > { %v2954_v17 = vrot.slane %v2952_v27, 7  ;;  %v2471_v21 = vadd.f32 %v2470_v2, %v2372_v5  ;;  %v2416_v3 = vpop.f32.mrf.mxu3  ;;  %v2792_v40 = vpack.c.bf16 %v2610_v37, %v2610_v37  ;;  %4190 = vmatpush.bf16.msrb.mxu2 %v6297_v36  ;;  %v9385_v36 = vld [vmem:[#allocation23_spill] sm:$0xff] }
 0x3eb   : > { %v9381_v3 = vld [vmem:[#allocation39_spill] sm:$0xff] }
 0x3ec   : > { %v2535_v8 = vadd.f32 %v2471_v21, %v1981_v7  ;;  %v2957_v26 = vor.u32 %v2955_v41, %v2954_v17  ;;  %v3092_v46 = vsel %vm7982_vm4, %v2954_v17, 0  ;;  %v2864_v33 = vunpack.c.l.b16 %v2792_v40 }
 0x3ed   : > { %v3395_v55 = vrot.slane %v3092_v46, 1  ;;  %v3195_v27 = vshll.u32 %v3092_v46, 16 }
 0x3ee   : > { %v2575_v57 = vadd.f32 %v7962_v60, %v2535_v8  ;;  %v8232_v58 = vsel %vm7982_vm4, 0, %v2957_v26 }
 0x3ef   : > { %3724 = vmatmul.bf16.gmra.mxu1 %v8232_v58  ;;  %v3394_v34 = vrot.slane %v8232_v58, 1  ;;  %v3190_v5 = vshll.u32 %v8232_v58, 16  ;;  %v3188_v39 = vshrl.u32 %v8232_v58, 16  ;;  %v3197_v56 = vrot.slane %v3195_v27, 1 }
 0x3f0   : > { %v2611_v2 = vmax.f32 %v2575_v57, 0.0 }
 0x3f1   : > { %v2473_v31 = vpop.f32.mrf.mxu0  ;;  %v8238_v18 = vsel %vm968_vm1, %v3394_v34, %v3395_v55  ;;  %v3192_v7 = vrot.slane %v3190_v5, 1  ;;  %v1986_v34 = vadd.f32 %v9381_v3, %v7752_v10 }
 0x3f2   : > { %v2793_v17 = vpack.c.bf16 %v2611_v2, %v2611_v2  ;;  %v2474_v41 = vadd.f32 %v2473_v31, %v7942_v54  ;;  %3902 = vmatmul.bf16.gmra.mxu3 %v8238_v18 }
 0x3f3   : > { %v3193_v21 = vor.u32 %v3192_v7, %v3188_v39 }
 0x3f4   : > { %v2865_v8 = vunpack.c.l.b16 %v2793_v17  ;;  %v2536_v37 = vadd.f32 %v2474_v41, %v7747_v1  ;;  %2512 = vmatmul.bf16.gmra.mxu0 %v1028_v29 }
 0x3f5   : > { %v8246_v26 = vsel %vm707_vm0, %v3193_v21, %v3197_v56 }
 0x3f6   : > { %v2892_v46 = vpack.c.b16 %v2865_v8, %v2864_v33  ;;  %3813 = vmatmul.bf16.gmra.mxu2 %v8246_v26  ;;  %v2576_v54 = vadd.f32 %v7962_v60, %v2536_v37 }
 0x3f8   : > { %v2959_v53 = vshrl.u32 %v2892_v46, 16  ;;  %v2962_v5 = vshll.u32 %v2892_v46, 16  ;;  %v2612_v27 = vmax.f32 %v2576_v54, 0.0 }
 0x3f9   : > { %v2475_v57 = vpop.f32.mrf.mxu0 }
 0x3fa   : > { %v2961_v55 = vrot.slane %v2959_v53, 7  ;;  %v2476_v1 = vadd.f32 %v2475_v57, %v2377_v20  ;;  %v2794_v41 = vpack.c.bf16 %v2612_v27, %v2612_v27  ;;  %v9384_v27 = vld [vmem:[#allocation48_spill] sm:$0xff] }
 0x3fc   : > { %v2537_v40 = vadd.f32 %v2476_v1, %v1986_v34  ;;  %v2964_v2 = vor.u32 %v2962_v5, %v2961_v55  ;;  %v3093_v31 = vsel %vm7982_vm4, %v2961_v55, 0  ;;  %v2866_v57 = vunpack.c.l.b16 %v2794_v41  ;;  %v9383_v1 = vld [vmem:[#allocation41_spill] sm:$0xff] }
 0x3fd   : > { %v3398_v39 = vrot.slane %v3093_v31, 1  ;;  %v3207_v17 = vshll.u32 %v3093_v31, 16 }
 0x3fe   : > { %v2577_v45 = vadd.f32 %v7962_v60, %v2537_v40  ;;  %v8262_v29 = vsel %vm7982_vm4, 0, %v2964_v2  ;;  %v2382_v40 = vadd.f32 %v9384_v27, %v9383_v1 }
 0x3ff   : > { %3729 = vmatmul.bf16.gmra.mxu1 %v8262_v29  ;;  %v3397_v10 = vrot.slane %v8262_v29, 1  ;;  %v3202_v7 = vshll.u32 %v8262_v29, 16  ;;  %v3200_v8 = vshrl.u32 %v8262_v29, 16  ;;  %v3209_v54 = vrot.slane %v3207_v17, 1  ;;  %v6289_v17 = vld [vmem:[%s9121_s5 + $0x18] sm:$0xff] }
 0x400   : > { %v2613_v21 = vmax.f32 %v2577_v45, 0.0  ;;  %v9386_v45 = vld [vmem:[#allocation18_spill] sm:$0xff]  ;;  %4101 = vmatpush.bf16.msrb.mxu1 %v6289_v17 }
 0x401   : > { %v2478_v56 = vpop.f32.mrf.mxu0  ;;  %v8268_v33 = vsel %vm968_vm1, %v3397_v10, %v3398_v39  ;;  %v3204_v37 = vrot.slane %v3202_v7, 1  ;;  %v1991_v10 = vadd.f32 %v9386_v45, %v9385_v36 }
 0x402   : > { %v2795_v46 = vpack.c.bf16 %v2613_v21, %v2613_v21  ;;  %v2479_v20 = vadd.f32 %v2478_v56, %v7967_v62  ;;  %3907 = vmatmul.bf16.gmra.mxu3 %v8268_v33 }
 0x403   : > { %v3205_v53 = vor.u32 %v3204_v37, %v3200_v8 }
 0x404   : > { %v2867_v3 = vunpack.c.l.b16 %v2795_v46  ;;  %v2538_v34 = vadd.f32 %v2479_v20, %v7763_v16  ;;  %4565 = vmatmul.bf16.vlgmr.msra.gmra.mxu0 %v8036_v30 }
 0x405   : > { %v8276_v55 = vsel %vm707_vm0, %v3205_v53, %v3209_v54 }
 0x406   : > { %9382 = vst [vmem:[#allocation21_spill] sm:$0xff] %v8276_v55  ;;  %v2893_v5 = vpack.c.b16 %v2867_v3, %v2866_v57  ;;  %3818 = vmatmul.bf16.gmra.mxu2 %v8276_v55  ;;  %v2578_v2 = vadd.f32 %v7962_v60, %v2538_v34 }
 0x408   : > { %v2966_v62 = vshrl.u32 %v2893_v5, 16  ;;  %v2969_v16 = vshll.u32 %v2893_v5, 16  ;;  %v2614_v41 = vmax.f32 %v2578_v2, 0.0 }
 0x409   : > { %v2480_v31 = vpop.f32.mrf.mxu0 }
 0x40a   : > { %v2968_v39 = vrot.slane %v2966_v62, 7  ;;  %v2481_v7 = vadd.f32 %v2480_v31, %v2382_v40  ;;  %v2796_v34 = vpack.c.bf16 %v2614_v41, %v2614_v41  ;;  %v9388_v31 = vld [vmem:[#allocation49_spill] sm:$0xff] }
 0x40c   : > { %v2539_v21 = vadd.f32 %v2481_v7, %v1991_v10  ;;  %v3695_v56 = vpop.f32.mrf.mxu1  ;;  %v2971_v8 = vor.u32 %v2969_v16, %v2968_v39  ;;  %v3094_v37 = vsel %vm7982_vm4, %v2968_v39, 0  ;;  %v2868_v39 = vunpack.c.l.b16 %v2796_v34  ;;  %v9389_v7 = vld [vmem:[#allocation26_spill] sm:$0xff]  ;;  %v9393_v34 = vld [vmem:[#allocation25_spill] sm:$0xff] }
 0x40d   : > { %v3401_v54 = vrot.slane %v3094_v37, 1  ;;  %v3219_v3 = vshll.u32 %v3094_v37, 16 }
 0x40e   : > { %v2579_v46 = vadd.f32 %v7962_v60, %v2539_v21  ;;  %v8292_v20 = vsel %vm7982_vm4, 0, %v2971_v8 }
 0x40f   : > { %3734 = vmatmul.bf16.gmra.mxu1 %v8292_v20  ;;  %v3400_v53 = vrot.slane %v8292_v20, 1  ;;  %v3214_v57 = vshll.u32 %v8292_v20, 16  ;;  %v3212_v40 = vshrl.u32 %v8292_v20, 16  ;;  %v3221_v10 = vrot.slane %v3219_v3, 1 }
 0x410   : > { %v2615_v5 = vmax.f32 %v2579_v46, 0.0  ;;  %v9391_v46 = vld [vmem:[#allocation12_spill] sm:$0xff] }
 0x411   : > { %v2483_v1 = vpop.f32.mrf.mxu0  ;;  %v8298_v27 = vsel %vm968_vm1, %v3400_v53, %v3401_v54  ;;  %v3216_v62 = vrot.slane %v3214_v57, 1  ;;  %v9392_v53 = vld [vmem:[#allocation44_spill] sm:$0xff] }
 0x412   : > { %9387 = vst [vmem:[#allocation50_spill] sm:$0xff] %v8298_v27  ;;  %v2797_v2 = vpack.c.bf16 %v2615_v5, %v2615_v5  ;;  %v2484_v36 = vadd.f32 %v2483_v1, %v9388_v31  ;;  %3912 = vmatmul.bf16.gmra.mxu3 %v8298_v27  ;;  %v2387_v54 = vadd.f32 %v9392_v53, %v9391_v46  ;;  %v9394_v5 = vld [vmem:[#allocation20_spill] sm:$0xff] }
 0x413   : > { %v3217_v45 = vor.u32 %v3216_v62, %v3212_v40  ;;  %v1996_v1 = vadd.f32 %v9394_v5, %v9393_v34 }
 0x414   : > { %v2869_v16 = vunpack.c.l.b16 %v2797_v2  ;;  %v2540_v17 = vadd.f32 %v2484_v36, %v9389_v7  ;;  %v3697_v41 = vpop.f32.mrf.mxu1  ;;  %4570 = vmatmul.bf16.gmra.mxu0 %v8070_v19 }
 0x415   : > { %v3873_v21 = vpop.f32.mrf.mxu3  ;;  %v8306_v8 = vsel %vm707_vm0, %v3217_v45, %v3221_v10 }
 0x416   : > { %9390 = vst [vmem:[#allocation24_spill] sm:$0xff] %v8306_v8  ;;  %v2894_v37 = vpack.c.b16 %v2869_v16, %v2868_v39  ;;  %3823 = vmatmul.bf16.gmra.mxu2 %v8306_v8  ;;  %v2580_v3 = vadd.f32 %v7962_v60, %v2540_v17  ;;  %v6296_v17 = vld [vmem:[%s9121_s5 + $0x50] sm:$0xff] }
 0x417   : > { %4191 = vmatpush.bf16.msrb.mxu2 %v6296_v17 }
 0x418   : > { %v2973_v57 = vshrl.u32 %v2894_v37, 16  ;;  %v2976_v31 = vshll.u32 %v2894_v37, 16  ;;  %v2616_v45 = vmax.f32 %v2580_v3, 0.0 }
 0x419   : > { %v2485_v40 = vpop.f32.mrf.mxu0  ;;  %v3784_v62 = vpop.f32.mrf.mxu2 }
 0x41a   : > { %v2975_v2 = vrot.slane %v2973_v57, 7  ;;  %v2486_v36 = vadd.f32 %v2485_v40, %v2387_v54  ;;  %v3785_v7 = vadd.f32 %v3784_v62, %v3695_v56  ;;  %v2798_v5 = vpack.c.bf16 %v2616_v45, %v2616_v45  ;;  %v9396_v45 = vld [vmem:[#allocation28_spill] sm:$0xff] }
 0x41c   : > { %v2541_v10 = vadd.f32 %v2486_v36, %v1996_v1  ;;  %v3700_v39 = vpop.f32.mrf.mxu1  ;;  %v2978_v16 = vor.u32 %v2976_v31, %v2975_v2  ;;  %v3095_v8 = vsel %vm7982_vm4, %v2975_v2, 0  ;;  %v8319_v53 = vadd.f32 %v3873_v21, %v3785_v7 }
 0x41d   : > { %v3875_v46 = vpop.f32.mrf.mxu3  ;;  %v3404_v54 = vrot.slane %v3095_v8, 1  ;;  %v3231_v3 = vshll.u32 %v3095_v8, 16  ;;  %v2870_v27 = vunpack.c.l.b16 %v2798_v5  ;;  %v9398_v5 = vld [vmem:[#allocation6_spill] sm:$0xff] }
 0x41e   : > { %v2581_v34 = vadd.f32 %v7962_v60, %v2541_v10  ;;  %v8324_v37 = vsel %vm7982_vm4, 0, %v2978_v16 }
 0x41f   : > { %3739 = vmatmul.bf16.gmra.mxu1 %v8324_v37  ;;  %v3403_v56 = vrot.slane %v8324_v37, 1  ;;  %v3226_v57 = vshll.u32 %v8324_v37, 16  ;;  %v3224_v2 = vshrl.u32 %v8324_v37, 16  ;;  %v3233_v17 = vrot.slane %v3231_v3, 1 }
 0x420   : > { %v2617_v1 = vmax.f32 %v2581_v34, 0.0 }
 0x421   : > { %v2488_v40 = vpop.f32.mrf.mxu0  ;;  %v3786_v21 = vpop.f32.mrf.mxu2  ;;  %v8330_v62 = vsel %vm968_vm1, %v3403_v56, %v3404_v54  ;;  %v3228_v31 = vrot.slane %v3226_v57, 1 }
 0x422   : > { %9395 = vst [vmem:[#allocation53_spill] sm:$0xff] %v8330_v62  ;;  %v2799_v36 = vpack.c.bf16 %v2617_v1, %v2617_v1  ;;  %v2489_v7 = vadd.f32 %v2488_v40, %v8021_v4  ;;  %v3787_v10 = vadd.f32 %v3786_v21, %v3697_v41  ;;  %3917 = vmatmul.bf16.gmra.mxu3 %v8330_v62  ;;  %v9399_v40 = vld [vmem:[#allocation22_spill] sm:$0xff] }
 0x423   : > { %v3229_v16 = vor.u32 %v3228_v31, %v3224_v2  ;;  %v2392_v4 = vadd.f32 %v8025_v11, %v8023_v32  ;;  %v2001_v21 = vadd.f32 %v9399_v40, %v9398_v5 }
 0x424   : > { %v2871_v8 = vunpack.c.l.b16 %v2799_v36  ;;  %v2542_v34 = vadd.f32 %v2489_v7, %v9396_v45  ;;  %v3702_v55 = vpop.f32.mrf.mxu1  ;;  %4575 = vmatmul.bf16.gmra.mxu0 %v8104_v38  ;;  %v8337_v56 = vadd.f32 %v3875_v46, %v3787_v10 }
 0x425   : > { %v3878_v54 = vpop.f32.mrf.mxu3  ;;  %v8340_v57 = vsel %vm707_vm0, %v3229_v16, %v3233_v17 }
 0x426   : > { %9397 = vst [vmem:[#allocation55_spill] sm:$0xff] %v8340_v57  ;;  %v2895_v1 = vpack.c.b16 %v2871_v8, %v2870_v27  ;;  %3828 = vmatmul.bf16.gmra.mxu2 %v8340_v57  ;;  %v2582_v3 = vadd.f32 %v7962_v60, %v2542_v34  ;;  %v6288_v27 = vld [vmem:[%s9121_s5 + $0x10] sm:$0xff] }
 0x427   : > { %4102 = vmatpush.bf16.msrb.mxu1 %v6288_v27 }
 0x428   : > { %v2980_v41 = vshrl.u32 %v2895_v1, 16  ;;  %v2983_v36 = vshll.u32 %v2895_v1, 16  ;;  %v2618_v16 = vmax.f32 %v2582_v3, 0.0 }
 0x429   : > { %v2490_v2 = vpop.f32.mrf.mxu0  ;;  %v3789_v31 = vpop.f32.mrf.mxu2 }
 0x42a   : > { %v2982_v46 = vrot.slane %v2980_v41, 7  ;;  %v2491_v7 = vadd.f32 %v2490_v2, %v2392_v4  ;;  %v3790_v10 = vadd.f32 %v3789_v31, %v3700_v39  ;;  %v2800_v40 = vpack.c.bf16 %v2618_v16, %v2618_v16  ;;  %v9401_v16 = vld [vmem:[#allocation7_spill] sm:$0xff] }
 0x42c   : > { %v2543_v17 = vadd.f32 %v2491_v7, %v2001_v21  ;;  %v3705_v8 = vpop.f32.mrf.mxu1  ;;  %v2985_v32 = vor.u32 %v2983_v36, %v2982_v46  ;;  %v3096_v11 = vsel %vm7982_vm4, %v2982_v46, 0  ;;  %v8353_v34 = vadd.f32 %v3878_v54, %v3790_v10 }
 0x42d   : > { %v3880_v45 = vpop.f32.mrf.mxu3  ;;  %v3407_v4 = vrot.slane %v3096_v11, 1  ;;  %v3243_v5 = vshll.u32 %v3096_v11, 16 }
 0x42e   : > { %v2583_v41 = vadd.f32 %v7962_v60, %v2543_v17  ;;  %v8358_v39 = vsel %vm7982_vm4, 0, %v2985_v32  ;;  %v2872_v32 = vunpack.c.l.b16 %v2800_v40 }
 0x42f   : > { %3744 = vmatmul.bf16.gmra.mxu1 %v8358_v39  ;;  %v3406_v1 = vrot.slane %v8358_v39, 1  ;;  %v3238_v3 = vshll.u32 %v8358_v39, 16  ;;  %v3236_v60 = vshrl.u32 %v8358_v39, 16  ;;  %v3245_v17 = vrot.slane %v3243_v5, 1  ;;  %v8382_v5 = vld [vmem:[%s9120_s4] ss:$0 sm:$0xff] }
 0x430   : > { %v2619_v21 = vmax.f32 %v2583_v41, 0.0 }
 0x431   : > { %v2493_v2 = vpop.f32.mrf.mxu0  ;;  %v3791_v31 = vpop.f32.mrf.mxu2  ;;  %v8364_v54 = vsel %vm968_vm1, %v3406_v1, %v3407_v4  ;;  %v3240_v46 = vrot.slane %v3238_v3, 1 }
 0x432   : > { %9400 = vst [vmem:[#allocation27_spill] sm:$0xff] %v8364_v54  ;;  %v2801_v36 = vpack.c.bf16 %v2619_v21, %v2619_v21  ;;  %v2494_v7 = vadd.f32 %v2493_v2, %v8058_v24  ;;  %v3792_v10 = vadd.f32 %v3791_v31, %v3702_v55  ;;  %3922 = vmatmul.bf16.gmra.mxu3 %v8364_v54  ;;  %v9404_v2 = vld [vmem:[#allocation5_spill] sm:$0xff] }
 0x433   : > { %v3241_v27 = vor.u32 %v3240_v46, %v3236_v60  ;;  %v2397_v24 = vadd.f32 %v8062_v6, %v8060_v12 }
 0x434   : > { %v2873_v11 = vunpack.c.l.b16 %v2801_v36  ;;  %v2544_v41 = vadd.f32 %v2494_v7, %v9401_v16  ;;  %v3707_v57 = vpop.f32.mrf.mxu1  ;;  %4580 = vmatmul.bf16.gmra.mxu0 %v8149_v13  ;;  %v8371_v1 = vadd.f32 %v3880_v45, %v3792_v10  ;;  %v9403_v45 = vld [vmem:[#allocation32_spill] sm:$0xff]  ;;  %v6295_v16 = vld [vmem:[%s9121_s5 + $0x48] sm:$0xff] }
 0x435   : > { %v3883_v4 = vpop.f32.mrf.mxu3  ;;  %v8374_v3 = vsel %vm707_vm0, %v3241_v27, %v3245_v17  ;;  %v2006_v31 = vadd.f32 %v9404_v2, %v9403_v45  ;;  %4192 = vmatpush.bf16.msrb.mxu2 %v6295_v16 }
 0x436   : > { %9402 = vst [vmem:[#allocation54_spill] sm:$0xff] %v8374_v3  ;;  %v2896_v21 = vpack.c.b16 %v2873_v11, %v2872_v32  ;;  %3833 = vmatmul.bf16.gmra.mxu2 %v8374_v3  ;;  %v2584_v40 = vadd.f32 %v8382_v5, %v2544_v41 }
 0x438   : > { %v2987_v55 = vshrl.u32 %v2896_v21, 16  ;;  %v2990_v7 = vshll.u32 %v2896_v21, 16  ;;  %v2620_v17 = vmax.f32 %v2584_v40, 0.0 }
 0x439   : > { %v2495_v60 = vpop.f32.mrf.mxu0  ;;  %v3794_v46 = vpop.f32.mrf.mxu2 }
 0x43a   : > { %v2989_v36 = vrot.slane %v2987_v55, 7  ;;  %v2496_v10 = vadd.f32 %v2495_v60, %v2397_v24  ;;  %v3795_v27 = vadd.f32 %v3794_v46, %v3705_v8  ;;  %v2802_v2 = vpack.c.bf16 %v2620_v17, %v2620_v17  ;;  %v9405_v17 = vld [vmem:[#allocation43_spill] sm:$0xff] }
 0x43c   : > { %v2545_v32 = vadd.f32 %v2496_v10, %v2006_v31  ;;  %v3710_v12 = vpop.f32.mrf.mxu1  ;;  %v2992_v6 = vor.u32 %v2990_v7, %v2989_v36  ;;  %v3097_v11 = vsel %vm7982_vm4, %v2989_v36, 0  ;;  %v8392_v3 = vadd.f32 %v3883_v4, %v3795_v27 }
 0x43d   : > { %v3885_v41 = vpop.f32.mrf.mxu3  ;;  %v3410_v24 = vrot.slane %v3097_v11, 1  ;;  %v3255_v40 = vshll.u32 %v3097_v11, 16  ;;  %v2874_v54 = vunpack.c.l.b16 %v2802_v2  ;;  %v9407_v2 = vld [vmem:[#allocation8_spill] sm:$0xff] }
 0x43e   : > { %v2585_v45 = vadd.f32 %v8382_v5, %v2545_v32  ;;  %v8397_v21 = vsel %vm7982_vm4, 0, %v2992_v6 }
 0x43f   : > { %3749 = vmatmul.bf16.gmra.mxu1 %v8397_v21  ;;  %v3409_v8 = vrot.slane %v8397_v21, 1  ;;  %v3250_v55 = vshll.u32 %v8397_v21, 16  ;;  %v3248_v36 = vshrl.u32 %v8397_v21, 16  ;;  %v3257_v16 = vrot.slane %v3255_v40, 1 }
 0x440   : > { %v2621_v31 = vmax.f32 %v2585_v45, 0.0 }
 0x441   : > { %v2498_v60 = vpop.f32.mrf.mxu0  ;;  %v3796_v4 = vpop.f32.mrf.mxu2  ;;  %v8403_v46 = vsel %vm968_vm1, %v3409_v8, %v3410_v24  ;;  %v3252_v7 = vrot.slane %v3250_v55, 1 }
 0x442   : > { %v2803_v10 = vpack.c.bf16 %v2621_v31, %v2621_v31  ;;  %v2499_v27 = vadd.f32 %v2498_v60, %v8089_v49  ;;  %v3797_v32 = vadd.f32 %v3796_v4, %v3707_v57  ;;  %3927 = vmatmul.bf16.gmra.mxu3 %v8403_v46  ;;  %v2402_v49 = vadd.f32 %v8093_v63, %v8091_v48  ;;  %v9408_v60 = vld [vmem:[#allocation30_spill] sm:$0xff] }
 0x443   : > { %v3253_v6 = vor.u32 %v3252_v7, %v3248_v36  ;;  %v2011_v4 = vadd.f32 %v9408_v60, %v9407_v2 }
 0x444   : > { %v2875_v11 = vunpack.c.l.b16 %v2803_v10  ;;  %v2546_v45 = vadd.f32 %v2499_v27, %v9405_v17  ;;  %v3712_v62 = vpop.f32.mrf.mxu1  ;;  %4585 = vmatmul.bf16.gmra.mxu0 %v8195_v0  ;;  %v8410_v8 = vadd.f32 %v3885_v41, %v3797_v32 }
 0x445   : > { %v3888_v24 = vpop.f32.mrf.mxu3  ;;  %v8413_v55 = vsel %vm707_vm0, %v3253_v6, %v3257_v16 }
 0x446   : > { %9406 = vst [vmem:[#allocation57_spill] sm:$0xff] %v8413_v55  ;;  %v2897_v31 = vpack.c.b16 %v2875_v11, %v2874_v54  ;;  %3838 = vmatmul.bf16.gmra.mxu2 %v8413_v55  ;;  %v2586_v40 = vadd.f32 %v8382_v5, %v2546_v45  ;;  %v6287_v54 = vld [vmem:[%s9121_s5 + $0x8] sm:$0xff]  ;;  %v9410_v55 = vld [vmem:[#allocation37_spill] sm:$0xff] }
 0x447   : > { %4103 = vmatpush.bf16.msrb.mxu1 %v6287_v54 }
 0x448   : > { %v2994_v57 = vshrl.u32 %v2897_v31, 16  ;;  %v2997_v10 = vshll.u32 %v2897_v31, 16  ;;  %v2622_v6 = vmax.f32 %v2586_v40, 0.0 }
 0x449   : > { %v2500_v36 = vpop.f32.mrf.mxu0  ;;  %v3799_v7 = vpop.f32.mrf.mxu2 }
 0x44a   : > { %v2996_v41 = vrot.slane %v2994_v57, 7  ;;  %v2501_v27 = vadd.f32 %v2500_v36, %v2402_v49  ;;  %v3800_v32 = vadd.f32 %v3799_v7, %v3710_v12  ;;  %v2804_v60 = vpack.c.bf16 %v2622_v6, %v2622_v6 }
 0x44c   : > { %v2547_v16 = vadd.f32 %v2501_v27, %v2011_v4  ;;  %v3715_v11 = vpop.f32.mrf.mxu1  ;;  %v2999_v48 = vor.u32 %v2997_v10, %v2996_v41  ;;  %v3098_v63 = vsel %vm7982_vm4, %v2996_v41, 0  ;;  %v8426_v45 = vadd.f32 %v3888_v24, %v3800_v32 }
 0x44d   : > { %v3890_v17 = vpop.f32.mrf.mxu3  ;;  %v3413_v49 = vrot.slane %v3098_v63, 1  ;;  %v3267_v2 = vshll.u32 %v3098_v63, 16  ;;  %v2876_v63 = vunpack.c.l.b16 %v2804_v60  ;;  %v2407_v60 = vadd.f32 %v8139_v42, %v8137_v44  ;;  %v6307_v44 = vld [vmem:[%s9121_s5 + $0xa8] sm:$0xff] }
 0x44e   : > { %v2587_v57 = vadd.f32 %v8382_v5, %v2547_v16  ;;  %v8431_v12 = vsel %vm7982_vm4, 0, %v2999_v48  ;;  %v6309_v16 = vld [vmem:[%s9121_s5 + $0xb8] sm:$0xff] }
 0x44f   : > { %3754 = vmatmul.bf16.gmra.mxu1 %v8431_v12  ;;  %v3412_v31 = vrot.slane %v8431_v12, 1  ;;  %v3262_v40 = vshll.u32 %v8431_v12, 16  ;;  %v3260_v41 = vshrl.u32 %v8431_v12, 16  ;;  %v3269_v48 = vrot.slane %v3267_v2, 1  ;;  %4275 = vmatpush.bf16.msra.mxu3 %v6309_v16  ;;  %v6294_v2 = vld [vmem:[%s9121_s5 + $0x40] sm:$0xff] }
 0x450   : > { %v2623_v4 = vmax.f32 %v2587_v57, 0.0  ;;  %4193 = vmatpush.bf16.msrb.mxu2 %v6294_v2 }
 0x451   : > { %v2503_v36 = vpop.f32.mrf.mxu0  ;;  %v3801_v7 = vpop.f32.mrf.mxu2  ;;  %v8437_v24 = vsel %vm968_vm1, %v3412_v31, %v3413_v49  ;;  %v3264_v10 = vrot.slane %v3262_v40, 1 }
 0x452   : > { %9409 = vst [vmem:[#allocation29_spill] sm:$0xff] %v8437_v24  ;;  %v2805_v27 = vpack.c.bf16 %v2623_v4, %v2623_v4  ;;  %v2504_v32 = vadd.f32 %v2503_v36, %v8135_v51  ;;  %v3802_v54 = vadd.f32 %v3801_v7, %v3712_v62  ;;  %3932 = vmatmul.bf16.gmra.mxu3 %v8437_v24  ;;  %v9412_v7 = vld [vmem:[#allocation45_spill] sm:$0xff]  ;;  %v9415_v24 = vld [vmem:[#allocation46_spill] sm:$0xff] }
 0x453   : > { %v3265_v6 = vor.u32 %v3264_v10, %v3260_v41  ;;  %v9413_v41 = vld [vmem:[#allocation42_spill] sm:$0xff] }
 0x454   : > { %v2877_v57 = vunpack.c.l.b16 %v2805_v27  ;;  %v2548_v31 = vadd.f32 %v2504_v32, %v9410_v55  ;;  %v3717_v49 = vpop.f32.mrf.mxu1  ;;  %4590 = vmatmul.bf16.gmra.mxu0 %v8232_v58  ;;  %v8447_v40 = vadd.f32 %v3890_v17, %v3802_v54  ;;  %v6308_v55 = vld [vmem:[%s9121_s5 + $0xb0] sm:$0xff]  ;;  %v2016_v10 = vadd.f32 %v9413_v41, %v9412_v7 }
 0x455   : > { %v3893_v51 = vpop.f32.mrf.mxu3  ;;  %v8450_v62 = vsel %vm707_vm0, %v3265_v6, %v3269_v48  ;;  %4276 = vmatpush.bf16.msra.mxu3 %v6308_v55 }
 0x456   : > { %9411 = vst [vmem:[#allocation63_spill] sm:$0xff] %v8450_v62  ;;  %v2898_v4 = vpack.c.b16 %v2877_v57, %v2876_v63  ;;  %3843 = vmatmul.bf16.gmra.mxu2 %v8450_v62  ;;  %v2588_v36 = vadd.f32 %v8382_v5, %v2548_v31  ;;  %v6286_v63 = vld [vmem:[%s9121_s5] sm:$0xff] }
 0x457   : > { %4104 = vmatpush.bf16.msrb.mxu1 %v6286_v63 }
 0x458   : > { %v3001_v17 = vshrl.u32 %v2898_v4, 16  ;;  %v3004_v16 = vshll.u32 %v2898_v4, 16  ;;  %v2624_v42 = vmax.f32 %v2588_v36, 0.0  ;;  %v6306_v36 = vld [vmem:[%s9121_s5 + $0xa0] sm:$0xff] }
 0x459   : > { %v2505_v27 = vpop.f32.mrf.mxu0  ;;  %v3804_v32 = vpop.f32.mrf.mxu2  ;;  %4277 = vmatpush.bf16.msra.mxu3 %v6307_v44 }
 0x45a   : > { %v3003_v54 = vrot.slane %v3001_v17, 7  ;;  %v2506_v6 = vadd.f32 %v2505_v27, %v2407_v60  ;;  %v3805_v48 = vadd.f32 %v3804_v32, %v3715_v11 }
 0x45c   : > { %v2549_v57 = vadd.f32 %v2506_v6, %v2016_v10  ;;  %v3720_v31 = vpop.f32.mrf.mxu1  ;;  %v3006_v2 = vor.u32 %v3004_v16, %v3003_v54  ;;  %v3099_v55 = vsel %vm7982_vm4, %v3003_v54, 0  ;;  %v8472_v60 = vadd.f32 %v3893_v51, %v3805_v48 }
 0x45d   : > { %v3895_v4 = vpop.f32.mrf.mxu3  ;;  %v3416_v41 = vrot.slane %v3099_v55, 1  ;;  %v3279_v27 = vshll.u32 %v3099_v55, 16  ;;  %v2806_v51 = vpack.c.bf16 %v2624_v42, %v2624_v42  ;;  %4278 = vmatpush.bf16.msra.mxu3 %v6306_v36  ;;  %v6305_v42 = vld [vmem:[%s9121_s5 + $0x98] sm:$0xff] }
 0x45e   : > { %v2589_v11 = vadd.f32 %v8382_v5, %v2549_v57  ;;  %v8477_v17 = vsel %vm7982_vm4, 0, %v3006_v2 }
 0x45f   : > { %3759 = vmatmul.bf16.gmra.mxu1 %v8477_v17  ;;  %v3415_v7 = vrot.slane %v8477_v17, 1  ;;  %v3274_v10 = vshll.u32 %v8477_v17, 16  ;;  %v3272_v48 = vshrl.u32 %v8477_v17, 16  ;;  %v2878_v36 = vunpack.c.l.b16 %v2806_v51 }
 0x460   : > { %v2625_v32 = vmax.f32 %v2589_v11, 0.0  ;;  %v3281_v11 = vrot.slane %v3279_v27, 1  ;;  %v6304_v27 = vld [vmem:[%s9121_s5 + $0x90] sm:$0xff] }
 0x461   : > { %v2508_v54 = vpop.f32.mrf.mxu0  ;;  %v3806_v16 = vpop.f32.mrf.mxu2  ;;  %v8486_v6 = vsel %vm968_vm1, %v3415_v7, %v3416_v41  ;;  %v3276_v63 = vrot.slane %v3274_v10, 1  ;;  %4279 = vmatpush.bf16.msra.mxu3 %v6305_v42 }
 0x462   : > { %9414 = vst [vmem:[#allocation58_spill] sm:$0xff] %v8486_v6  ;;  %v2807_v44 = vpack.c.bf16 %v2625_v32, %v2625_v32  ;;  %v2509_v57 = vadd.f32 %v2508_v54, %v8180_v14  ;;  %v3807_v2 = vadd.f32 %v3806_v16, %v3717_v49  ;;  %3937 = vmatmul.bf16.gmra.mxu3 %v8486_v6  ;;  %v9418_v16 = vld [vmem:[#allocation35_spill] sm:$0xff] }
 0x463   : > { %v3277_v55 = vor.u32 %v3276_v63, %v3272_v48 }
 0x464   : > { %v2879_v62 = vunpack.c.l.b16 %v2807_v44  ;;  %v2550_v7 = vadd.f32 %v2509_v57, %v9415_v24  ;;  %v3722_v41 = vpop.f32.mrf.mxu1  ;;  %4595 = vmatmul.bf16.gmra.mxu0 %v8262_v29  ;;  %v8496_v10 = vadd.f32 %v3895_v4, %v3807_v2  ;;  %v2412_v24 = vadd.f32 %v8197_v25, %v8182_v9  ;;  %v9417_v4 = vld [vmem:[#allocation9_spill] sm:$0xff] }
 0x465   : > { %v3898_v14 = vpop.f32.mrf.mxu3  ;;  %v8499_v49 = vsel %vm707_vm0, %v3277_v55, %v3281_v11  ;;  %4280 = vmatpush.bf16.msra.mxu3 %v6304_v27  ;;  %v2021_v48 = vadd.f32 %v9418_v16, %v9417_v4  ;;  %v6303_v55 = vld [vmem:[%s9121_s5 + $0x88] sm:$0xff] }
 0x466   : > { %9416 = vst [vmem:[#allocation56_spill] sm:$0xff] %v8499_v49  ;;  %v2899_v32 = vpack.c.b16 %v2879_v62, %v2878_v36  ;;  %3848 = vmatmul.bf16.gmra.mxu2 %v8499_v49  ;;  %v2590_v54 = vadd.f32 %v8382_v5, %v2550_v7 }
 0x468   : > { %v3008_v51 = vshrl.u32 %v2899_v32, 16  ;;  %v3011_v62 = vshll.u32 %v2899_v32, 16  ;;  %v2626_v11 = vmax.f32 %v2590_v54, 0.0  ;;  %v6649_v32 = vmov 0.0|0.0   ;;  %v6302_v54 = vld [vmem:[%s9121_s5 + $0x80] sm:$0xff] }
 0x469   : > { %v2510_v63 = vpop.f32.mrf.mxu0  ;;  %v3809_v44 = vpop.f32.mrf.mxu2  ;;  %4281 = vmatpush.bf16.msra.mxu3 %v6303_v55 }
 0x46a   : > { %v3010_v57 = vrot.slane %v3008_v51, 7  ;;  %v2511_v2 = vadd.f32 %v2510_v63, %v2412_v24  ;;  %v3810_v42 = vadd.f32 %v3809_v44, %v3720_v31  ;;  %v2848_v24 = vunpack.c.l.b16 %v6649_v32 }
 0x46b   : > { %v2808_v44 = vpack.c.bf16 %v2626_v11, %v2626_v11 }
 0x46c   : > { %v2551_v36 = vadd.f32 %v2511_v2, %v2021_v48  ;;  %v3725_v9 = vpop.f32.mrf.mxu1  ;;  %v3013_v25 = vor.u32 %v3011_v62, %v3010_v57  ;;  %v3100_v7 = vsel %vm7982_vm4, %v3010_v57, 0  ;;  %v8515_v4 = vadd.f32 %v3898_v14, %v3810_v42 }
 0x46d   : > { %v3900_v27 = vpop.f32.mrf.mxu3  ;;  %v3419_v48 = vrot.slane %v3100_v7, 1  ;;  %v3291_v63 = vshll.u32 %v3100_v7, 16  ;;  %4282 = vmatpush.bf16.msra.mxu3 %v6302_v54  ;;  %v2884_v6 = vpack.c.b16 %v2848_v24, %v2848_v24 }
 0x46e   : > { %9419 = vst [vmem:[#allocation64_spill] sm:$0xff] %v8515_v4  ;;  %v2591_v51 = vadd.f32 %v8382_v5, %v2551_v36  ;;  %v8520_v31 = vsel %vm7982_vm4, 0, %v3013_v25  ;;  %v2880_v4 = vunpack.c.l.b16 %v2808_v44 }
 0x46f   : > { %3764 = vmatmul.bf16.gmra.mxu1 %v8520_v31  ;;  %v3418_v16 = vrot.slane %v8520_v31, 1  ;;  %v3286_v14 = vshll.u32 %v8520_v31, 16  ;;  %v3284_v42 = vshrl.u32 %v8520_v31, 16  ;;  %v3293_v49 = vrot.slane %v3291_v63, 1 }
 0x470   : > { %v2627_v5 = vmax.f32 %v2591_v51, 0.0 }
 0x471   : > { %v2513_v57 = vpop.f32.mrf.mxu0  ;;  %v3811_v62 = vpop.f32.mrf.mxu2  ;;  %v8529_v2 = vsel %vm968_vm1, %v3418_v16, %v3419_v48  ;;  %v3288_v55 = vrot.slane %v3286_v14, 1  ;;  %v2903_v14 = vshrl.u32 %v2884_v6, 16 }
 0x472   : > { %v2809_v36 = vpack.c.bf16 %v2627_v5, %v2627_v5  ;;  %v3812_v25 = vadd.f32 %v3811_v62, %v3722_v41  ;;  %3942 = vmatmul.bf16.gmra.mxu3 %v8529_v2  ;;  %v6357_v41 = vld [vmem:[%s9121_s5 + $0x238] sm:$0xff] }
 0x473   : > { %v3289_v32 = vor.u32 %v3288_v55, %v3284_v42  ;;  %4735 = vmatpush.bf16.msra.mxu2 %v6357_v41  ;;  %v2905_v62 = vrot.slane %v2903_v14, 7 }
 0x474   : > { %v2881_v7 = vunpack.c.l.b16 %v2809_v36  ;;  %v3727_v11 = vpop.f32.mrf.mxu1  ;;  %4600 = vmatmul.bf16.gmra.mxu0 %v8292_v20  ;;  %v8534_v51 = vadd.f32 %v3900_v27, %v3812_v25  ;;  %v2906_v36 = vshll.u32 %v2884_v6, 16 }
 0x475   : > { %v3903_v54 = vpop.f32.mrf.mxu3  ;;  %v8537_v16 = vsel %vm707_vm0, %v3289_v32, %v3293_v49  ;;  %v6349_v49 = vld [vmem:[%s9121_s5 + $0x1f8] sm:$0xff] }
 0x476   : > { %v2900_v48 = vpack.c.b16 %v2881_v7, %v2880_v4  ;;  %3853 = vmatmul.bf16.gmra.mxu2 %v8537_v16  ;;  %4646 = vmatpush.bf16.msra.mxu1 %v6349_v49 }
 0x478   : > { %v3015_v24 = vshrl.u32 %v2900_v48, 16  ;;  %v3018_v27 = vshll.u32 %v2900_v48, 16 }
 0x479   : > { %v2515_v63 = vpop.f32.mrf.mxu0  ;;  %v3814_v44 = vpop.f32.mrf.mxu2 }
 0x47a   : > { %v3815_v5 = vadd.f32 %v3814_v44, %v3725_v9  ;;  %v3017_v57 = vrot.slane %v3015_v24, 7  ;;  %v2908_v24 = vor.u32 %v2906_v36, %v2905_v62 }
 0x47c   : > { %v3730_v4 = vpop.f32.mrf.mxu1  ;;  %v3020_v42 = vor.u32 %v3018_v27, %v3017_v57  ;;  %v3101_v55 = vsel %vm7982_vm4, %v3017_v57, 0  ;;  %v8548_v25 = vadd.f32 %v3903_v54, %v3815_v5 }
 0x47d   : > { %v3905_v32 = vpop.f32.mrf.mxu3  ;;  %v3422_v48 = vrot.slane %v3101_v55, 1  ;;  %v3303_v14 = vshll.u32 %v3101_v55, 16 }
 0x47e   : > { %v8552_v9 = vsel %vm7982_vm4, 0, %v3020_v42  ;;  %v8565_v42 = vsel %vm7982_vm4, 0, %v2908_v24 }
 0x47f   : > { %3769 = vmatmul.bf16.gmra.mxu1 %v8552_v9  ;;  %v3421_v7 = vrot.slane %v8552_v9, 1  ;;  %v3298_v41 = vshll.u32 %v8552_v9, 16  ;;  %v3296_v54 = vshrl.u32 %v8552_v9, 16  ;;  %v3305_v27 = vrot.slane %v3303_v14, 1 }
 0x480   : > { %v3373_v24 = vrot.slane %v8565_v42, 1 }
 0x481   : > { %v3816_v63 = vpop.f32.mrf.mxu2  ;;  %v8558_v6 = vsel %vm968_vm1, %v3421_v7, %v3422_v48  ;;  %v3300_v44 = vrot.slane %v3298_v41, 1  ;;  %v3085_v48 = vsel %vm7982_vm4, %v2905_v62, 0 }
 0x482   : > { %9420 = vst [vmem:[#allocation60_spill] sm:$0xff] %v8558_v6  ;;  %v3817_v5 = vadd.f32 %v3816_v63, %v3727_v11  ;;  %3947 = vmatmul.bf16.gmra.mxu3 %v8558_v6  ;;  %v3106_v11 = vshll.u32 %v8565_v42, 16  ;;  %v3104_v63 = vshrl.u32 %v8565_v42, 16 }
 0x483   : > { %v3301_v57 = vor.u32 %v3300_v44, %v3296_v54  ;;  %v3374_v54 = vrot.slane %v3085_v48, 1  ;;  %v3111_v44 = vshll.u32 %v3085_v48, 16 }
 0x484   : > { %v3732_v49 = vpop.f32.mrf.mxu1  ;;  %4605 = vmatmul.bf16.gmra.mxu0 %v8324_v37  ;;  %v8567_v55 = vadd.f32 %v3905_v32, %v3817_v5  ;;  %v3108_v32 = vrot.slane %v3106_v11, 1 }
 0x485   : > { %v3908_v36 = vpop.f32.mrf.mxu3  ;;  %v8570_v7 = vsel %vm707_vm0, %v3301_v57, %v3305_v27  ;;  %v8582_v27 = vsel %vm968_vm1, %v3373_v24, %v3374_v54  ;;  %v3113_v62 = vrot.slane %v3111_v44, 1 }
 0x486   : > { %9421 = vst [vmem:[#allocation31_spill] sm:$0xff] %v8570_v7  ;;  %3858 = vmatmul.bf16.gmra.mxu2 %v8570_v7  ;;  %v3109_v50 = vor.u32 %v3108_v32, %v3104_v63 }
 0x487   : > { %9422 = vst [vmem:[#allocation65_spill] sm:$0xff] %v8582_v27 }
 0x489   : > { %v3819_v41 = vpop.f32.mrf.mxu2 }
 0x48a   : > { %v3820_v14 = vadd.f32 %v3819_v41, %v3730_v4  ;;  %v8586_v41 = vsel %vm707_vm0, %v3109_v50, %v3113_v62 }
 0x48b   : > { %9423 = vst [vmem:[#allocation61_spill] sm:$0xff] %v8586_v41 }
 0x48c   : > { %v3735_v5 = vpop.f32.mrf.mxu1  ;;  %v8578_v6 = vadd.f32 %v3908_v36, %v3820_v14  ;;  %v6356_v14 = vld [vmem:[%s9121_s5 + $0x230] sm:$0xff] }
 0x48d   : > { %v3910_v57 = vpop.f32.mrf.mxu3  ;;  %4736 = vmatpush.bf16.msra.mxu2 %v6356_v14 }
 0x48f   : > { %4105 = vmatmul.bf16.vlgmr.msrb.gmra.mxu1 %v8565_v42 }
 0x491   : > { %v3821_v7 = vpop.f32.mrf.mxu2 }
 0x492   : > { %v3822_v4 = vadd.f32 %v3821_v7, %v3732_v49  ;;  %4283 = vmatmul.bf16.vlgmr.msra.gmra.mxu3 %v8582_v27  ;;  %v6348_v7 = vld [vmem:[%s9121_s5 + $0x1f0] sm:$0xff]  ;;  %v8608_v27 = vpop.f32.mrf.mxu0 }
 0x493   : > { %4647 = vmatpush.bf16.msra.mxu1 %v6348_v7  ;;  %9425 = vst [vmem:[#allocation59_spill] sm:$0xff] %v8608_v27 }
 0x494   : > { %v3737_v11 = vpop.f32.mrf.mxu1  ;;  %4610 = vmatmul.bf16.gmra.mxu0 %v8358_v39  ;;  %v8589_v36 = vadd.f32 %v3910_v57, %v3822_v4  ;;  %v9424_v4 = vld [vmem:[#allocation51_spill] sm:$0xff] }
 0x495   : > { %v3913_v48 = vpop.f32.mrf.mxu3 }
 0x496   : > { %4194 = vmatmul.bf16.vlgmr.msrb.gmra.mxu2 %v8586_v41 }
 0x499   : > { %v3824_v63 = vpop.f32.mrf.mxu2 }
 0x49a   : > { %v3825_v49 = vadd.f32 %v3824_v63, %v3735_v5 }
 0x49c   : > { %v3740_v24 = vpop.f32.mrf.mxu1  ;;  %v8598_v54 = vadd.f32 %v3913_v48, %v3825_v49 }
 0x49d   : > { %v3915_v32 = vpop.f32.mrf.mxu3 }
 0x49f   : > { %4110 = vmatmul.bf16.gmra.mxu1 %v8002_v28 }
 0x4a1   : > { %v3826_v44 = vpop.f32.mrf.mxu2 }
 0x4a2   : > { %v3827_v57 = vadd.f32 %v3826_v44, %v3737_v11  ;;  %4288 = vmatmul.bf16.gmra.mxu3 %v8009_v23 }
 0x4a4   : > { %v3742_v50 = vpop.f32.mrf.mxu1  ;;  %4615 = vmatmul.bf16.gmra.mxu0 %v8397_v21  ;;  %v8603_v62 = vadd.f32 %v3915_v32, %v3827_v57  ;;  %v9426_v57 = vld [vmem:[#allocation47_spill] sm:$0xff] }
 0x4a5   : > { %v3918_v5 = vpop.f32.mrf.mxu3 }
 0x4a6   : > { %4199 = vmatmul.bf16.gmra.mxu2 %v9424_v4 }
 0x4a9   : > { %v3829_v14 = vpop.f32.mrf.mxu2 }
 0x4aa   : > { %v3830_v63 = vadd.f32 %v3829_v14, %v3740_v24  ;;  %v6355_v24 = vld [vmem:[%s9121_s5 + $0x228] sm:$0xff] }
 0x4ab   : > { %4737 = vmatpush.bf16.msra.mxu2 %v6355_v24 }
 0x4ac   : > { %v3745_v7 = vpop.f32.mrf.mxu1  ;;  %v8606_v48 = vadd.f32 %v3918_v5, %v3830_v63  ;;  %v8619_v5 = vpop.f32.mrf.mxu0 }
 0x4ad   : > { %v3920_v49 = vpop.f32.mrf.mxu3  ;;  %9427 = vst [vmem:[#allocation66_spill] sm:$0xff] %v8619_v5  ;;  %v9431_v5 = vld [vmem:[#allocation52_spill] sm:$0xff] }
 0x4af   : > { %4115 = vmatmul.bf16.gmra.mxu1 %v8036_v30 }
 0x4b1   : > { %v3831_v28 = vpop.f32.mrf.mxu2 }
 0x4b2   : > { %v3832_v23 = vadd.f32 %v3831_v28, %v3742_v50  ;;  %4293 = vmatmul.bf16.gmra.mxu3 %v8042_v15  ;;  %v6347_v50 = vld [vmem:[%s9121_s5 + $0x1e8] sm:$0xff] }
 0x4b3   : > { %4648 = vmatpush.bf16.msra.mxu1 %v6347_v50 }
 0x4b4   : > { %v3747_v11 = vpop.f32.mrf.mxu1  ;;  %4620 = vmatmul.bf16.gmra.mxu0 %v8431_v12  ;;  %v8613_v32 = vadd.f32 %v3920_v49, %v3832_v23  ;;  %v8627_v23 = vpop.f32.mrf.mxu0 }
 0x4b5   : > { %v3923_v44 = vpop.f32.mrf.mxu3  ;;  %9429 = vst [vmem:[#allocation36_spill] sm:$0xff] %v8627_v23 }
 0x4b6   : > { %4204 = vmatmul.bf16.gmra.mxu2 %v9426_v57 }
 0x4b9   : > { %v3834_v30 = vpop.f32.mrf.mxu2 }
 0x4ba   : > { %v3835_v4 = vadd.f32 %v3834_v30, %v3745_v7 }
 0x4bc   : > { %v3750_v14 = vpop.f32.mrf.mxu1  ;;  %v8624_v63 = vadd.f32 %v3923_v44, %v3835_v4  ;;  %v8634_v4 = vpop.f32.mrf.mxu0 }
 0x4bd   : > { %v3925_v49 = vpop.f32.mrf.mxu3  ;;  %9432 = vst [vmem:[#allocation10_spill] sm:$0xff] %v8634_v4 }
 0x4be   : > { %9428 = vst [vmem:[#allocation62_spill] sm:$0xff] %v8624_v63 }
 0x4bf   : > { %4120 = vmatmul.bf16.gmra.mxu1 %v8070_v19 }
 0x4c1   : > { %v3836_v28 = vpop.f32.mrf.mxu2 }
 0x4c2   : > { %v3837_v41 = vadd.f32 %v3836_v28, %v3747_v11  ;;  %4298 = vmatmul.bf16.gmra.mxu3 %v8076_v22 }
 0x4c4   : > { %v3752_v24 = vpop.f32.mrf.mxu1  ;;  %4625 = vmatmul.bf16.gmra.mxu0 %v8477_v17  ;;  %v8631_v7 = vadd.f32 %v3925_v49, %v3837_v41 }
 0x4c5   : > { %v3928_v30 = vpop.f32.mrf.mxu3 }
 0x4c6   : > { %9430 = vst [vmem:[#allocation11_spill] sm:$0xff] %v8631_v7  ;;  %4209 = vmatmul.bf16.gmra.mxu2 %v9431_v5  ;;  %v8643_v7 = vpop.f32.mrf.mxu0 }
 0x4c7   : > { %9433 = vst [vmem:[#allocation33_spill] sm:$0xff] %v8643_v7 }
 0x4c9   : > { %v3839_v50 = vpop.f32.mrf.mxu2 }
 0x4ca   : > { %v3840_v44 = vadd.f32 %v3839_v50, %v3750_v14  ;;  %v6354_v14 = vld [vmem:[%s9121_s5 + $0x220] sm:$0xff] }
 0x4cb   : > { %4738 = vmatpush.bf16.msra.mxu2 %v6354_v14 }
 0x4cc   : > { %v3755_v27 = vpop.f32.mrf.mxu1  ;;  %v8636_v19 = vadd.f32 %v3928_v30, %v3840_v44 }
 0x4cd   : > { %v3930_v63 = vpop.f32.mrf.mxu3 }
 0x4cf   : > { %4125 = vmatmul.bf16.gmra.mxu1 %v8104_v38 }
 0x4d1   : > { %v3841_v11 = vpop.f32.mrf.mxu2 }
 0x4d2   : > { %v3842_v28 = vadd.f32 %v3841_v11, %v3752_v24  ;;  %4303 = vmatmul.bf16.gmra.mxu3 %v8110_v59  ;;  %v6346_v24 = vld [vmem:[%s9121_s5 + $0x1e0] sm:$0xff]  ;;  %v8655_v11 = vpop.f32.mrf.mxu0 }
 0x4d3   : > { %4649 = vmatpush.bf16.msra.mxu1 %v6346_v24  ;;  %9434 = vst [vmem:[#allocation16_spill] sm:$0xff] %v8655_v11 }
 0x4d4   : > { %v3757_v23 = vpop.f32.mrf.mxu1  ;;  %4630 = vmatmul.bf16.gmra.mxu0 %v8520_v31  ;;  %v8641_v41 = vadd.f32 %v3930_v63, %v3842_v28 }
 0x4d5   : > { %v3933_v49 = vpop.f32.mrf.mxu3 }
 0x4d6   : > { %4214 = vmatmul.bf16.gmra.mxu2 %v8121_v47 }
 0x4d9   : > { %v3844_v38 = vpop.f32.mrf.mxu2 }
 0x4da   : > { %v3845_v30 = vadd.f32 %v3844_v38, %v3755_v27 }
 0x4dc   : > { %v3760_v50 = vpop.f32.mrf.mxu1  ;;  %v8652_v63 = vadd.f32 %v3933_v49, %v3845_v30  ;;  %v8662_v49 = vpop.f32.mrf.mxu0 }
 0x4dd   : > { %v3935_v44 = vpop.f32.mrf.mxu3  ;;  %9436 = vst [vmem:[#allocation17_spill] sm:$0xff] %v8662_v49 }
 0x4df   : > { %4130 = vmatmul.bf16.gmra.mxu1 %v8149_v13 }
 0x4e1   : > { %v3846_v28 = vpop.f32.mrf.mxu2 }
 0x4e2   : > { %v3847_v7 = vadd.f32 %v3846_v28, %v3757_v23  ;;  %4308 = vmatmul.bf16.gmra.mxu3 %v8158_v52 }
 0x4e4   : > { %v3762_v14 = vpop.f32.mrf.mxu1  ;;  %4635 = vmatmul.bf16.gmra.mxu0 %v8552_v9  ;;  %v8659_v27 = vadd.f32 %v3935_v44, %v3847_v7  ;;  %v8668_v9 = vpop.f32.mrf.mxu0 }
 0x4e5   : > { %v3938_v38 = vpop.f32.mrf.mxu3  ;;  %9437 = vst [vmem:[#allocation19_spill] sm:$0xff] %v8668_v9 }
 0x4e6   : > { %9435 = vst [vmem:[#allocation14_spill] sm:$0xff] %v8659_v27  ;;  %4219 = vmatmul.bf16.gmra.mxu2 %v8169_v61 }
 0x4e9   : > { %v3849_v24 = vpop.f32.mrf.mxu2 }
 0x4ea   : > { %v3850_v30 = vadd.f32 %v3849_v24, %v3760_v50  ;;  %v6353_v50 = vld [vmem:[%s9121_s5 + $0x218] sm:$0xff] }
 0x4eb   : > { %4739 = vmatpush.bf16.msra.mxu2 %v6353_v50  ;;  %v6345_v24 = vld [vmem:[%s9121_s5 + $0x1d8] sm:$0xff] }
 0x4ec   : > { %v3765_v4 = vpop.f32.mrf.mxu1  ;;  %v8664_v13 = vadd.f32 %v3938_v38, %v3850_v30  ;;  %4650 = vmatpush.bf16.msra.mxu1 %v6345_v24 }
 0x4ed   : > { %v3940_v11 = vpop.f32.mrf.mxu3 }
 0x4ef   : > { %4135 = vmatmul.bf16.gmra.mxu1 %v8195_v0 }
 0x4f1   : > { %v3851_v23 = vpop.f32.mrf.mxu2 }
 0x4f2   : > { %v3852_v28 = vadd.f32 %v3851_v23, %v3762_v14  ;;  %4313 = vmatmul.bf16.gmra.mxu3 %v8206_v43 }
 0x4f4   : > { %v3767_v7 = vpop.f32.mrf.mxu1  ;;  %v8670_v44 = vadd.f32 %v3940_v11, %v3852_v28  ;;  %4640 = vmatmul.bf16.gmra.mxu0 %v8565_v42 }
 0x4f5   : > { %v3943_v27 = vpop.f32.mrf.mxu3 }
 0x4f6   : > { %9438 = vst [vmem:[#allocation38_spill] sm:$0xff] %v8670_v44  ;;  %4224 = vmatmul.bf16.gmra.mxu2 %v8214_v35 }
 0x4f9   : > { %v3854_v0 = vpop.f32.mrf.mxu2 }
 0x4fa   : > { %v3855_v38 = vadd.f32 %v3854_v0, %v3765_v4 }
 0x4fc   : > { %v3770_v14 = vpop.f32.mrf.mxu1  ;;  %v8680_v30 = vadd.f32 %v3943_v27, %v3855_v38 }
 0x4fd   : > { %v3945_v11 = vpop.f32.mrf.mxu3 }
 0x4ff   : > { %4140 = vmatmul.bf16.gmra.mxu1 %v8232_v58 }
 0x501   : > { %v3856_v42 = vpop.f32.mrf.mxu2 }
 0x502   : > { %v3857_v23 = vadd.f32 %v3856_v42, %v3767_v7  ;;  %4318 = vmatmul.bf16.gmra.mxu3 %v8238_v18 }
 0x504   : > { %v3772_v28 = vpop.f32.mrf.mxu1  ;;  %v8684_v9 = vadd.f32 %v3945_v11, %v3857_v23 }
 0x505   : > { %v3948_v50 = vpop.f32.mrf.mxu3 }
 0x506   : > { %9439 = vst [vmem:[#allocation40_spill] sm:$0xff] %v8684_v9  ;;  %4229 = vmatmul.bf16.gmra.mxu2 %v8246_v26  ;;  %v9440_v9 = vld [vmem:[#allocation21_spill] sm:$0xff] }
 0x509   : > { %v3859_v4 = vpop.f32.mrf.mxu2 }
 0x50a   : > { %v3860_v0 = vadd.f32 %v3859_v4, %v3770_v14  ;;  %v6352_v14 = vld [vmem:[%s9121_s5 + $0x210] sm:$0xff] }
 0x50b   : > { %4740 = vmatpush.bf16.msra.mxu2 %v6352_v14  ;;  %v9444_v14 = vld [vmem:[#allocation24_spill] sm:$0xff] }
 0x50c   : > { %v4106_v49 = vpop.f32.mrf.mxu1  ;;  %v8687_v44 = vadd.f32 %v3948_v50, %v3860_v0  ;;  %v6344_v50 = vld [vmem:[%s9121_s5 + $0x1d0] sm:$0xff] }
 0x50d   : > { %v4107_v27 = vadd.f32 %v4106_v49, %v8319_v53  ;;  %v3950_v38 = vpop.f32.mrf.mxu3  ;;  %4651 = vmatpush.bf16.msra.mxu1 %v6344_v50 }
 0x50f   : > { %4145 = vmatmul.bf16.gmra.mxu1 %v8262_v29 }
 0x511   : > { %v3861_v58 = vpop.f32.mrf.mxu2 }
 0x512   : > { %v3862_v7 = vadd.f32 %v3861_v58, %v3772_v28  ;;  %4323 = vmatmul.bf16.gmra.mxu3 %v8268_v33  ;;  %v9442_v58 = vld [vmem:[#allocation50_spill] sm:$0xff] }
 0x514   : > { %v4108_v24 = vpop.f32.mrf.mxu1  ;;  %v8692_v11 = vadd.f32 %v3950_v38, %v3862_v7 }
 0x515   : > { %v4109_v42 = vadd.f32 %v4108_v24, %v8337_v56  ;;  %v4284_v23 = vpop.f32.mrf.mxu3 }
 0x516   : > { %4234 = vmatmul.bf16.gmra.mxu2 %v9440_v9 }
 0x519   : > { %v4195_v53 = vpop.f32.mrf.mxu2 }
 0x51a   : > { %v4196_v49 = vadd.f32 %v4195_v53, %v4107_v27 }
 0x51c   : > { %v8699_v29 = vadd.f32 %v4284_v23, %v4196_v49  ;;  %v4111_v28 = vpop.f32.mrf.mxu1 }
 0x51d   : > { %v4112_v4 = vadd.f32 %v4111_v28, %v8353_v34  ;;  %v4286_v56 = vpop.f32.mrf.mxu3 }
 0x51e   : > { %9441 = vst [vmem:[#allocation34_spill] sm:$0xff] %v8699_v29 }
 0x51f   : > { %4150 = vmatmul.bf16.gmra.mxu1 %v8292_v20 }
 0x521   : > { %v4197_v0 = vpop.f32.mrf.mxu2 }
 0x522   : > { %v4198_v38 = vadd.f32 %v4197_v0, %v4109_v42  ;;  %4328 = vmatmul.bf16.gmra.mxu3 %v9442_v58 }
 0x524   : > { %v8707_v7 = vadd.f32 %v4286_v56, %v4198_v38  ;;  %v4113_v27 = vpop.f32.mrf.mxu1  ;;  %v9445_v56 = vld [vmem:[#allocation53_spill] sm:$0xff] }
 0x525   : > { %v4114_v24 = vadd.f32 %v4113_v27, %v8371_v1  ;;  %v4289_v23 = vpop.f32.mrf.mxu3 }
 0x526   : > { %9443 = vst [vmem:[#allocation13_spill] sm:$0xff] %v8707_v7  ;;  %4239 = vmatmul.bf16.gmra.mxu2 %v9444_v14  ;;  %v9446_v7 = vld [vmem:[#allocation55_spill] sm:$0xff] }
 0x529   : > { %v4200_v53 = vpop.f32.mrf.mxu2 }
 0x52a   : > { %v4201_v49 = vadd.f32 %v4200_v53, %v4112_v4  ;;  %v6351_v4 = vld [vmem:[%s9121_s5 + $0x208] sm:$0xff] }
 0x52b   : > { %4741 = vmatpush.bf16.msra.mxu2 %v6351_v4  ;;  %v6343_v53 = vld [vmem:[%s9121_s5 + $0x1c8] sm:$0xff] }
 0x52c   : > { %v8711_v29 = vadd.f32 %v4289_v23, %v4201_v49  ;;  %v4116_v34 = vpop.f32.mrf.mxu1  ;;  %4652 = vmatpush.bf16.msra.mxu1 %v6343_v53 }
 0x52d   : > { %v4117_v28 = vadd.f32 %v4116_v34, %v8392_v3  ;;  %v4291_v20 = vpop.f32.mrf.mxu3 }
 0x52f   : > { %4155 = vmatmul.bf16.gmra.mxu1 %v8324_v37 }
 0x531   : > { %v4202_v42 = vpop.f32.mrf.mxu2 }
 0x532   : > { %v4203_v50 = vadd.f32 %v4202_v42, %v4114_v24  ;;  %4333 = vmatmul.bf16.gmra.mxu3 %v9445_v56  ;;  %v9448_v42 = vld [vmem:[#allocation27_spill] sm:$0xff] }
 0x534   : > { %v8716_v0 = vadd.f32 %v4291_v20, %v4203_v50  ;;  %v4118_v1 = vpop.f32.mrf.mxu1 }
 0x535   : > { %v4119_v38 = vadd.f32 %v4118_v1, %v8410_v8  ;;  %v4294_v27 = vpop.f32.mrf.mxu3 }
 0x536   : > { %4244 = vmatmul.bf16.gmra.mxu2 %v9446_v7 }
 0x539   : > { %v4205_v3 = vpop.f32.mrf.mxu2 }
 0x53a   : > { %v4206_v23 = vadd.f32 %v4205_v3, %v4117_v28 }
 0x53c   : > { %v8723_v37 = vadd.f32 %v4294_v27, %v4206_v23  ;;  %v4121_v24 = vpop.f32.mrf.mxu1  ;;  %v9449_v27 = vld [vmem:[#allocation54_spill] sm:$0xff] }
 0x53d   : > { %v4122_v49 = vadd.f32 %v4121_v24, %v8426_v45  ;;  %v4296_v8 = vpop.f32.mrf.mxu3 }
 0x53e   : > { %9447 = vst [vmem:[#allocation15_spill] sm:$0xff] %v8723_v37 }
 0x53f   : > { %4160 = vmatmul.bf16.gmra.mxu1 %v8358_v39 }
 0x541   : > { %v4207_v34 = vpop.f32.mrf.mxu2 }
 0x542   : > { %v4208_v20 = vadd.f32 %v4207_v34, %v4119_v38  ;;  %4338 = vmatmul.bf16.gmra.mxu3 %v9448_v42 }
 0x544   : > { %v8731_v50 = vadd.f32 %v4296_v8, %v4208_v20  ;;  %v4123_v28 = vpop.f32.mrf.mxu1  ;;  %v9450_v20 = vld [vmem:[#allocation57_spill] sm:$0xff] }
 0x545   : > { %v4124_v1 = vadd.f32 %v4123_v28, %v8447_v40  ;;  %v4299_v4 = vpop.f32.mrf.mxu3 }
 0x546   : > { %4249 = vmatmul.bf16.gmra.mxu2 %v9449_v27 }
 0x549   : > { %v4210_v3 = vpop.f32.mrf.mxu2 }
 0x54a   : > { %v4211_v23 = vadd.f32 %v4210_v3, %v4122_v49  ;;  %v6350_v49 = vld [vmem:[%s9121_s5 + $0x200] sm:$0xff] }
 0x54b   : > { %4742 = vmatpush.bf16.msra.mxu2 %v6350_v49 }
 0x54c   : > { %v8735_v37 = vadd.f32 %v4299_v4, %v4211_v23  ;;  %v4126_v45 = vpop.f32.mrf.mxu1  ;;  %v9451_v4 = vld [vmem:[#allocation64_spill] sm:$0xff] }
 0x54d   : > { %v4127_v24 = vadd.f32 %v4126_v45, %v8472_v60  ;;  %v4301_v53 = vpop.f32.mrf.mxu3  ;;  %v9452_v45 = vld [vmem:[#allocation29_spill] sm:$0xff] }
 0x54f   : > { %4165 = vmatmul.bf16.gmra.mxu1 %v8397_v21 }
 0x551   : > { %v4212_v39 = vpop.f32.mrf.mxu2 }
 0x552   : > { %v4213_v38 = vadd.f32 %v4212_v39, %v4124_v1  ;;  %4343 = vmatmul.bf16.gmra.mxu3 %v8403_v46  ;;  %v6342_v1 = vld [vmem:[%s9121_s5 + $0x1c0] sm:$0xff] }
 0x553   : > { %4653 = vmatpush.bf16.msra.mxu1 %v6342_v1 }
 0x554   : > { %v8740_v8 = vadd.f32 %v4301_v53, %v4213_v38  ;;  %v4128_v40 = vpop.f32.mrf.mxu1 }
 0x555   : > { %v4129_v34 = vadd.f32 %v4128_v40, %v8496_v10 }
 0x556   : > { %4254 = vmatmul.bf16.gmra.mxu2 %v9450_v20 }
 0x559   : > { %v4215_v60 = vpop.f32.mrf.mxu2 }
 0x55a   : > { %v8747_v28 = vadd.f32 %v4215_v60, %v4127_v24  ;;  %v9453_v24 = vld [vmem:[#allocation63_spill] sm:$0xff] }
 0x55c   : > { %v4131_v21 = vpop.f32.mrf.mxu1 }
 0x55d   : > { %v4132_v3 = vadd.f32 %v4131_v21, %v9451_v4 }
 0x55f   : > { %4170 = vmatmul.bf16.gmra.mxu1 %v8431_v12 }
 0x561   : > { %v4217_v10 = vpop.f32.mrf.mxu2 }
 0x562   : > { %v8754_v23 = vadd.f32 %v4217_v10, %v4129_v34  ;;  %4348 = vmatmul.bf16.gmra.mxu3 %v9452_v45  ;;  %v9454_v34 = vld [vmem:[#allocation58_spill] sm:$0xff]  ;;  %v9455_v10 = vld [vmem:[#allocation56_spill] sm:$0xff] }
 0x564   : > { %v4133_v39 = vpop.f32.mrf.mxu1 }
 0x565   : > { %v4134_v38 = vadd.f32 %v4133_v39, %v8534_v51 }
 0x566   : > { %4259 = vmatmul.bf16.gmra.mxu2 %v9453_v24 }
 0x569   : > { %v4220_v53 = vpop.f32.mrf.mxu2 }
 0x56a   : > { %v8759_v40 = vadd.f32 %v4220_v53, %v4132_v3 }
 0x56c   : > { %v4136_v49 = vpop.f32.mrf.mxu1 }
 0x56d   : > { %v4137_v60 = vadd.f32 %v4136_v49, %v8548_v25 }
 0x56f   : > { %4175 = vmatmul.bf16.gmra.mxu1 %v8477_v17 }
 0x571   : > { %v4222_v21 = vpop.f32.mrf.mxu2 }
 0x572   : > { %v8763_v12 = vadd.f32 %v4222_v21, %v4134_v38  ;;  %4353 = vmatmul.bf16.gmra.mxu3 %v9454_v34 }
 0x574   : > { %v4138_v1 = vpop.f32.mrf.mxu1 }
 0x575   : > { %v4139_v4 = vadd.f32 %v4138_v1, %v8567_v55 }
 0x576   : > { %4264 = vmatmul.bf16.gmra.mxu2 %v9455_v10 }
 0x579   : > { %v4225_v51 = vpop.f32.mrf.mxu2 }
 0x57a   : > { %v8768_v39 = vadd.f32 %v4225_v51, %v4137_v60 }
 0x57c   : > { %v4141_v3 = vpop.f32.mrf.mxu1 }
 0x57d   : > { %v4142_v53 = vadd.f32 %v4141_v3, %v8578_v6 }
 0x57f   : > { %4180 = vmatmul.bf16.gmra.mxu1 %v8520_v31 }
 0x581   : > { %v4227_v25 = vpop.f32.mrf.mxu2 }
 0x582   : > { %v8772_v17 = vadd.f32 %v4227_v25, %v4139_v4  ;;  %4358 = vmatmul.bf16.gmra.mxu3 %v8529_v2 }
 0x584   : > { %v4143_v38 = vpop.f32.mrf.mxu1 }
 0x585   : > { %v4144_v49 = vadd.f32 %v4143_v38, %v8589_v36 }
 0x586   : > { %4269 = vmatmul.bf16.gmra.mxu2 %v8537_v16 }
 0x589   : > { %v4230_v55 = vpop.f32.mrf.mxu2 }
 0x58a   : > { %v8777_v21 = vadd.f32 %v4230_v55, %v4142_v53 }
 0x58c   : > { %v4146_v60 = vpop.f32.mrf.mxu1 }
 0x58d   : > { %v4147_v1 = vadd.f32 %v4146_v60, %v8598_v54  ;;  %v9456_v60 = vld [vmem:[#allocation62_spill] sm:$0xff] }
 0x58f   : > { %4654 = vmatmul.bf16.vlgmr.msra.gmra.mxu1 %v9426_v57 }
 0x591   : > { %v4232_v6 = vpop.f32.mrf.mxu2 }
 0x592   : > { %v8781_v31 = vadd.f32 %v4232_v6, %v4144_v49 }
 0x594   : > { %v4148_v4 = vpop.f32.mrf.mxu1 }
 0x595   : > { %v4149_v51 = vadd.f32 %v4148_v4, %v8603_v62  ;;  %v9457_v4 = vld [vmem:[#allocation11_spill] sm:$0xff] }
 0x596   : > { %4743 = vmatmul.bf16.vlgmr.msra.gmra.mxu2 %v8042_v15 }
 0x599   : > { %v4235_v3 = vpop.f32.mrf.mxu2 }
 0x59a   : > { %v8785_v36 = vadd.f32 %v4235_v3, %v4147_v1 }
 0x59c   : > { %v4151_v25 = vpop.f32.mrf.mxu1 }
 0x59d   : > { %v4152_v53 = vadd.f32 %v4151_v25, %v8606_v48 }
 0x59f   : > { %4659 = vmatmul.bf16.gmra.mxu1 %v9431_v5 }
 0x5a1   : > { %v4237_v38 = vpop.f32.mrf.mxu2 }
 0x5a2   : > { %v8789_v54 = vadd.f32 %v4237_v38, %v4149_v51 }
 0x5a4   : > { %v4153_v57 = vpop.f32.mrf.mxu1 }
 0x5a5   : > { %v4154_v49 = vadd.f32 %v4153_v57, %v8613_v32 }
 0x5a6   : > { %4748 = vmatmul.bf16.gmra.mxu2 %v8076_v22 }
 0x5a9   : > { %v4240_v55 = vpop.f32.mrf.mxu2 }
 0x5aa   : > { %v8793_v62 = vadd.f32 %v4240_v55, %v4152_v53 }
 0x5ac   : > { %v4156_v15 = vpop.f32.mrf.mxu1 }
 0x5ad   : > { %v4157_v1 = vadd.f32 %v4156_v15, %v9456_v60 }
 0x5af   : > { %4664 = vmatmul.bf16.gmra.mxu1 %v8121_v47 }
 0x5b1   : > { %v4242_v6 = vpop.f32.mrf.mxu2 }
 0x5b2   : > { %v8797_v48 = vadd.f32 %v4242_v6, %v4154_v49 }
 0x5b4   : > { %v4158_v5 = vpop.f32.mrf.mxu1 }
 0x5b5   : > { %v4159_v51 = vadd.f32 %v4158_v5, %v9457_v4 }
 0x5b6   : > { %4753 = vmatmul.bf16.gmra.mxu2 %v8110_v59 }
 0x5b9   : > { %v4245_v3 = vpop.f32.mrf.mxu2 }
 0x5ba   : > { %v8801_v32 = vadd.f32 %v4245_v3, %v4157_v1  ;;  %v9458_v1 = vld [vmem:[#allocation14_spill] sm:$0xff] }
 0x5bb   : > { %v9459_v3 = vld [vmem:[#allocation38_spill] sm:$0xff] }
 0x5bc   : > { %v4161_v22 = vpop.f32.mrf.mxu1 }
 0x5bd   : > { %v4162_v25 = vadd.f32 %v4161_v22, %v8636_v19 }
 0x5bf   : > { %4669 = vmatmul.bf16.gmra.mxu1 %v8169_v61 }
 0x5c1   : > { %v4247_v53 = vpop.f32.mrf.mxu2 }
 0x5c2   : > { %v8805_v38 = vadd.f32 %v4247_v53, %v4159_v51 }
 0x5c4   : > { %v4163_v47 = vpop.f32.mrf.mxu1 }
 0x5c5   : > { %v4164_v57 = vadd.f32 %v4163_v47, %v8641_v41 }
 0x5c6   : > { %4758 = vmatmul.bf16.gmra.mxu2 %v8158_v52 }
 0x5c9   : > { %v4250_v49 = vpop.f32.mrf.mxu2 }
 0x5ca   : > { %v8809_v55 = vadd.f32 %v4250_v49, %v4162_v25  ;;  %v9460_v49 = vld [vmem:[#allocation40_spill] sm:$0xff] }
 0x5cc   : > { %v4166_v59 = vpop.f32.mrf.mxu1 }
 0x5cd   : > { %v4167_v15 = vadd.f32 %v4166_v59, %v8652_v63 }
 0x5cf   : > { %4674 = vmatmul.bf16.gmra.mxu1 %v8214_v35 }
 0x5d1   : > { %v4252_v60 = vpop.f32.mrf.mxu2 }
 0x5d2   : > { %v8813_v19 = vadd.f32 %v4252_v60, %v4164_v57 }
 0x5d4   : > { %v4168_v61 = vpop.f32.mrf.mxu1 }
 0x5d5   : > { %v4169_v6 = vadd.f32 %v4168_v61, %v9458_v1 }
 0x5d6   : > { %4763 = vmatmul.bf16.gmra.mxu2 %v8206_v43 }
 0x5d9   : > { %v4255_v5 = vpop.f32.mrf.mxu2 }
 0x5da   : > { %v8817_v41 = vadd.f32 %v4255_v5, %v4167_v15 }
 0x5dc   : > { %v4171_v52 = vpop.f32.mrf.mxu1 }
 0x5dd   : > { %v4172_v4 = vadd.f32 %v4171_v52, %v8664_v13 }
 0x5df   : > { %4679 = vmatmul.bf16.gmra.mxu1 %v8246_v26 }
 0x5e1   : > { %v4257_v51 = vpop.f32.mrf.mxu2 }
 0x5e2   : > { %v8821_v63 = vadd.f32 %v4257_v51, %v4169_v6 }
 0x5e4   : > { %v4173_v35 = vpop.f32.mrf.mxu1 }
 0x5e5   : > { %v4174_v22 = vadd.f32 %v4173_v35, %v9459_v3  ;;  %v9461_v35 = vld [vmem:[#allocation59_spill] sm:$0xff] }
 0x5e6   : > { %4768 = vmatmul.bf16.gmra.mxu2 %v8238_v18 }
 0x5e9   : > { %v4260_v25 = vpop.f32.mrf.mxu2 }
 0x5ea   : > { %v8825_v53 = vadd.f32 %v4260_v25, %v4172_v4 }
 0x5ec   : > { %v4176_v43 = vpop.f32.mrf.mxu1 }
 0x5ed   : > { %v4177_v47 = vadd.f32 %v4176_v43, %v8680_v30 }
 0x5ef   : > { %4684 = vmatmul.bf16.gmra.mxu1 %v9440_v9 }
 0x5f1   : > { %v4262_v57 = vpop.f32.mrf.mxu2 }
 0x5f2   : > { %v8829_v13 = vadd.f32 %v4262_v57, %v4174_v22  ;;  %v457_v22 = vld [vmem:[%s6778_s18] sm:$0xff]  }
 0x5f3   : > { %v4893_v57 = vunpack.c.h.bf16 %v457_v22 }
 0x5f4   : > { %v4178_v26 = vpop.f32.mrf.mxu1 }
 0x5f5   : > { %v4179_v59 = vadd.f32 %v4178_v26, %v9460_v49  ;;  %v9463_v49 = vld [vmem:[#allocation34_spill] sm:$0xff] }
 0x5f6   : > { %4773 = vmatmul.bf16.gmra.mxu2 %v8268_v33 }
 0x5f9   : > { %v4265_v15 = vpop.f32.mrf.mxu2 }
 0x5fa   : > { %v8833_v60 = vadd.f32 %v4265_v15, %v4177_v47  ;;  %v4892_v47 = vunpack.c.l.bf16 %v457_v22 }
 0x5fc   : > { %v4181_v18 = vpop.f32.mrf.mxu1 }
 0x5fd   : > { %v4182_v61 = vadd.f32 %v4181_v18, %v8687_v44  ;;  %v4989_v18 = vrot.slane %v4892_v47, 1 }
 0x5ff   : > { %4689 = vmatmul.bf16.gmra.mxu1 %v9444_v14 }
 0x601   : > { %v4267_v30 = vpop.f32.mrf.mxu2 }
 0x602   : > { %v8837_v1 = vadd.f32 %v4267_v30, %v4179_v59 }
 0x604   : > { %v4183_v9 = vpop.f32.mrf.mxu1 }
 0x605   : > { %v4184_v6 = vadd.f32 %v4183_v9, %v8692_v11 }
 0x606   : > { %4778 = vmatmul.bf16.gmra.mxu2 %v9442_v58  ;;  %v6552_v58 = vld [vmem:[%s6778_s18 + $0x8] sm:$0x1] }
 0x607   : > { %v4894_v43 = vunpack.c.l.bf16 %v6552_v58  ;;  %v9465_v58 = vld [vmem:[#allocation36_spill] sm:$0xff] }
 0x609   : > { %v4270_v5 = vpop.f32.mrf.mxu2  ;;  %v4992_v15 = vrot.slane %v4894_v43, 1 }
 0x60a   : > { %v8841_v33 = vadd.f32 %v4270_v5, %v4182_v61  ;;  %v4990_v61 = vrot.slane %v4893_v57, 1  ;;  %v9464_v5 = vld [vmem:[#allocation13_spill] sm:$0xff]  ;;  %v460_v57 = vld [vmem:[%s6778_s18 + $0xc] sm:$0xff]  }
 0x60c   : > { %v4655_v52 = vpop.f32.mrf.mxu1 }
 0x60d   : > { %v4656_v3 = vadd.f32 %v4655_v52, %v9461_v35  ;;  %v8867_v35 = vpop.f32.mrf.mxu0 }
 0x60f   : > { %4694 = vmatmul.bf16.gmra.mxu1 %v9446_v7  ;;  %v9462_v7 = vld [vmem:[#allocation66_spill] sm:$0xff] }
 0x611   : > { %v4272_v4 = vpop.f32.mrf.mxu2 }
 0x612   : > { %v8844_v44 = vadd.f32 %v4272_v4, %v4184_v6  ;;  %v4991_v4 = vsel %vm968_vm1, %v4989_v18, %v4990_v61  ;;  %v4896_v18 = vunpack.c.h.bf16 %v460_v57 }
 0x614   : > { %v4657_v14 = vpop.f32.mrf.mxu1 }
 0x615   : > { %v4658_v26 = vadd.f32 %v4657_v14, %v9462_v7  ;;  %v4993_v14 = vsel %vm968_vm1, %v4990_v61, %v4992_v15  ;;  %v8871_v7 = vpop.f32.mrf.mxu3  ;;  %v9466_v61 = vld [vmem:[#allocation10_spill] sm:$0xff] }
 0x616   : > { %4783 = vmatmul.bf16.gmra.mxu2 %v9445_v56  ;;  %v8856_v56 = vld [vmem:[%s9122_s6] ss:$0 sm:$0xff] }
 0x619   : > { %v4744_v51 = vpop.f32.mrf.mxu2 }
 0x61a   : > { %v4745_v11 = vadd.f32 %v4744_v51, %v4656_v3 }
 0x61c   : > { %v4660_v25 = vpop.f32.mrf.mxu1  ;;  %v4824_v59 = vadd.f32 %v4745_v11, %v9463_v49 }
 0x61d   : > { %v4661_v43 = vadd.f32 %v4660_v25, %v9465_v58 }
 0x61e   : > { %v4860_v6 = vadd.f32 %v8856_v56, %v4824_v59  ;;  %v6553_v59 = vld [vmem:[%s6778_s18 + $0x14] sm:$0x1] }
 0x61f   : > { %4699 = vmatmul.bf16.gmra.mxu1 %v9449_v27  ;;  %v4897_v15 = vunpack.c.l.bf16 %v6553_v59 }
 0x620   : > { %v5101_v3 = vadd.f32 %v4991_v4, %v4860_v6  ;;  %v8880_v4 = vpop.f32.mrf.mxu0 }
 0x621   : > { %v4746_v30 = vpop.f32.mrf.mxu2 }
 0x622   : > { %v4747_v9 = vadd.f32 %v4746_v30, %v4658_v26 }
 0x624   : > { %v4825_v27 = vadd.f32 %v4747_v9, %v9464_v5  ;;  %v4662_v52 = vpop.f32.mrf.mxu1  ;;  %v4997_v9 = vrot.slane %v4897_v15, 1  ;;  %v4995_v5 = vrot.slane %v4896_v18, 1  ;;  %v463_v15 = vld [vmem:[%s6778_s18 + $0x18] sm:$0xff]  }
 0x625   : > { %v4663_v30 = vadd.f32 %v4662_v52, %v9466_v61  ;;  %v6554_v61 = vld [vmem:[%s6778_s18 + $0x20] sm:$0x1] }
 0x626   : > { %v4861_v51 = vadd.f32 %v8856_v56, %v4825_v27  ;;  %4788 = vmatmul.bf16.gmra.mxu2 %v9448_v42  ;;  %v4895_v42 = vunpack.c.l.bf16 %v460_v57  ;;  %v9467_v57 = vld [vmem:[#allocation33_spill] sm:$0xff] }
 0x628   : > { %v5102_v22 = vadd.f32 %v4993_v14, %v4861_v51  ;;  %v4994_v6 = vrot.slane %v4895_v42, 1 }
 0x629   : > { %v4749_v11 = vpop.f32.mrf.mxu2 }
 0x62a   : > { %v6362_v47 = vpack.c.bf16 %v5102_v22, %v5101_v3  ;;  %v4750_v26 = vadd.f32 %v4749_v11, %v4661_v43  ;;  %v4996_v52 = vsel %vm968_vm1, %v4994_v6, %v4995_v5 }
 0x62c   : > { %6363 = vst [vmem:[%s8873_s29] sm:$0xff] %v6362_v47   ;;  %v4665_v49 = vpop.f32.mrf.mxu1  ;;  %v4826_v25 = vadd.f32 %v4750_v26, %v8711_v29  ;;  %v4998_v29 = vsel %vm968_vm1, %v4995_v5, %v4997_v9  ;;  %v4899_v9 = vunpack.c.h.bf16 %v463_v15 }
 0x62d   : > { %v4666_v26 = vadd.f32 %v4665_v49, %v9467_v57 }
 0x62e   : > { %v4862_v51 = vadd.f32 %v8856_v56, %v4826_v25  ;;  %v4898_v25 = vunpack.c.l.bf16 %v463_v15 }
 0x62f   : > { %4704 = vmatmul.bf16.gmra.mxu1 %v9450_v20  ;;  %v8884_v20 = vpop.f32.mrf.mxu3 }
 0x630   : > { %v5103_v58 = vadd.f32 %v4996_v52, %v4862_v51  ;;  %v4999_v51 = vrot.slane %v4898_v25, 1  ;;  %v466_v25 = vld [vmem:[%s6778_s18 + $0x24] sm:$0xff]  }
 0x631   : > { %v4751_v27 = vpop.f32.mrf.mxu2 }
 0x632   : > { %v4752_v14 = vadd.f32 %v4751_v27, %v4663_v30  ;;  %v4900_v30 = vunpack.c.l.bf16 %v6554_v61  ;;  %v9469_v27 = vld [vmem:[#allocation15_spill] sm:$0xff]  ;;  %v9470_v61 = vld [vmem:[#allocation17_spill] sm:$0xff] }
 0x634   : > { %v4827_v3 = vadd.f32 %v4752_v14, %v8716_v0  ;;  %v4667_v22 = vpop.f32.mrf.mxu1  ;;  %v8892_v0 = vpop.f32.mrf.mxu0  ;;  %v5002_v49 = vrot.slane %v4900_v30, 1 }
 0x636   : > { %v4863_v11 = vadd.f32 %v8856_v56, %v4827_v3  ;;  %4793 = vmatmul.bf16.gmra.mxu2 %v8403_v46  ;;  %v9468_v46 = vld [vmem:[#allocation16_spill] sm:$0xff]  ;;  %v5000_v3 = vrot.slane %v4899_v9, 1 }
 0x637   : > { %v8896_v6 = vpop.f32.mrf.mxu3  ;;  %v4668_v5 = vadd.f32 %v4667_v22, %v9468_v46 }
 0x638   : > { %v5104_v43 = vadd.f32 %v4998_v29, %v4863_v11 }
 0x639   : > { %v4754_v47 = vpop.f32.mrf.mxu2 }
 0x63a   : > { %v6367_v59 = vpack.c.bf16 %v5104_v43, %v5103_v58  ;;  %v4755_v42 = vadd.f32 %v4754_v47, %v4666_v26  ;;  %v5001_v47 = vsel %vm968_vm1, %v4999_v51, %v5000_v3 }
 0x63c   : > { %6439 = vst [vmem:[%s8873_s29 + $0x8] sm:$0xff] %v6367_v59   ;;  %v4670_v18 = vpop.f32.mrf.mxu1  ;;  %v4828_v14 = vadd.f32 %v4755_v42, %v9469_v27  ;;  %v8905_v22 = vpop.f32.mrf.mxu0 }
 0x63d   : > { %v4671_v30 = vadd.f32 %v4670_v18, %v9470_v61 }
 0x63e   : > { %v4864_v11 = vadd.f32 %v8856_v56, %v4828_v14  ;;  %v4901_v14 = vunpack.c.l.bf16 %v466_v25 }
 0x63f   : > { %4709 = vmatmul.bf16.gmra.mxu1 %v9453_v24  ;;  %v5003_v24 = vsel %vm968_vm1, %v5000_v3, %v5002_v49  ;;  %v8909_v15 = vpop.f32.mrf.mxu3  ;;  %v4902_v49 = vunpack.c.h.bf16 %v466_v25 }
 0x640   : > { %v5105_v26 = vadd.f32 %v5001_v47, %v4864_v11  ;;  %v5004_v11 = vrot.slane %v4901_v14, 1  ;;  %v6556_v14 = vld [vmem:[%s6778_s18 + $0x38] sm:$0x1] }
 0x641   : > { %v4756_v52 = vpop.f32.mrf.mxu2  ;;  %v5005_v18 = vrot.slane %v4902_v49, 1  ;;  %v4906_v49 = vunpack.c.l.bf16 %v6556_v14 }
 0x642   : > { %v4757_v29 = vadd.f32 %v4756_v52, %v4668_v5  ;;  %v6555_v5 = vld [vmem:[%s6778_s18 + $0x2c] sm:$0x1] }
 0x643   : > { %v4903_v27 = vunpack.c.l.bf16 %v6555_v5  ;;  %v469_v5 = vld [vmem:[%s6778_s18 + $0x30] sm:$0xff]  }
 0x644   : > { %v4829_v58 = vadd.f32 %v4757_v29, %v8731_v50  ;;  %v4672_v43 = vpop.f32.mrf.mxu1  ;;  %v8916_v51 = vpop.f32.mrf.mxu0 }
 0x645   : > { %v5007_v29 = vrot.slane %v4903_v27, 1 }
 0x646   : > { %v4865_v57 = vadd.f32 %v8856_v56, %v4829_v58  ;;  %4798 = vmatmul.bf16.gmra.mxu2 %v9452_v45  ;;  %v9471_v45 = vld [vmem:[#allocation19_spill] sm:$0xff] }
 0x647   : > { %v4673_v3 = vadd.f32 %v4672_v43, %v9471_v45  ;;  %v5008_v43 = vsel %vm968_vm1, %v5005_v18, %v5007_v29 }
 0x648   : > { %v5106_v59 = vadd.f32 %v5003_v24, %v4865_v57  ;;  %v8920_v24 = vpop.f32.mrf.mxu3 }
 0x649   : > { %v4759_v42 = vpop.f32.mrf.mxu2 }
 0x64a   : > { %v6372_v50 = vpack.c.bf16 %v5106_v59, %v5105_v26  ;;  %v4760_v9 = vadd.f32 %v4759_v42, %v4671_v30  ;;  %v5006_v59 = vsel %vm968_vm1, %v5004_v11, %v5005_v18 }
 0x64c   : > { %6440 = vst [vmem:[%s8873_s29 + $0x10] sm:$0xff] %v6372_v50   ;;  %v4675_v46 = vpop.f32.mrf.mxu1  ;;  %v4830_v52 = vadd.f32 %v4760_v9, %v8735_v37  ;;  %v8928_v50 = vpop.f32.mrf.mxu0 }
 0x64d   : > { %v4676_v25 = vadd.f32 %v4675_v46, %v8867_v35  ;;  %v5012_v35 = vrot.slane %v4906_v49, 1 }
 0x64e   : > { %v4866_v57 = vadd.f32 %v8856_v56, %v4830_v52  ;;  %v4905_v52 = vunpack.c.h.bf16 %v469_v5 }
 0x64f   : > { %4714 = vmatmul.bf16.gmra.mxu1 %v9455_v10 }
 0x650   : > { %v5107_v42 = vadd.f32 %v5006_v59, %v4866_v57  ;;  %v8934_v45 = vpop.f32.mrf.mxu3  ;;  %v5010_v18 = vrot.slane %v4905_v52, 1  ;;  %v9472_v52 = vld [vmem:[#allocation31_spill] sm:$0xff] }
 0x651   : > { %v4761_v58 = vpop.f32.mrf.mxu2 }
 0x652   : > { %v4762_v47 = vadd.f32 %v4761_v58, %v4673_v3  ;;  %v4904_v3 = vunpack.c.l.bf16 %v469_v5  ;;  %v6557_v5 = vld [vmem:[%s6778_s18 + $0x44] sm:$0x1] }
 0x654   : > { %v4831_v26 = vadd.f32 %v4762_v47, %v8740_v8  ;;  %v4677_v10 = vpop.f32.mrf.mxu1  ;;  %v5009_v46 = vrot.slane %v4904_v3, 1  ;;  %v4307_v47 = vadd.f32 %v8884_v20, %v8754_v23 }
 0x655   : > { %v4678_v29 = vadd.f32 %v4677_v10, %v8880_v4  ;;  %v5013_v4 = vsel %vm968_vm1, %v5010_v18, %v5012_v35 }
 0x656   : > { %v4867_v37 = vadd.f32 %v8856_v56, %v4831_v26  ;;  %4803 = vmatmul.bf16.gmra.mxu2 %v9454_v34  ;;  %v4305_v34 = vadd.f32 %v8871_v7, %v8747_v28  ;;  %v8942_v26 = vpop.f32.mrf.mxu0  ;;  %v5011_v7 = vsel %vm968_vm1, %v5009_v46, %v5010_v18  ;;  %v4312_v18 = vadd.f32 %v8909_v15, %v8763_v12 }
 0x658   : > { %v5108_v61 = vadd.f32 %v5008_v43, %v4867_v37  ;;  %v8949_v43 = vpop.f32.mrf.mxu3 }
 0x659   : > { %v4764_v30 = vpop.f32.mrf.mxu2 }
 0x65a   : > { %v6377_v9 = vpack.c.bf16 %v5108_v61, %v5107_v42  ;;  %v4765_v8 = vadd.f32 %v4764_v30, %v4676_v25  ;;  %v472_v30 = vld [vmem:[%s6778_s18 + $0x3c] sm:$0xff]  }
 0x65b   : > { %v4907_v14 = vunpack.c.l.bf16 %v472_v30  ;;  %v4908_v49 = vunpack.c.h.bf16 %v472_v30 }
 0x65c   : > { %6441 = vst [vmem:[%s8873_s29 + $0x18] sm:$0xff] %v6377_v9   ;;  %v4680_v27 = vpop.f32.mrf.mxu1  ;;  %v4832_v11 = vadd.f32 %v4765_v8, %v4305_v34  ;;  %v4909_v8 = vunpack.c.l.bf16 %v6557_v5 }
 0x65d   : > { %v4681_v42 = vadd.f32 %v4680_v27, %v8892_v0  ;;  %v5015_v35 = vrot.slane %v4908_v49, 1 }
 0x65e   : > { %v4868_v59 = vadd.f32 %v8856_v56, %v4832_v11  ;;  %v8955_v3 = vpop.f32.mrf.mxu0  ;;  %v5017_v0 = vrot.slane %v4909_v8, 1  ;;  %v5014_v11 = vrot.slane %v4907_v14, 1  ;;  %v4315_v8 = vadd.f32 %v8920_v24, %v8768_v39  ;;  %v9474_v14 = vld [vmem:[#allocation61_spill] sm:$0xff] }
 0x65f   : > { %4719 = vmatmul.bf16.gmra.mxu1 %v8537_v16 }
 0x660   : > { %v5109_v23 = vadd.f32 %v5011_v7, %v4868_v59  ;;  %v8961_v27 = vpop.f32.mrf.mxu3 }
 0x661   : > { %v4766_v58 = vpop.f32.mrf.mxu2 }
 0x662   : > { %v4767_v57 = vadd.f32 %v4766_v58, %v4678_v29 }
 0x664   : > { %v4833_v28 = vadd.f32 %v4767_v57, %v4307_v47  ;;  %v4682_v16 = vpop.f32.mrf.mxu1  ;;  %v5018_v57 = vsel %vm968_vm1, %v5015_v35, %v5017_v0  ;;  %v4317_v0 = vadd.f32 %v8934_v45, %v8772_v17 }
 0x665   : > { %v4683_v34 = vadd.f32 %v4682_v16, %v8905_v22  ;;  %v5016_v22 = vsel %vm968_vm1, %v5014_v11, %v5015_v35 }
 0x666   : > { %v4869_v10 = vadd.f32 %v8856_v56, %v4833_v28  ;;  %4808 = vmatmul.bf16.gmra.mxu2 %v8529_v2  ;;  %v4310_v2 = vadd.f32 %v8896_v6, %v8759_v40  ;;  %v9473_v28 = vld [vmem:[#allocation60_spill] sm:$0xff]  ;;  %v8970_v16 = vpop.f32.mrf.mxu0 }
 0x668   : > { %v5110_v20 = vadd.f32 %v5013_v4, %v4869_v10 }
 0x669   : > { %v4769_v37 = vpop.f32.mrf.mxu2 }
 0x66a   : > { %v6382_v61 = vpack.c.bf16 %v5110_v20, %v5109_v23  ;;  %v4770_v25 = vadd.f32 %v4769_v37, %v4681_v42  ;;  %v475_v23 = vld [vmem:[%s6778_s18 + $0x48] sm:$0xff]   ;;  %v8974_v20 = vpop.f32.mrf.mxu3 }
 0x66b   : > { %v4911_v5 = vunpack.c.h.bf16 %v475_v23 }
 0x66c   : > { %6442 = vst [vmem:[%s8873_s29 + $0x20] sm:$0xff] %v6382_v61   ;;  %v4685_v9 = vpop.f32.mrf.mxu1  ;;  %v4834_v29 = vadd.f32 %v4770_v25, %v4310_v2  ;;  %v6558_v61 = vld [vmem:[%s6778_s18 + $0x50] sm:$0x1]  ;;  %v4910_v25 = vunpack.c.l.bf16 %v475_v23  ;;  %v4320_v23 = vadd.f32 %v8949_v43, %v8777_v21 }
 0x66d   : > { %v4686_v15 = vadd.f32 %v4685_v9, %v8916_v51  ;;  %v4912_v30 = vunpack.c.l.bf16 %v6558_v61 }
 0x66e   : > { %v4870_v47 = vadd.f32 %v8856_v56, %v4834_v29  ;;  %v5019_v9 = vrot.slane %v4910_v25, 1  ;;  %v4608_v29 = vpop.f32.mrf.mxu0 }
 0x66f   : > { %4724 = vmatmul.bf16.gmra.mxu1 %v9472_v52  ;;  %v5022_v51 = vrot.slane %v4912_v30, 1  ;;  %v5020_v52 = vrot.slane %v4911_v5, 1 }
 0x670   : > { %v5111_v7 = vadd.f32 %v5016_v22, %v4870_v47  ;;  %v9475_v47 = vld [vmem:[#allocation65_spill] sm:$0xff] }
 0x671   : > { %v4771_v46 = vpop.f32.mrf.mxu2 }
 0x672   : > { %v4772_v58 = vadd.f32 %v4771_v46, %v4683_v34  ;;  %v4326_v24 = vpop.f32.mrf.mxu3 }
 0x674   : > { %v4835_v40 = vadd.f32 %v4772_v58, %v4312_v18  ;;  %v4687_v6 = vpop.f32.mrf.mxu1  ;;  %v5023_v18 = vsel %vm968_vm1, %v5020_v52, %v5022_v51 }
 0x675   : > { %v4688_v49 = vadd.f32 %v4687_v6, %v8928_v50  ;;  %v5021_v50 = vsel %vm968_vm1, %v5019_v9, %v5020_v52 }
 0x676   : > { %v4871_v59 = vadd.f32 %v8856_v56, %v4835_v40  ;;  %4813 = vmatmul.bf16.gmra.mxu2 %v9473_v28 }
 0x678   : > { %v5112_v4 = vadd.f32 %v5018_v57, %v4871_v59  ;;  %v478_v57 = vld [vmem:[%s6778_s18 + $0x54] sm:$0xff]   ;;  %v4611_v59 = vpop.f32.mrf.mxu0 }
 0x679   : > { %v4774_v12 = vpop.f32.mrf.mxu2 }
 0x67a   : > { %v6387_v10 = vpack.c.bf16 %v5112_v4, %v5111_v7  ;;  %v4775_v37 = vadd.f32 %v4774_v12, %v4686_v15  ;;  %v6559_v4 = vld [vmem:[%s6778_s18 + $0x5c] sm:$0x1]  ;;  %v4913_v15 = vunpack.c.l.bf16 %v478_v57 }
 0x67b   : > { %v4915_v12 = vunpack.c.l.bf16 %v6559_v4 }
 0x67c   : > { %6443 = vst [vmem:[%s8873_s29 + $0x28] sm:$0xff] %v6387_v10   ;;  %v4690_v42 = vpop.f32.mrf.mxu1  ;;  %v4836_v2 = vadd.f32 %v4775_v37, %v4315_v8  ;;  %v4914_v10 = vunpack.c.h.bf16 %v478_v57  ;;  %v4329_v37 = vpop.f32.mrf.mxu3  ;;  %v5024_v5 = vrot.slane %v4913_v15, 1  ;;  %v4322_v8 = vadd.f32 %v8961_v27, %v8781_v31 }
 0x67d   : > { %v4691_v17 = vadd.f32 %v4690_v42, %v8942_v26  ;;  %v5027_v25 = vrot.slane %v4915_v12, 1 }
 0x67e   : > { %v4872_v35 = vadd.f32 %v8856_v56, %v4836_v2  ;;  %v5025_v26 = vrot.slane %v4914_v10, 1 }
 0x67f   : > { %4729 = vmatmul.bf16.gmra.mxu1 %v9474_v14 }
 0x680   : > { %v5113_v40 = vadd.f32 %v5021_v50, %v4872_v35  ;;  %v5026_v21 = vsel %vm968_vm1, %v5024_v5, %v5025_v26  ;;  %v5028_v43 = vsel %vm968_vm1, %v5025_v26, %v5027_v25  ;;  %v481_v35 = vld [vmem:[%s6778_s18 + $0x60] sm:$0xff]   ;;  %v6560_v50 = vld [vmem:[%s6778_s18 + $0x68] sm:$0x1] }
 0x681   : > { %v4776_v34 = vpop.f32.mrf.mxu2 }
 0x682   : > { %v4777_v11 = vadd.f32 %v4776_v34, %v4688_v49 }
 0x684   : > { %v4837_v46 = vadd.f32 %v4777_v11, %v4317_v0  ;;  %v4692_v39 = vpop.f32.mrf.mxu1  ;;  %v4331_v0 = vpop.f32.mrf.mxu3 }
 0x685   : > { %v4693_v61 = vadd.f32 %v4692_v39, %v8955_v3  ;;  %v4613_v3 = vpop.f32.mrf.mxu0 }
 0x686   : > { %v4873_v58 = vadd.f32 %v8856_v56, %v4837_v46  ;;  %4818 = vmatmul.bf16.gmra.mxu2 %v9475_v47  ;;  %v4917_v47 = vunpack.c.h.bf16 %v481_v35 }
 0x688   : > { %v5114_v6 = vadd.f32 %v5023_v18, %v4873_v58  ;;  %v4918_v18 = vunpack.c.l.bf16 %v6560_v50  ;;  %v4916_v58 = vunpack.c.l.bf16 %v481_v35 }
 0x689   : > { %v4779_v22 = vpop.f32.mrf.mxu2 }
 0x68a   : > { %v6392_v45 = vpack.c.bf16 %v5114_v6, %v5113_v40  ;;  %v4780_v28 = vadd.f32 %v4779_v22, %v4691_v17  ;;  %v4325_v40 = vadd.f32 %v8974_v20, %v8785_v36  ;;  %v5029_v57 = vrot.slane %v4916_v58, 1 }
 0x68c   : > { %6444 = vst [vmem:[%s8873_s29 + $0x30] sm:$0xff] %v6392_v45   ;;  %v4695_v7 = vpop.f32.mrf.mxu1  ;;  %v4838_v30 = vadd.f32 %v4780_v28, %v4320_v23  ;;  %v5032_v45 = vrot.slane %v4918_v18, 1  ;;  %v5030_v28 = vrot.slane %v4917_v47, 1  ;;  %v4334_v12 = vpop.f32.mrf.mxu3 }
 0x68d   : > { %v4696_v31 = vadd.f32 %v4695_v7, %v8970_v16  ;;  %v4616_v6 = vpop.f32.mrf.mxu0  ;;  %v4327_v16 = vadd.f32 %v4326_v24, %v8789_v54  ;;  %v484_v24 = vld [vmem:[%s6778_s18 + $0x6c] sm:$0xff]  }
 0x68e   : > { %v4874_v49 = vadd.f32 %v8856_v56, %v4838_v30  ;;  %v5031_v36 = vsel %vm968_vm1, %v5029_v57, %v5030_v28  ;;  %v5033_v20 = vsel %vm968_vm1, %v5030_v28, %v5032_v45  ;;  %v6562_v28 = vld [vmem:[%s6778_s18 + $0x80] sm:$0x1] }
 0x690   : > { %v5115_v52 = vadd.f32 %v5026_v21, %v4874_v49  ;;  %v4920_v21 = vunpack.c.h.bf16 %v484_v24 }
 0x691   : > { %v4781_v42 = vpop.f32.mrf.mxu2 }
 0x692   : > { %v4782_v14 = vadd.f32 %v4781_v42, %v4693_v61 }
 0x694   : > { %v4839_v2 = vadd.f32 %v4782_v14, %v4322_v8  ;;  %v4697_v51 = vpop.f32.mrf.mxu1  ;;  %v6561_v14 = vld [vmem:[%s6778_s18 + $0x74] sm:$0x1] }
 0x695   : > { %v4698_v22 = vadd.f32 %v4697_v51, %v4608_v29  ;;  %v4618_v5 = vpop.f32.mrf.mxu0  ;;  %v4921_v49 = vunpack.c.l.bf16 %v6561_v14  ;;  %v4919_v51 = vunpack.c.l.bf16 %v484_v24 }
 0x696   : > { %v4875_v9 = vadd.f32 %v8856_v56, %v4839_v2  ;;  %v4336_v2 = vpop.f32.mrf.mxu3 }
 0x698   : > { %v5116_v34 = vadd.f32 %v5028_v43, %v4875_v9  ;;  %v4330_v43 = vadd.f32 %v4329_v37, %v8793_v62 }
 0x699   : > { %v4784_v11 = vpop.f32.mrf.mxu2 }
 0x69a   : > { %v6397_v27 = vpack.c.bf16 %v5116_v34, %v5115_v52  ;;  %v4785_v46 = vadd.f32 %v4784_v11, %v4696_v31  ;;  %v5037_v34 = vrot.slane %v4921_v49, 1  ;;  %v5034_v11 = vrot.slane %v4919_v51, 1 }
 0x69b   : > { %v5035_v31 = vrot.slane %v4920_v21, 1 }
 0x69c   : > { %6445 = vst [vmem:[%s8873_s29 + $0x38] sm:$0xff] %v6397_v27   ;;  %v4700_v39 = vpop.f32.mrf.mxu1  ;;  %v4840_v17 = vadd.f32 %v4785_v46, %v4325_v40 }
 0x69d   : > { %v4701_v26 = vadd.f32 %v4700_v39, %v4611_v59  ;;  %v4332_v59 = vadd.f32 %v4331_v0, %v8797_v48  ;;  %v4621_v46 = vpop.f32.mrf.mxu0  ;;  %v5036_v58 = vsel %vm968_vm1, %v5034_v11, %v5035_v31  ;;  %v5038_v62 = vsel %vm968_vm1, %v5035_v31, %v5037_v34  ;;  %v487_v0 = vld [vmem:[%s6778_s18 + $0x78] sm:$0xff]   ;;  %v6563_v34 = vld [vmem:[%s6778_s18 + $0x8c] sm:$0x1] }
 0x69e   : > { %v4876_v15 = vadd.f32 %v8856_v56, %v4840_v17  ;;  %v4927_v11 = vunpack.c.l.bf16 %v6563_v34  ;;  %v496_v34 = vld [vmem:[%s6778_s18 + $0x9c] sm:$0xff]  }
 0x6a0   : > { %v5117_v61 = vadd.f32 %v5031_v36, %v4876_v15 }
 0x6a1   : > { %v4786_v4 = vpop.f32.mrf.mxu2 }
 0x6a2   : > { %v4787_v7 = vadd.f32 %v4786_v4, %v4698_v22  ;;  %v4924_v4 = vunpack.c.l.bf16 %v6562_v28 }
 0x6a4   : > { %v4841_v10 = vadd.f32 %v4787_v7, %v4327_v16  ;;  %v4702_v23 = vpop.f32.mrf.mxu1  ;;  %v4922_v16 = vunpack.c.l.bf16 %v487_v0  ;;  %v4923_v7 = vunpack.c.h.bf16 %v487_v0 }
 0x6a5   : > { %v4703_v9 = vadd.f32 %v4702_v23, %v4613_v3  ;;  %v4339_v3 = vpop.f32.mrf.mxu3  ;;  %v4623_v15 = vpop.f32.mrf.mxu0 }
 0x6a6   : > { %v4877_v29 = vadd.f32 %v8856_v56, %v4841_v10  ;;  %v4335_v10 = vadd.f32 %v4334_v12, %v8801_v32 }
 0x6a8   : > { %v5118_v30 = vadd.f32 %v5033_v20, %v4877_v29  ;;  %v5042_v20 = vrot.slane %v4924_v4, 1 }
 0x6a9   : > { %v4789_v25 = vpop.f32.mrf.mxu2 }
 0x6aa   : > { %v6402_v54 = vpack.c.bf16 %v5118_v30, %v5117_v61  ;;  %v4790_v42 = vadd.f32 %v4789_v25, %v4701_v26  ;;  %v5039_v61 = vrot.slane %v4922_v16, 1  ;;  %v5040_v30 = vrot.slane %v4923_v7, 1 }
 0x6ab   : > { %v4337_v25 = vadd.f32 %v4336_v2, %v8805_v38  ;;  %v490_v38 = vld [vmem:[%s6778_s18 + $0x84] sm:$0xff]  }
 0x6ac   : > { %6446 = vst [vmem:[%s8873_s29 + $0x40] sm:$0xff] %v6402_v54   ;;  %v4705_v8 = vpop.f32.mrf.mxu1  ;;  %v4842_v52 = vadd.f32 %v4790_v42, %v4330_v43  ;;  %v5043_v32 = vsel %vm968_vm1, %v5040_v30, %v5042_v20  ;;  %v4925_v31 = vunpack.c.l.bf16 %v490_v38 }
 0x6ad   : > { %v4706_v17 = vadd.f32 %v4705_v8, %v4616_v6  ;;  %v4341_v29 = vpop.f32.mrf.mxu3  ;;  %v5041_v8 = vsel %vm968_vm1, %v5039_v61, %v5040_v30 }
 0x6ae   : > { %v4878_v39 = vadd.f32 %v8856_v56, %v4842_v52 }
 0x6b0   : > { %v5119_v47 = vadd.f32 %v5036_v58, %v4878_v39 }
 0x6b1   : > { %v4791_v27 = vpop.f32.mrf.mxu2 }
 0x6b2   : > { %v4792_v35 = vadd.f32 %v4791_v27, %v4703_v9  ;;  %v4926_v27 = vunpack.c.h.bf16 %v490_v38 }
 0x6b4   : > { %v4843_v50 = vadd.f32 %v4792_v35, %v4332_v59  ;;  %v4707_v18 = vpop.f32.mrf.mxu1  ;;  %v4340_v59 = vadd.f32 %v4339_v3, %v8809_v55  ;;  %v5045_v58 = vrot.slane %v4926_v27, 1 }
 0x6b5   : > { %v4708_v23 = vadd.f32 %v4707_v18, %v4618_v5  ;;  %v4626_v5 = vpop.f32.mrf.mxu0  ;;  %v4344_v2 = vpop.f32.mrf.mxu3  ;;  %v5044_v18 = vrot.slane %v4925_v31, 1  ;;  %v6565_v31 = vld [vmem:[%s6778_s18 + $0xa4] sm:$0x1] }
 0x6b6   : > { %v4879_v37 = vadd.f32 %v8856_v56, %v4843_v50  ;;  %v5047_v50 = vrot.slane %v4927_v11, 1  ;;  %v4345_v61 = vadd.f32 %v4344_v2, %v8817_v41  ;;  %v4933_v27 = vunpack.c.l.bf16 %v6565_v31 }
 0x6b7   : > { %v5046_v55 = vsel %vm968_vm1, %v5044_v18, %v5045_v58 }
 0x6b8   : > { %v5120_v40 = vadd.f32 %v5038_v62, %v4879_v37  ;;  %v4342_v37 = vadd.f32 %v4341_v29, %v8813_v19  ;;  %v5048_v3 = vsel %vm968_vm1, %v5045_v58, %v5047_v50  ;;  %v493_v19 = vld [vmem:[%s6778_s18 + $0x90] sm:$0xff]  }
 0x6b9   : > { %v4794_v22 = vpop.f32.mrf.mxu2  ;;  %v4929_v20 = vunpack.c.h.bf16 %v493_v19 }
 0x6ba   : > { %v6407_v48 = vpack.c.bf16 %v5120_v40, %v5119_v47  ;;  %v4795_v45 = vadd.f32 %v4794_v22, %v4706_v17 }
 0x6bc   : > { %6447 = vst [vmem:[%s8873_s29 + $0x48] sm:$0xff] %v6407_v48   ;;  %v4710_v57 = vpop.f32.mrf.mxu1  ;;  %v4844_v36 = vadd.f32 %v4795_v45, %v4335_v10  ;;  %v6564_v10 = vld [vmem:[%s6778_s18 + $0x98] sm:$0x1] }
 0x6bd   : > { %v4711_v21 = vadd.f32 %v4710_v57, %v4621_v46  ;;  %v4628_v46 = vpop.f32.mrf.mxu0  ;;  %v4346_v48 = vpop.f32.mrf.mxu3 }
 0x6be   : > { %v4880_v54 = vadd.f32 %v8856_v56, %v4844_v36  ;;  %v4928_v36 = vunpack.c.l.bf16 %v493_v19 }
 0x6c0   : > { %v5121_v14 = vadd.f32 %v5041_v8, %v4880_v54  ;;  %v5049_v54 = vrot.slane %v4928_v36, 1  ;;  %v4347_v8 = vadd.f32 %v4346_v48, %v8821_v63 }
 0x6c1   : > { %v4796_v6 = vpop.f32.mrf.mxu2 }
 0x6c2   : > { %v4797_v26 = vadd.f32 %v4796_v6, %v4708_v23  ;;  %v4930_v23 = vunpack.c.l.bf16 %v6564_v10 }
 0x6c4   : > { %v4845_v24 = vadd.f32 %v4797_v26, %v4337_v25  ;;  %v4712_v42 = vpop.f32.mrf.mxu1  ;;  %v5052_v26 = vrot.slane %v4930_v23, 1  ;;  %v6566_v23 = vld [vmem:[%s6778_s18 + $0xb0] sm:$0x1] }
 0x6c5   : > { %v4713_v35 = vadd.f32 %v4712_v42, %v4623_v15  ;;  %v4631_v7 = vpop.f32.mrf.mxu0  ;;  %v4349_v30 = vpop.f32.mrf.mxu3  ;;  %v4936_v36 = vunpack.c.l.bf16 %v6566_v23 }
 0x6c6   : > { %v4881_v12 = vadd.f32 %v8856_v56, %v4845_v24  ;;  %v5050_v24 = vrot.slane %v4929_v20, 1 }
 0x6c8   : > { %v5122_v49 = vadd.f32 %v5043_v32, %v4881_v12  ;;  %v5053_v41 = vsel %vm968_vm1, %v5050_v24, %v5052_v26  ;;  %v5062_v26 = vrot.slane %v4936_v36, 1 }
 0x6c9   : > { %v4799_v51 = vpop.f32.mrf.mxu2 }
 0x6ca   : > { %v6412_v43 = vpack.c.bf16 %v5122_v49, %v5121_v14  ;;  %v4800_v9 = vadd.f32 %v4799_v51, %v4711_v21  ;;  %v5051_v14 = vsel %vm968_vm1, %v5049_v54, %v5050_v24 }
 0x6cc   : > { %6448 = vst [vmem:[%s8873_s29 + $0x50] sm:$0xff] %v6412_v43   ;;  %v4715_v52 = vpop.f32.mrf.mxu1  ;;  %v4846_v39 = vadd.f32 %v4800_v9, %v4340_v59  ;;  %v4931_v59 = vunpack.c.l.bf16 %v496_v34 }
 0x6cd   : > { %v4716_v4 = vadd.f32 %v4715_v52, %v4626_v5  ;;  %v4633_v49 = vpop.f32.mrf.mxu0  ;;  %v4351_v2 = vpop.f32.mrf.mxu3 }
 0x6ce   : > { %v4882_v40 = vadd.f32 %v8856_v56, %v4846_v39  ;;  %v4350_v39 = vadd.f32 %v4349_v30, %v8825_v53 }
 0x6d0   : > { %v5123_v45 = vadd.f32 %v5046_v55, %v4882_v40 }
 0x6d1   : > { %v4801_v62 = vpop.f32.mrf.mxu2 }
 0x6d2   : > { %v4802_v47 = vadd.f32 %v4801_v62, %v4713_v35  ;;  %v4932_v35 = vunpack.c.h.bf16 %v496_v34  ;;  %v5057_v62 = vrot.slane %v4933_v27, 1  ;;  %v6567_v34 = vld [vmem:[%s6778_s18 + $0xbc] sm:$0x1] }
 0x6d4   : > { %v4847_v22 = vadd.f32 %v4802_v47, %v4342_v37  ;;  %v4717_v17 = vpop.f32.mrf.mxu1  ;;  %v5055_v37 = vrot.slane %v4932_v35, 1 }
 0x6d5   : > { %v4718_v6 = vadd.f32 %v4717_v17, %v4628_v46  ;;  %v4636_v50 = vpop.f32.mrf.mxu0  ;;  %v5054_v46 = vrot.slane %v4931_v59, 1  ;;  %v4354_v48 = vpop.f32.mrf.mxu3 }
 0x6d6   : > { %v4883_v0 = vadd.f32 %v8856_v56, %v4847_v22  ;;  %v4352_v22 = vadd.f32 %v4351_v2, %v8829_v13  ;;  %v4355_v30 = vadd.f32 %v4354_v48, %v8833_v60 }
 0x6d7   : > { %v5056_v53 = vsel %vm968_vm1, %v5054_v46, %v5055_v37 }
 0x6d8   : > { %v5124_v57 = vadd.f32 %v5048_v3, %v4883_v0  ;;  %v5058_v0 = vsel %vm968_vm1, %v5055_v37, %v5057_v62 }
 0x6d9   : > { %v4804_v28 = vpop.f32.mrf.mxu2 }
 0x6da   : > { %v6417_v16 = vpack.c.bf16 %v5124_v57, %v5123_v45  ;;  %v4805_v15 = vadd.f32 %v4804_v28, %v4716_v4 }
 0x6dc   : > { %6449 = vst [vmem:[%s8873_s29 + $0x58] sm:$0xff] %v6417_v16   ;;  %v4720_v29 = vpop.f32.mrf.mxu1  ;;  %v4848_v25 = vadd.f32 %v4805_v15, %v4345_v61 }
 0x6dd   : > { %v4721_v52 = vadd.f32 %v4720_v29, %v4631_v7  ;;  %v499_v7 = vld [vmem:[%s6778_s18 + $0xa8] sm:$0xff]   ;;  %v4638_v13 = vpop.f32.mrf.mxu0  ;;  %v4356_v20 = vpop.f32.mrf.mxu3 }
 0x6de   : > { %v4884_v12 = vadd.f32 %v8856_v56, %v4848_v25  ;;  %v4934_v29 = vunpack.c.l.bf16 %v499_v7  ;;  %v4935_v61 = vunpack.c.h.bf16 %v499_v7 }
 0x6e0   : > { %v5125_v43 = vadd.f32 %v5051_v14, %v4884_v12  ;;  %v5059_v54 = vrot.slane %v4934_v29, 1  ;;  %v5060_v24 = vrot.slane %v4935_v61, 1 }
 0x6e1   : > { %v4806_v42 = vpop.f32.mrf.mxu2 }
 0x6e2   : > { %v4807_v32 = vadd.f32 %v4806_v42, %v4718_v6  ;;  %v5063_v60 = vsel %vm968_vm1, %v5060_v24, %v5062_v26 }
 0x6e4   : > { %v4849_v5 = vadd.f32 %v4807_v32, %v4347_v8  ;;  %v4722_v21 = vpop.f32.mrf.mxu1  ;;  %v4357_v8 = vadd.f32 %v4356_v20, %v8837_v1 }
 0x6e5   : > { %v4723_v18 = vadd.f32 %v4722_v21, %v4633_v49  ;;  %v4641_v12 = vpop.f32.mrf.mxu0  ;;  %v5061_v49 = vsel %vm968_vm1, %v5059_v54, %v5060_v24  ;;  %v4359_v21 = vpop.f32.mrf.mxu3 }
 0x6e6   : > { %v4885_v51 = vadd.f32 %v8856_v56, %v4849_v5 }
 0x6e8   : > { %v5126_v38 = vadd.f32 %v5053_v41, %v4885_v51 }
 0x6e9   : > { %v4809_v9 = vpop.f32.mrf.mxu2 }
 0x6ea   : > { %v6422_v63 = vpack.c.bf16 %v5126_v38, %v5125_v43  ;;  %v4810_v11 = vadd.f32 %v4809_v9, %v4721_v52  ;;  %v502_v52 = vld [vmem:[%s6778_s18 + $0xb4] sm:$0xff]  }
 0x6eb   : > { %v4937_v59 = vunpack.c.l.bf16 %v502_v52  ;;  %v4938_v35 = vunpack.c.h.bf16 %v502_v52 }
 0x6ec   : > { %6450 = vst [vmem:[%s8873_s29 + $0x60] sm:$0xff] %v6422_v63   ;;  %v4850_v58 = vadd.f32 %v4810_v11, %v4350_v39  ;;  %v4725_v47 = vpop.f32.mrf.mxu1  ;;  %v4939_v11 = vunpack.c.l.bf16 %v6567_v34  ;;  %v4360_v39 = vadd.f32 %v4359_v21, %v8841_v33 }
 0x6ed   : > { %v4726_v16 = vadd.f32 %v4725_v47, %v4636_v50  ;;  %v4643_v31 = vpop.f32.mrf.mxu0  ;;  %v4361_v62 = vpop.f32.mrf.mxu3  ;;  %v5064_v46 = vrot.slane %v4937_v59, 1  ;;  %v5065_v37 = vrot.slane %v4938_v35, 1 }
 0x6ee   : > { %v4886_v55 = vadd.f32 %v8856_v56, %v4850_v58  ;;  %v5067_v58 = vrot.slane %v4939_v11, 1 }
 0x6ef   : > { %v5066_v48 = vsel %vm968_vm1, %v5064_v46, %v5065_v37 }
 0x6f0   : > { %v5127_v57 = vadd.f32 %v5056_v53, %v4886_v55  ;;  %v5068_v55 = vsel %vm968_vm1, %v5065_v37, %v5067_v58 }
 0x6f1   : > { %v4811_v40 = vpop.f32.mrf.mxu2 }
 0x6f2   : > { %v4812_v17 = vadd.f32 %v4811_v40, %v4723_v18  ;;  %v4362_v40 = vadd.f32 %v4361_v62, %v8844_v44 }
 0x6f4   : > { %v4851_v3 = vadd.f32 %v4812_v17, %v4352_v22  ;;  %v4727_v15 = vpop.f32.mrf.mxu1 }
 0x6f5   : > { %v4728_v6 = vadd.f32 %v4727_v15, %v4638_v13 }
 0x6f6   : > { %v4887_v45 = vadd.f32 %v8856_v56, %v4851_v3 }
 0x6f8   : > { %v5128_v28 = vadd.f32 %v5058_v0, %v4887_v45 }
 0x6f9   : > { %v4814_v4 = vpop.f32.mrf.mxu2 }
 0x6fa   : > { %v6427_v19 = vpack.c.bf16 %v5128_v28, %v5127_v57  ;;  %v4815_v10 = vadd.f32 %v4814_v4, %v4726_v16 }
 0x6fc   : > { %6451 = vst [vmem:[%s8873_s29 + $0x68] sm:$0xff] %v6427_v19   ;;  %v4852_v25 = vadd.f32 %v4815_v10, %v4355_v30  ;;  %v4730_v5 = vpop.f32.mrf.mxu1 }
 0x6fd   : > { %v4731_v38 = vadd.f32 %v4730_v5, %v4641_v12 }
 0x6fe   : > { %v4888_v14 = vadd.f32 %v8856_v56, %v4852_v25 }
 0x700   : > { %v5129_v43 = vadd.f32 %v5061_v49, %v4888_v14 }
 0x701   : > { %v4816_v42 = vpop.f32.mrf.mxu2 }
 0x702   : > { %v4817_v32 = vadd.f32 %v4816_v42, %v4728_v6 }
 0x704   : > { %v4853_v41 = vadd.f32 %v4817_v32, %v4357_v8  ;;  %v4732_v27 = vpop.f32.mrf.mxu1 }
 0x705   : > { %v4733_v50 = vadd.f32 %v4732_v27, %v4643_v31 }
 0x706   : > { %v4889_v51 = vadd.f32 %v8856_v56, %v4853_v41 }
 0x708   : > { %v5130_v2 = vadd.f32 %v5063_v60, %v4889_v51 }
 0x709   : > { %v4819_v1 = vpop.f32.mrf.mxu2 }
 0x70a   : > { %v6432_v9 = vpack.c.bf16 %v5130_v2, %v5129_v43  ;;  %v4820_v63 = vadd.f32 %v4819_v1, %v4731_v38 }
 0x70c   : > { %6452 = vst [vmem:[%s8873_s29 + $0x70] sm:$0xff] %v6432_v9   ;;  %v4854_v18 = vadd.f32 %v4820_v63, %v4360_v39 }
 0x70e   : > { %v4890_v33 = vadd.f32 %v8856_v56, %v4854_v18 }
 0x710   : > { %v5131_v53 = vadd.f32 %v5066_v48, %v4890_v33 }
 0x711   : > { %v4821_v47 = vpop.f32.mrf.mxu2 }
 0x712   : > { %v4822_v22 = vadd.f32 %v4821_v47, %v4733_v50 }
 0x714   : > { %v4855_v17 = vadd.f32 %v4822_v22, %v4362_v40 }
 0x716   : > { %v4891_v3 = vadd.f32 %v8856_v56, %v4855_v17 }
 0x718   : > { %v5132_v44 = vadd.f32 %v5068_v55, %v4891_v3 }
 0x71a   : > { %v6437_v0 = vpack.c.bf16 %v5132_v44, %v5131_v53 }
 0x71c   : > { %6453 = vst [vmem:[%s8873_s29 + $0x78] sm:$0xff] %v6437_v0  }
 0x71d   : > { %6595 = shalt.err (!%p6592_p5)
}
 0x71e   : > { %s6650_s21 = smov 64   ;;  %s6651_s29 = smov 4  }
 0x71f   : > { %6472 = dma.vmem_to_hbm [thread:$0]  (%p6732_p4), %s5214_s26, 2048, %s5216_s14, %s5198_s9, %s6650_s21, %s6650_s21, %s6651_s29  }
 0x720 PF: > { %p6479_p6 = scmp.ge.s32.totalorder %s6646_s28, 2  ;;  %s5230_s18 = sand.u32 1, %s6626_s23  }
 0x721   : > { %s5231_s30 = scalar_lea.sflag [#allocation3], %s5230_s18 }
 0x722   : > { %p6475_p7 = pnand %p6479_p6, %p6739_p8 }
 0x724   : > { %p6476_p9 = pneg %p6475_p7 }
 0x726   : > { %6621 = dma.done.wait (%p6476_p9), %s5231_s30, 2048  }
 0x727   : > { %6623 = vsyncadd (%p6476_p9), %s5231_s30, 4294965248  ;;  %s20_s28 = sadd.s32 1, %s6646_s28   ;;  %s9476_s23 = smov %s6630_s24 }
 0x728   : > { %p17_p10 = scmp.ge.s32.totalorder %s20_s28, 4   ;;  %s9477_s24 = smov %s6634_s25 }
 0x729   : > { %s9478_s25 = smov %s6745_s13  ;;  %s9479_s26 = smov %s6642_s27 }
 0x72a   : > { %s9480_s27 = smov %s9482_s8  ;;  %19 = sbr.rel (!%p17_p10) target bundleno = 4 (0x4), region = 93 }
 0x72f   :  { %5237 = vsyncpa [#allocation3], 1 }
 0x730   :  { %5239 = vsyncpa [#allocation3 + $0x1], 1 }

</bundles_post_ra>
